<compile_context>
chip_gen: v6e
topology: v6e:2x2x1
jax: 0.10.0
libtpu: 0.0.40
codegen_flags: <defaults>
</compile_context>

<pallas_src>
import functools

import jax
import jax.numpy as jnp
from jax.experimental import pallas as pl
from jax.experimental.pallas import tpu as pltpu

EPS = 1e-6
_INV_SQRT2 = 0.7071067811865476


def _layernorm(x, g, b):
    # PyTorch LayerNorm: biased variance over last dim, eps inside sqrt.
    mu = jnp.mean(x, axis=-1, keepdims=True)
    xc = x - mu
    var = jnp.mean(xc * xc, axis=-1, keepdims=True)
    return xc * jax.lax.rsqrt(var + EPS) * g + b


def _gelu_exact(x):
    # nn.GELU() default (approximate='none') -> exact erf formulation.
    return 0.5 * x * (1.0 + jax.lax.erf(x * _INV_SQRT2))


# ---------------------------------------------------------------------------
# Kernel body: one transformer block per grid step d = 0..depth-1.
#   d == 0      : activation <- x + pos_embed
#   every d     : pre-LN attention + residual, pre-LN MLP + residual
#   d == depth-1: final LayerNorm, write output
# Per-block weights arrive as depth-indexed blocks (auto double-buffered).
# ---------------------------------------------------------------------------
def encoder_block_kernel(x_ref, pos_ref,
                         g1_ref, b1_ref, wqkv_ref, bqkv_ref, wproj_ref, bproj_ref,
                         g2_ref, b2_ref, wfc1_ref, bfc1_ref, wfc2_ref, bfc2_ref,
                         gn_ref, bn_ref,
                         o_ref,
                         act_ref, attn_scr,
                         *, num_heads, scale):
    B, N, C = x_ref.shape
    hd = C // num_heads
    d = pl.program_id(0)

    # x += Temporal_pos_embed (pos_drop is identity at inference)
    @pl.when(d == 0)
    def _():
        act_ref[...] = (x_ref[...] + pos_ref[...]).reshape(B * N, C)

    x2 = act_ref[...]                                           # (B*N, C)

    # -------- attention branch (pre-LN) --------
    h = _layernorm(x2, g1_ref[0], b1_ref[0])
    qkv = jnp.dot(h, wqkv_ref[0],
                  preferred_element_type=jnp.float32) + bqkv_ref[0]   # (BN, 3C)
    qkv3 = qkv.reshape(B, N, 3 * C)

    for hh in range(num_heads):
        lo = hh * hd
        q = qkv3[:, :, lo:lo + hd]                              # (B, N, hd)
        k = qkv3[:, :, C + lo:C + lo + hd]
        v = qkv3[:, :, 2 * C + lo:2 * C + lo + hd]
        s = jnp.einsum('bnd,bmd->bnm', q, k,
                       preferred_element_type=jnp.float32) * scale    # (B, N, N)
        s = s - jnp.max(s, axis=-1, keepdims=True)
        p = jnp.exp(s)
        p = p * pl.reciprocal(jnp.sum(p, axis=-1, keepdims=True), approx=True)
        attn_scr[:, :, lo:lo + hd] = jnp.einsum(
            'bnm,bmd->bnd', p, v, preferred_element_type=jnp.float32)

    attn = attn_scr[...].reshape(B * N, C)
    attn = jnp.dot(attn, wproj_ref[0],
                   preferred_element_type=jnp.float32) + bproj_ref[0]
    x2 = x2 + attn

    # -------- MLP branch (pre-LN) --------
    h2 = _layernorm(x2, g2_ref[0], b2_ref[0])
    m = jnp.dot(h2, wfc1_ref[0], preferred_element_type=jnp.float32) + bfc1_ref[0]
    m = _gelu_exact(m)
    m = jnp.dot(m, wfc2_ref[0], preferred_element_type=jnp.float32) + bfc2_ref[0]
    x2 = x2 + m

    act_ref[...] = x2

    # -------- Temporal_norm + output (last block only) --------
    @pl.when(d == pl.num_programs(0) - 1)
    def _():
        out = _layernorm(x2, gn_ref[...], bn_ref[...])
        # x.view(b, frames, -1): no-op here since frames == num_frame.
        o_ref[...] = out.reshape(B, N, C).astype(o_ref.dtype)


# ---------------------------------------------------------------------------
# Wrapper
# ---------------------------------------------------------------------------
@functools.partial(jax.jit, static_argnames=("num_heads",))
def temporal_features_forward(x, params, *, num_heads):
    B, N, C = x.shape
    depth = params["wqkv_t"].shape[0]
    H = params["wfc1_t"].shape[-1]
    scale = (C // num_heads) ** (-0.5)
    kern = functools.partial(encoder_block_kernel,
                             num_heads=num_heads, scale=scale)

    res = lambda d: (0, 0, 0)      # resident block (constant index -> loaded once)
    per = lambda d: (d, 0, 0)      # per-depth weights (streamed, double-buffered)
    res2 = lambda d: (0, 0)

    grid_spec = pltpu.PrefetchScalarGridSpec(
        num_scalar_prefetch=0,
        grid=(depth,),
        in_specs=[
            pl.BlockSpec((B, N, C), res),            # x
            pl.BlockSpec((1, N, C), res),            # pos_embed
            pl.BlockSpec((1, 1, C), per),            # norm1 gamma
            pl.BlockSpec((1, 1, C), per),            # norm1 beta
            pl.BlockSpec((1, C, 3 * C), per),        # W_qkv^T
            pl.BlockSpec((1, 1, 3 * C), per),        # b_qkv
            pl.BlockSpec((1, C, C), per),            # W_proj^T
            pl.BlockSpec((1, 1, C), per),            # b_proj
            pl.BlockSpec((1, 1, C), per),            # norm2 gamma
            pl.BlockSpec((1, 1, C), per),            # norm2 beta
            pl.BlockSpec((1, C, H), per),            # W_fc1^T
            pl.BlockSpec((1, 1, H), per),            # b_fc1
            pl.BlockSpec((1, H, C), per),            # W_fc2^T
            pl.BlockSpec((1, 1, C), per),            # b_fc2
            pl.BlockSpec((1, C), res2),              # Temporal_norm gamma
            pl.BlockSpec((1, C), res2),              # Temporal_norm beta
        ],
        out_specs=pl.BlockSpec((B, N, C), res),
        scratch_shapes=[pltpu.VMEM((B * N, C), jnp.float32),   # activation
                        pltpu.VMEM((B, N, C), jnp.float32)],   # head concat
    )

    return pl.pallas_call(
        kern,
        out_shape=jax.ShapeDtypeStruct((B, N, C), x.dtype),
        grid_spec=grid_spec,
        compiler_params=pltpu.CompilerParams(
            dimension_semantics=("arbitrary",)),
    )(x, params["pos_embed"],
      params["g1"], params["b1"], params["wqkv_t"], params["bqkv"],
      params["wproj_t"], params["bproj"], params["g2"], params["b2"],
      params["wfc1_t"], params["bfc1"], params["wfc2_t"], params["bfc2"],
      params["gn"], params["bn"])


# ---------------------------------------------------------------------------
# Pure-JAX reference (mirrors the PyTorch forward at inference).
# ---------------------------------------------------------------------------
def temporal_features_reference(x, params, *, num_heads):
    B, N, C = x.shape
    hd = C // num_heads
    scale = hd ** (-0.5)
    depth = params["wqkv_t"].shape[0]

    x = x + params["pos_embed"]
    for d in range(depth):
        h = _layernorm(x, params["g1"][d], params["b1"][d])
        qkv = h @ params["wqkv_t"][d] + params["bqkv"][d]
        qkv = qkv.reshape(B, N, 3, num_heads, hd).transpose(2, 0, 3, 1, 4)
        q, k, v = qkv[0], qkv[1], qkv[2]
        s = jnp.einsum('bhnd,bhmd->bhnm', q, k) * scale
        p = jax.nn.softmax(s, axis=-1)
        o = jnp.einsum('bhnm,bhmd->bhnd', p, v)
        o = o.transpose(0, 2, 1, 3).reshape(B, N, C)
        o = o @ params["wproj_t"][d] + params["bproj"][d]
        x = x + o
        h2 = _layernorm(x, params["g2"][d], params["b2"][d])
        m = h2 @ params["wfc1_t"][d] + params["bfc1"][d]
        m = _gelu_exact(m)
        m = m @ params["wfc2_t"][d] + params["bfc2"][d]
        x = x + m
    return _layernorm(x, params["gn"], params["bn"])


# ---------------------------------------------------------------------------
# Deterministic parameter init (synthetic -- not a checkpoint load).
# Weights for the `depth` blocks are stacked along a leading depth axis and
# pre-transposed (PyTorch Linear does x @ W.T + b, so we store W.T).
# ---------------------------------------------------------------------------
def init_params(key, *, num_frame, embed_dim, depth, mlp_hidden):
    C, H = embed_dim, mlp_hidden
    keys = jax.random.split(key, 1 + 4 * depth)

    def w(k, shape):
        return 0.02 * jax.random.normal(k, shape, dtype=jnp.float32)

    params = {
        "pos_embed": w(keys[0], (1, num_frame, C)),
        "gn": jnp.ones((1, C), jnp.float32),
        "bn": jnp.zeros((1, C), jnp.float32),
        "g1": jnp.ones((depth, 1, C), jnp.float32),
        "b1": jnp.zeros((depth, 1, C), jnp.float32),
        "wqkv_t": jnp.stack([w(keys[1 + 4 * d], (C, 3 * C)) for d in range(depth)]),
        "bqkv": jnp.zeros((depth, 1, 3 * C), jnp.float32),      # qkv_bias=True
        "wproj_t": jnp.stack([w(keys[2 + 4 * d], (C, C)) for d in range(depth)]),
        "bproj": jnp.zeros((depth, 1, C), jnp.float32),
        "g2": jnp.ones((depth, 1, C), jnp.float32),
        "b2": jnp.zeros((depth, 1, C), jnp.float32),
        "wfc1_t": jnp.stack([w(keys[3 + 4 * d], (C, H)) for d in range(depth)]),
        "bfc1": jnp.zeros((depth, 1, H), jnp.float32),
        "wfc2_t": jnp.stack([w(keys[4 + 4 * d], (H, C)) for d in range(depth)]),
        "bfc2": jnp.zeros((depth, 1, C), jnp.float32),
    }
    return params


if __name__ == "__main__":
    # Small shapes consistent with the module's forward:
    #   embed_dim = embed_dim_ratio * num_joints = 32 * 4 = 128
    B, num_frame, num_joints, embed_dim_ratio = 2, 8, 4, 32
    num_heads, depth, mlp_ratio = 8, 4, 2.0
    embed_dim = embed_dim_ratio * num_joints
    mlp_hidden = int(embed_dim * mlp_ratio)

    key = jax.random.PRNGKey(0)
    kx, kp = jax.random.split(key)
    x = jax.random.normal(kx, (B, num_frame, embed_dim), dtype=jnp.float32)
    params = init_params(kp, num_frame=num_frame, embed_dim=embed_dim,
                         depth=depth, mlp_hidden=mlp_hidden)

    # TODO(synk): optional bf16 matmul operands (v6e/v7x) were left out to
    # preserve f32 parity with the PyTorch reference in this script.
    out = temporal_features_forward(x, params, num_heads=num_heads)
    out = jax.block_until_ready(out)
    assert out.shape == (B, num_frame, embed_dim), out.shape
    assert bool(jnp.all(jnp.isfinite(out)))

    ref = temporal_features_reference(x, params, num_heads=num_heads)
    ref = jax.block_until_ready(ref)
    assert jnp.allclose(out, ref, rtol=2e-2, atol=2e-2), float(
        jnp.max(jnp.abs(out - ref)))
    print("KERNEL_OK")
</pallas_src>

<mosaic_0001>
module attributes {stable_mosaic.version = 11 : i64} {
  func.func @encoder_block_kernel(%arg0: i32, %arg1: memref<2x8x128xf32, #tpu.memory_space<vmem>>, %arg2: memref<1x8x128xf32, #tpu.memory_space<vmem>>, %arg3: memref<1x1x128xf32, #tpu.memory_space<vmem>>, %arg4: memref<1x1x128xf32, #tpu.memory_space<vmem>>, %arg5: memref<1x128x384xf32, #tpu.memory_space<vmem>>, %arg6: memref<1x1x384xf32, #tpu.memory_space<vmem>>, %arg7: memref<1x128x128xf32, #tpu.memory_space<vmem>>, %arg8: memref<1x1x128xf32, #tpu.memory_space<vmem>>, %arg9: memref<1x1x128xf32, #tpu.memory_space<vmem>>, %arg10: memref<1x1x128xf32, #tpu.memory_space<vmem>>, %arg11: memref<1x128x256xf32, #tpu.memory_space<vmem>>, %arg12: memref<1x1x256xf32, #tpu.memory_space<vmem>>, %arg13: memref<1x256x128xf32, #tpu.memory_space<vmem>>, %arg14: memref<1x1x128xf32, #tpu.memory_space<vmem>>, %arg15: memref<1x128xf32, #tpu.memory_space<vmem>>, %arg16: memref<1x128xf32, #tpu.memory_space<vmem>>, %arg17: memref<2x8x128xf32, #tpu.memory_space<vmem>>, %arg18: memref<16x128xf32, #tpu.memory_space<vmem>>, %arg19: memref<2x8x128xf32, #tpu.memory_space<vmem>>) attributes {dimension_semantics = [#tpu.dimension_semantics<arbitrary>], iteration_bounds = array<i64: 4>, scalar_prefetch = 0 : i64, scratch_operands = 2 : i64, tpu.core_type = #tpu.core_type<tc>, window_params = [{pipeline_mode = #tpu.pipeline_mode<synchronous>, transform_indices = @transform_0, window_bounds = array<i64: 2, 8, 128>}, {pipeline_mode = #tpu.pipeline_mode<synchronous>, transform_indices = @transform_1, window_bounds = array<i64: 1, 8, 128>}, {transform_indices = @transform_2, window_bounds = array<i64: 1, 1, 128>}, {transform_indices = @transform_3, window_bounds = array<i64: 1, 1, 128>}, {transform_indices = @transform_4, window_bounds = array<i64: 1, 128, 384>}, {transform_indices = @transform_5, window_bounds = array<i64: 1, 1, 384>}, {transform_indices = @transform_6, window_bounds = array<i64: 1, 128, 128>}, {transform_indices = @transform_7, window_bounds = array<i64: 1, 1, 128>}, {transform_indices = @transform_8, window_bounds = array<i64: 1, 1, 128>}, {transform_indices = @transform_9, window_bounds = array<i64: 1, 1, 128>}, {transform_indices = @transform_10, window_bounds = array<i64: 1, 128, 256>}, {transform_indices = @transform_11, window_bounds = array<i64: 1, 1, 256>}, {transform_indices = @transform_12, window_bounds = array<i64: 1, 256, 128>}, {transform_indices = @transform_13, window_bounds = array<i64: 1, 1, 128>}, {pipeline_mode = #tpu.pipeline_mode<synchronous>, transform_indices = @transform_14, window_bounds = array<i64: 1, 128>}, {pipeline_mode = #tpu.pipeline_mode<synchronous>, transform_indices = @transform_15, window_bounds = array<i64: 1, 128>}, {pipeline_mode = #tpu.pipeline_mode<synchronous>, transform_indices = @transform_16, window_bounds = array<i64: 2, 8, 128>}]} {
    %c0_i32 = arith.constant 0 : i32
    %0 = arith.cmpi eq, %arg0, %c0_i32 : i32
    %1 = arith.extui %0 : i1 to i32
    %c0_i32_0 = arith.constant 0 : i32
    %2 = arith.cmpi ne, %1, %c0_i32_0 : i32
    scf.if %2 {
      %c0_117 = arith.constant 0 : index
      %c0_118 = arith.constant 0 : index
      %c0_119 = arith.constant 0 : index
      %241 = vector.load %arg1[%c0_117, %c0_118, %c0_119] : memref<2x8x128xf32, #tpu.memory_space<vmem>>, vector<2x8x128xf32>
      %c0_120 = arith.constant 0 : index
      %c0_121 = arith.constant 0 : index
      %c0_122 = arith.constant 0 : index
      %242 = vector.load %arg2[%c0_120, %c0_121, %c0_122] : memref<1x8x128xf32, #tpu.memory_space<vmem>>, vector<1x8x128xf32>
      %243 = vector.broadcast %242 : vector<1x8x128xf32> to vector<2x8x128xf32>
      %244 = arith.addf %241, %243 : vector<2x8x128xf32>
      %245 = vector.shape_cast %244 : vector<2x8x128xf32> to vector<16x128xf32>
      %c0_123 = arith.constant 0 : index
      %c0_124 = arith.constant 0 : index
      %246 = vector.load %arg18[%c0_123, %c0_124] : memref<16x128xf32, #tpu.memory_space<vmem>>, vector<16x128xf32>
      tpu.vector_store %arg18[%c0_123, %c0_124], %245 {strides = array<i32>} : memref<16x128xf32, #tpu.memory_space<vmem>>, vector<16x128xf32>,
    } else {
    }
    %c0 = arith.constant 0 : index
    %c0_1 = arith.constant 0 : index
    %3 = vector.load %arg18[%c0, %c0_1] : memref<16x128xf32, #tpu.memory_space<vmem>>, vector<16x128xf32>
    %c0_2 = arith.constant 0 : index
    %c0_3 = arith.constant 0 : index
    %c0_4 = arith.constant 0 : index
    %4 = vector.load %arg3[%c0_2, %c0_3, %c0_4] : memref<1x1x128xf32, #tpu.memory_space<vmem>>, vector<1x1x128xf32>
    %5 = vector.shape_cast %4 : vector<1x1x128xf32> to vector<1x128xf32>
    %c0_5 = arith.constant 0 : index
    %c0_6 = arith.constant 0 : index
    %c0_7 = arith.constant 0 : index
    %6 = vector.load %arg4[%c0_5, %c0_6, %c0_7] : memref<1x1x128xf32, #tpu.memory_space<vmem>>, vector<1x1x128xf32>
    %7 = vector.shape_cast %6 : vector<1x1x128xf32> to vector<1x128xf32>
    %cst = arith.constant dense<0.000000e+00> : vector<16xf32>
    %8 = vector.multi_reduction <add>, %3, %cst [1] : vector<16x128xf32> to vector<16xf32>
    %9 = vector.shape_cast %8 : vector<16xf32> to vector<16x1xf32>
    %cst_8 = arith.constant 1.280000e+02 : f32
    %10 = vector.broadcast %cst_8 : f32 to vector<16x1xf32>
    %11 = arith.divf %9, %10 : vector<16x1xf32>
    %12 = vector.broadcast %11 : vector<16x1xf32> to vector<16x128xf32>
    %13 = arith.subf %3, %12 : vector<16x128xf32>
    %14 = arith.mulf %13, %13 : vector<16x128xf32>
    %cst_9 = arith.constant dense<0.000000e+00> : vector<16xf32>
    %15 = vector.multi_reduction <add>, %14, %cst_9 [1] : vector<16x128xf32> to vector<16xf32>
    %16 = vector.shape_cast %15 : vector<16xf32> to vector<16x1xf32>
    %cst_10 = arith.constant 1.280000e+02 : f32
    %17 = vector.broadcast %cst_10 : f32 to vector<16x1xf32>
    %18 = arith.divf %16, %17 : vector<16x1xf32>
    %cst_11 = arith.constant 9.99999997E-7 : f32
    %19 = vector.broadcast %cst_11 : f32 to vector<16x1xf32>
    %20 = arith.addf %18, %19 : vector<16x1xf32>
    %21 = math.rsqrt %20 : vector<16x1xf32>
    %22 = vector.broadcast %21 : vector<16x1xf32> to vector<16x128xf32>
    %23 = arith.mulf %13, %22 : vector<16x128xf32>
    %24 = vector.broadcast %5 : vector<1x128xf32> to vector<16x128xf32>
    %25 = arith.mulf %23, %24 : vector<16x128xf32>
    %26 = vector.broadcast %7 : vector<1x128xf32> to vector<16x128xf32>
    %27 = arith.addf %25, %26 : vector<16x128xf32>
    %c0_12 = arith.constant 0 : index
    %c0_13 = arith.constant 0 : index
    %c0_14 = arith.constant 0 : index
    %28 = vector.load %arg5[%c0_12, %c0_13, %c0_14] : memref<1x128x384xf32, #tpu.memory_space<vmem>>, vector<1x128x384xf32>
    %29 = vector.shape_cast %28 : vector<1x128x384xf32> to vector<128x384xf32>
    %cst_15 = arith.constant dense<0.000000e+00> : vector<16x384xf32>
    %30 = tpu.matmul %27, %29, %cst_15 {dimension_numbers = #tpu.dot_dimension_numbers<[1], [0], [0], [1], [0, 0, 1, 1], [], []>} : vector<16x128xf32>, vector<128x384xf32>, vector<16x384xf32> -> vector<16x384xf32>
    %c0_16 = arith.constant 0 : index
    %c0_17 = arith.constant 0 : index
    %c0_18 = arith.constant 0 : index
    %31 = vector.load %arg6[%c0_16, %c0_17, %c0_18] : memref<1x1x384xf32, #tpu.memory_space<vmem>>, vector<1x1x384xf32>
    %32 = vector.shape_cast %31 : vector<1x1x384xf32> to vector<1x384xf32>
    %33 = vector.broadcast %32 : vector<1x384xf32> to vector<16x384xf32>
    %34 = arith.addf %30, %33 : vector<16x384xf32>
    %35 = vector.shape_cast %34 : vector<16x384xf32> to vector<2x8x384xf32>
    %36 = vector.extract_strided_slice %35 {offsets = [0, 0, 0], sizes = [2, 8, 16], strides = [1, 1, 1]} : vector<2x8x384xf32> to vector<2x8x16xf32>
    %37 = vector.extract_strided_slice %35 {offsets = [0, 0, 128], sizes = [2, 8, 16], strides = [1, 1, 1]} : vector<2x8x384xf32> to vector<2x8x16xf32>
    %38 = vector.extract_strided_slice %35 {offsets = [0, 0, 256], sizes = [2, 8, 16], strides = [1, 1, 1]} : vector<2x8x384xf32> to vector<2x8x16xf32>
    "tpu.trace_start"() <{level = 10 : i32, message = "bnd,bmd->bnm"}> : () -> ()
    %cst_19 = arith.constant dense<0.000000e+00> : vector<2x8x8xf32>
    %39 = tpu.matmul %36, %37, %cst_19 {dimension_numbers = #tpu.dot_dimension_numbers<[2], [2], [1], [1], [0, 0, 0, 1, 1, 1], [0], [0]>} : vector<2x8x16xf32>, vector<2x8x16xf32>, vector<2x8x8xf32> -> vector<2x8x8xf32>
    "tpu.trace_stop"() : () -> ()
    %cst_20 = arith.constant 2.500000e-01 : f32
    %40 = vector.broadcast %cst_20 : f32 to vector<2x8x8xf32>
    %41 = arith.mulf %39, %40 : vector<2x8x8xf32>
    %cst_21 = arith.constant dense<0xFF800000> : vector<2x8xf32>
    %42 = vector.multi_reduction <maximumf>, %41, %cst_21 [2] : vector<2x8x8xf32> to vector<2x8xf32>
    %43 = vector.shape_cast %42 : vector<2x8xf32> to vector<2x8x1xf32>
    %44 = vector.broadcast %43 : vector<2x8x1xf32> to vector<2x8x8xf32>
    %45 = arith.subf %41, %44 : vector<2x8x8xf32>
    %46 = math.exp %45 : vector<2x8x8xf32>
    %cst_22 = arith.constant dense<0.000000e+00> : vector<2x8xf32>
    %47 = vector.multi_reduction <add>, %46, %cst_22 [2] : vector<2x8x8xf32> to vector<2x8xf32>
    %48 = vector.shape_cast %47 : vector<2x8xf32> to vector<2x8x1xf32>
    %49 = tpu.reciprocal %48 {approx = true} : vector<2x8x1xf32> -> vector<2x8x1xf32>
    %50 = vector.broadcast %49 : vector<2x8x1xf32> to vector<2x8x8xf32>
    %51 = arith.mulf %46, %50 : vector<2x8x8xf32>
    "tpu.trace_start"() <{level = 10 : i32, message = "bnm,bmd->bnd"}> : () -> ()
    %cst_23 = arith.constant dense<0.000000e+00> : vector<2x8x16xf32>
    %52 = tpu.matmul %51, %38, %cst_23 {dimension_numbers = #tpu.dot_dimension_numbers<[2], [1], [1], [2], [0, 0, 0, 1, 1, 2], [0], [0]>} : vector<2x8x8xf32>, vector<2x8x16xf32>, vector<2x8x16xf32> -> vector<2x8x16xf32>
    "tpu.trace_stop"() : () -> ()
    %c0_24 = arith.constant 0 : index
    %c0_25 = arith.constant 0 : index
    %c0_26 = arith.constant 0 : index
    %53 = vector.load %arg19[%c0_24, %c0_25, %c0_26] : memref<2x8x128xf32, #tpu.memory_space<vmem>>, vector<2x8x16xf32>
    tpu.vector_store %arg19[%c0_24, %c0_25, %c0_26], %52 {strides = array<i32>} : memref<2x8x128xf32, #tpu.memory_space<vmem>>, vector<2x8x16xf32>,
    %54 = vector.extract_strided_slice %35 {offsets = [0, 0, 16], sizes = [2, 8, 16], strides = [1, 1, 1]} : vector<2x8x384xf32> to vector<2x8x16xf32>
    %55 = vector.extract_strided_slice %35 {offsets = [0, 0, 144], sizes = [2, 8, 16], strides = [1, 1, 1]} : vector<2x8x384xf32> to vector<2x8x16xf32>
    %56 = vector.extract_strided_slice %35 {offsets = [0, 0, 272], sizes = [2, 8, 16], strides = [1, 1, 1]} : vector<2x8x384xf32> to vector<2x8x16xf32>
    "tpu.trace_start"() <{level = 10 : i32, message = "bnd,bmd->bnm"}> : () -> ()
    %cst_27 = arith.constant dense<0.000000e+00> : vector<2x8x8xf32>
    %57 = tpu.matmul %54, %55, %cst_27 {dimension_numbers = #tpu.dot_dimension_numbers<[2], [2], [1], [1], [0, 0, 0, 1, 1, 1], [0], [0]>} : vector<2x8x16xf32>, vector<2x8x16xf32>, vector<2x8x8xf32> -> vector<2x8x8xf32>
    "tpu.trace_stop"() : () -> ()
    %cst_28 = arith.constant 2.500000e-01 : f32
    %58 = vector.broadcast %cst_28 : f32 to vector<2x8x8xf32>
    %59 = arith.mulf %57, %58 : vector<2x8x8xf32>
    %cst_29 = arith.constant dense<0xFF800000> : vector<2x8xf32>
    %60 = vector.multi_reduction <maximumf>, %59, %cst_29 [2] : vector<2x8x8xf32> to vector<2x8xf32>
    %61 = vector.shape_cast %60 : vector<2x8xf32> to vector<2x8x1xf32>
    %62 = vector.broadcast %61 : vector<2x8x1xf32> to vector<2x8x8xf32>
    %63 = arith.subf %59, %62 : vector<2x8x8xf32>
    %64 = math.exp %63 : vector<2x8x8xf32>
    %cst_30 = arith.constant dense<0.000000e+00> : vector<2x8xf32>
    %65 = vector.multi_reduction <add>, %64, %cst_30 [2] : vector<2x8x8xf32> to vector<2x8xf32>
    %66 = vector.shape_cast %65 : vector<2x8xf32> to vector<2x8x1xf32>
    %67 = tpu.reciprocal %66 {approx = true} : vector<2x8x1xf32> -> vector<2x8x1xf32>
    %68 = vector.broadcast %67 : vector<2x8x1xf32> to vector<2x8x8xf32>
    %69 = arith.mulf %64, %68 : vector<2x8x8xf32>
    "tpu.trace_start"() <{level = 10 : i32, message = "bnm,bmd->bnd"}> : () -> ()
    %cst_31 = arith.constant dense<0.000000e+00> : vector<2x8x16xf32>
    %70 = tpu.matmul %69, %56, %cst_31 {dimension_numbers = #tpu.dot_dimension_numbers<[2], [1], [1], [2], [0, 0, 0, 1, 1, 2], [0], [0]>} : vector<2x8x8xf32>, vector<2x8x16xf32>, vector<2x8x16xf32> -> vector<2x8x16xf32>
    "tpu.trace_stop"() : () -> ()
    %c0_32 = arith.constant 0 : index
    %c0_33 = arith.constant 0 : index
    %c16 = arith.constant 16 : index
    %71 = vector.load %arg19[%c0_32, %c0_33, %c16] : memref<2x8x128xf32, #tpu.memory_space<vmem>>, vector<2x8x16xf32>
    tpu.vector_store %arg19[%c0_32, %c0_33, %c16], %70 {strides = array<i32>} : memref<2x8x128xf32, #tpu.memory_space<vmem>>, vector<2x8x16xf32>,
    %72 = vector.extract_strided_slice %35 {offsets = [0, 0, 32], sizes = [2, 8, 16], strides = [1, 1, 1]} : vector<2x8x384xf32> to vector<2x8x16xf32>
    %73 = vector.extract_strided_slice %35 {offsets = [0, 0, 160], sizes = [2, 8, 16], strides = [1, 1, 1]} : vector<2x8x384xf32> to vector<2x8x16xf32>
    %74 = vector.extract_strided_slice %35 {offsets = [0, 0, 288], sizes = [2, 8, 16], strides = [1, 1, 1]} : vector<2x8x384xf32> to vector<2x8x16xf32>
    "tpu.trace_start"() <{level = 10 : i32, message = "bnd,bmd->bnm"}> : () -> ()
    %cst_34 = arith.constant dense<0.000000e+00> : vector<2x8x8xf32>
    %75 = tpu.matmul %72, %73, %cst_34 {dimension_numbers = #tpu.dot_dimension_numbers<[2], [2], [1], [1], [0, 0, 0, 1, 1, 1], [0], [0]>} : vector<2x8x16xf32>, vector<2x8x16xf32>, vector<2x8x8xf32> -> vector<2x8x8xf32>
    "tpu.trace_stop"() : () -> ()
    %cst_35 = arith.constant 2.500000e-01 : f32
    %76 = vector.broadcast %cst_35 : f32 to vector<2x8x8xf32>
    %77 = arith.mulf %75, %76 : vector<2x8x8xf32>
    %cst_36 = arith.constant dense<0xFF800000> : vector<2x8xf32>
    %78 = vector.multi_reduction <maximumf>, %77, %cst_36 [2] : vector<2x8x8xf32> to vector<2x8xf32>
    %79 = vector.shape_cast %78 : vector<2x8xf32> to vector<2x8x1xf32>
    %80 = vector.broadcast %79 : vector<2x8x1xf32> to vector<2x8x8xf32>
    %81 = arith.subf %77, %80 : vector<2x8x8xf32>
    %82 = math.exp %81 : vector<2x8x8xf32>
    %cst_37 = arith.constant dense<0.000000e+00> : vector<2x8xf32>
    %83 = vector.multi_reduction <add>, %82, %cst_37 [2] : vector<2x8x8xf32> to vector<2x8xf32>
    %84 = vector.shape_cast %83 : vector<2x8xf32> to vector<2x8x1xf32>
    %85 = tpu.reciprocal %84 {approx = true} : vector<2x8x1xf32> -> vector<2x8x1xf32>
    %86 = vector.broadcast %85 : vector<2x8x1xf32> to vector<2x8x8xf32>
    %87 = arith.mulf %82, %86 : vector<2x8x8xf32>
    "tpu.trace_start"() <{level = 10 : i32, message = "bnm,bmd->bnd"}> : () -> ()
    %cst_38 = arith.constant dense<0.000000e+00> : vector<2x8x16xf32>
    %88 = tpu.matmul %87, %74, %cst_38 {dimension_numbers = #tpu.dot_dimension_numbers<[2], [1], [1], [2], [0, 0, 0, 1, 1, 2], [0], [0]>} : vector<2x8x8xf32>, vector<2x8x16xf32>, vector<2x8x16xf32> -> vector<2x8x16xf32>
    "tpu.trace_stop"() : () -> ()
    %c0_39 = arith.constant 0 : index
    %c0_40 = arith.constant 0 : index
    %c32 = arith.constant 32 : index
    %89 = vector.load %arg19[%c0_39, %c0_40, %c32] : memref<2x8x128xf32, #tpu.memory_space<vmem>>, vector<2x8x16xf32>
    tpu.vector_store %arg19[%c0_39, %c0_40, %c32], %88 {strides = array<i32>} : memref<2x8x128xf32, #tpu.memory_space<vmem>>, vector<2x8x16xf32>,
    %90 = vector.extract_strided_slice %35 {offsets = [0, 0, 48], sizes = [2, 8, 16], strides = [1, 1, 1]} : vector<2x8x384xf32> to vector<2x8x16xf32>
    %91 = vector.extract_strided_slice %35 {offsets = [0, 0, 176], sizes = [2, 8, 16], strides = [1, 1, 1]} : vector<2x8x384xf32> to vector<2x8x16xf32>
    %92 = vector.extract_strided_slice %35 {offsets = [0, 0, 304], sizes = [2, 8, 16], strides = [1, 1, 1]} : vector<2x8x384xf32> to vector<2x8x16xf32>
    "tpu.trace_start"() <{level = 10 : i32, message = "bnd,bmd->bnm"}> : () -> ()
    %cst_41 = arith.constant dense<0.000000e+00> : vector<2x8x8xf32>
    %93 = tpu.matmul %90, %91, %cst_41 {dimension_numbers = #tpu.dot_dimension_numbers<[2], [2], [1], [1], [0, 0, 0, 1, 1, 1], [0], [0]>} : vector<2x8x16xf32>, vector<2x8x16xf32>, vector<2x8x8xf32> -> vector<2x8x8xf32>
    "tpu.trace_stop"() : () -> ()
    %cst_42 = arith.constant 2.500000e-01 : f32
    %94 = vector.broadcast %cst_42 : f32 to vector<2x8x8xf32>
    %95 = arith.mulf %93, %94 : vector<2x8x8xf32>
    %cst_43 = arith.constant dense<0xFF800000> : vector<2x8xf32>
    %96 = vector.multi_reduction <maximumf>, %95, %cst_43 [2] : vector<2x8x8xf32> to vector<2x8xf32>
    %97 = vector.shape_cast %96 : vector<2x8xf32> to vector<2x8x1xf32>
    %98 = vector.broadcast %97 : vector<2x8x1xf32> to vector<2x8x8xf32>
    %99 = arith.subf %95, %98 : vector<2x8x8xf32>
    %100 = math.exp %99 : vector<2x8x8xf32>
    %cst_44 = arith.constant dense<0.000000e+00> : vector<2x8xf32>
    %101 = vector.multi_reduction <add>, %100, %cst_44 [2] : vector<2x8x8xf32> to vector<2x8xf32>
    %102 = vector.shape_cast %101 : vector<2x8xf32> to vector<2x8x1xf32>
    %103 = tpu.reciprocal %102 {approx = true} : vector<2x8x1xf32> -> vector<2x8x1xf32>
    %104 = vector.broadcast %103 : vector<2x8x1xf32> to vector<2x8x8xf32>
    %105 = arith.mulf %100, %104 : vector<2x8x8xf32>
    "tpu.trace_start"() <{level = 10 : i32, message = "bnm,bmd->bnd"}> : () -> ()
    %cst_45 = arith.constant dense<0.000000e+00> : vector<2x8x16xf32>
    %106 = tpu.matmul %105, %92, %cst_45 {dimension_numbers = #tpu.dot_dimension_numbers<[2], [1], [1], [2], [0, 0, 0, 1, 1, 2], [0], [0]>} : vector<2x8x8xf32>, vector<2x8x16xf32>, vector<2x8x16xf32> -> vector<2x8x16xf32>
    "tpu.trace_stop"() : () -> ()
    %c0_46 = arith.constant 0 : index
    %c0_47 = arith.constant 0 : index
    %c48 = arith.constant 48 : index
    %107 = vector.load %arg19[%c0_46, %c0_47, %c48] : memref<2x8x128xf32, #tpu.memory_space<vmem>>, vector<2x8x16xf32>
    tpu.vector_store %arg19[%c0_46, %c0_47, %c48], %106 {strides = array<i32>} : memref<2x8x128xf32, #tpu.memory_space<vmem>>, vector<2x8x16xf32>,
    %108 = vector.extract_strided_slice %35 {offsets = [0, 0, 64], sizes = [2, 8, 16], strides = [1, 1, 1]} : vector<2x8x384xf32> to vector<2x8x16xf32>
    %109 = vector.extract_strided_slice %35 {offsets = [0, 0, 192], sizes = [2, 8, 16], strides = [1, 1, 1]} : vector<2x8x384xf32> to vector<2x8x16xf32>
    %110 = vector.extract_strided_slice %35 {offsets = [0, 0, 320], sizes = [2, 8, 16], strides = [1, 1, 1]} : vector<2x8x384xf32> to vector<2x8x16xf32>
    "tpu.trace_start"() <{level = 10 : i32, message = "bnd,bmd->bnm"}> : () -> ()
    %cst_48 = arith.constant dense<0.000000e+00> : vector<2x8x8xf32>
    %111 = tpu.matmul %108, %109, %cst_48 {dimension_numbers = #tpu.dot_dimension_numbers<[2], [2], [1], [1], [0, 0, 0, 1, 1, 1], [0], [0]>} : vector<2x8x16xf32>, vector<2x8x16xf32>, vector<2x8x8xf32> -> vector<2x8x8xf32>
    "tpu.trace_stop"() : () -> ()
    %cst_49 = arith.constant 2.500000e-01 : f32
    %112 = vector.broadcast %cst_49 : f32 to vector<2x8x8xf32>
    %113 = arith.mulf %111, %112 : vector<2x8x8xf32>
    %cst_50 = arith.constant dense<0xFF800000> : vector<2x8xf32>
    %114 = vector.multi_reduction <maximumf>, %113, %cst_50 [2] : vector<2x8x8xf32> to vector<2x8xf32>
    %115 = vector.shape_cast %114 : vector<2x8xf32> to vector<2x8x1xf32>
    %116 = vector.broadcast %115 : vector<2x8x1xf32> to vector<2x8x8xf32>
    %117 = arith.subf %113, %116 : vector<2x8x8xf32>
    %118 = math.exp %117 : vector<2x8x8xf32>
    %cst_51 = arith.constant dense<0.000000e+00> : vector<2x8xf32>
    %119 = vector.multi_reduction <add>, %118, %cst_51 [2] : vector<2x8x8xf32> to vector<2x8xf32>
    %120 = vector.shape_cast %119 : vector<2x8xf32> to vector<2x8x1xf32>
    %121 = tpu.reciprocal %120 {approx = true} : vector<2x8x1xf32> -> vector<2x8x1xf32>
    %122 = vector.broadcast %121 : vector<2x8x1xf32> to vector<2x8x8xf32>
    %123 = arith.mulf %118, %122 : vector<2x8x8xf32>
    "tpu.trace_start"() <{level = 10 : i32, message = "bnm,bmd->bnd"}> : () -> ()
    %cst_52 = arith.constant dense<0.000000e+00> : vector<2x8x16xf32>
    %124 = tpu.matmul %123, %110, %cst_52 {dimension_numbers = #tpu.dot_dimension_numbers<[2], [1], [1], [2], [0, 0, 0, 1, 1, 2], [0], [0]>} : vector<2x8x8xf32>, vector<2x8x16xf32>, vector<2x8x16xf32> -> vector<2x8x16xf32>
    "tpu.trace_stop"() : () -> ()
    %c0_53 = arith.constant 0 : index
    %c0_54 = arith.constant 0 : index
    %c64 = arith.constant 64 : index
    %125 = vector.load %arg19[%c0_53, %c0_54, %c64] : memref<2x8x128xf32, #tpu.memory_space<vmem>>, vector<2x8x16xf32>
    tpu.vector_store %arg19[%c0_53, %c0_54, %c64], %124 {strides = array<i32>} : memref<2x8x128xf32, #tpu.memory_space<vmem>>, vector<2x8x16xf32>,
    %126 = vector.extract_strided_slice %35 {offsets = [0, 0, 80], sizes = [2, 8, 16], strides = [1, 1, 1]} : vector<2x8x384xf32> to vector<2x8x16xf32>
    %127 = vector.extract_strided_slice %35 {offsets = [0, 0, 208], sizes = [2, 8, 16], strides = [1, 1, 1]} : vector<2x8x384xf32> to vector<2x8x16xf32>
    %128 = vector.extract_strided_slice %35 {offsets = [0, 0, 336], sizes = [2, 8, 16], strides = [1, 1, 1]} : vector<2x8x384xf32> to vector<2x8x16xf32>
    "tpu.trace_start"() <{level = 10 : i32, message = "bnd,bmd->bnm"}> : () -> ()
    %cst_55 = arith.constant dense<0.000000e+00> : vector<2x8x8xf32>
    %129 = tpu.matmul %126, %127, %cst_55 {dimension_numbers = #tpu.dot_dimension_numbers<[2], [2], [1], [1], [0, 0, 0, 1, 1, 1], [0], [0]>} : vector<2x8x16xf32>, vector<2x8x16xf32>, vector<2x8x8xf32> -> vector<2x8x8xf32>
    "tpu.trace_stop"() : () -> ()
    %cst_56 = arith.constant 2.500000e-01 : f32
    %130 = vector.broadcast %cst_56 : f32 to vector<2x8x8xf32>
    %131 = arith.mulf %129, %130 : vector<2x8x8xf32>
    %cst_57 = arith.constant dense<0xFF800000> : vector<2x8xf32>
    %132 = vector.multi_reduction <maximumf>, %131, %cst_57 [2] : vector<2x8x8xf32> to vector<2x8xf32>
    %133 = vector.shape_cast %132 : vector<2x8xf32> to vector<2x8x1xf32>
    %134 = vector.broadcast %133 : vector<2x8x1xf32> to vector<2x8x8xf32>
    %135 = arith.subf %131, %134 : vector<2x8x8xf32>
    %136 = math.exp %135 : vector<2x8x8xf32>
    %cst_58 = arith.constant dense<0.000000e+00> : vector<2x8xf32>
    %137 = vector.multi_reduction <add>, %136, %cst_58 [2] : vector<2x8x8xf32> to vector<2x8xf32>
    %138 = vector.shape_cast %137 : vector<2x8xf32> to vector<2x8x1xf32>
    %139 = tpu.reciprocal %138 {approx = true} : vector<2x8x1xf32> -> vector<2x8x1xf32>
    %140 = vector.broadcast %139 : vector<2x8x1xf32> to vector<2x8x8xf32>
    %141 = arith.mulf %136, %140 : vector<2x8x8xf32>
    "tpu.trace_start"() <{level = 10 : i32, message = "bnm,bmd->bnd"}> : () -> ()
    %cst_59 = arith.constant dense<0.000000e+00> : vector<2x8x16xf32>
    %142 = tpu.matmul %141, %128, %cst_59 {dimension_numbers = #tpu.dot_dimension_numbers<[2], [1], [1], [2], [0, 0, 0, 1, 1, 2], [0], [0]>} : vector<2x8x8xf32>, vector<2x8x16xf32>, vector<2x8x16xf32> -> vector<2x8x16xf32>
    "tpu.trace_stop"() : () -> ()
    %c0_60 = arith.constant 0 : index
    %c0_61 = arith.constant 0 : index
    %c80 = arith.constant 80 : index
    %143 = vector.load %arg19[%c0_60, %c0_61, %c80] : memref<2x8x128xf32, #tpu.memory_space<vmem>>, vector<2x8x16xf32>
    tpu.vector_store %arg19[%c0_60, %c0_61, %c80], %142 {strides = array<i32>} : memref<2x8x128xf32, #tpu.memory_space<vmem>>, vector<2x8x16xf32>,
    %144 = vector.extract_strided_slice %35 {offsets = [0, 0, 96], sizes = [2, 8, 16], strides = [1, 1, 1]} : vector<2x8x384xf32> to vector<2x8x16xf32>
    %145 = vector.extract_strided_slice %35 {offsets = [0, 0, 224], sizes = [2, 8, 16], strides = [1, 1, 1]} : vector<2x8x384xf32> to vector<2x8x16xf32>
    %146 = vector.extract_strided_slice %35 {offsets = [0, 0, 352], sizes = [2, 8, 16], strides = [1, 1, 1]} : vector<2x8x384xf32> to vector<2x8x16xf32>
    "tpu.trace_start"() <{level = 10 : i32, message = "bnd,bmd->bnm"}> : () -> ()
    %cst_62 = arith.constant dense<0.000000e+00> : vector<2x8x8xf32>
    %147 = tpu.matmul %144, %145, %cst_62 {dimension_numbers = #tpu.dot_dimension_numbers<[2], [2], [1], [1], [0, 0, 0, 1, 1, 1], [0], [0]>} : vector<2x8x16xf32>, vector<2x8x16xf32>, vector<2x8x8xf32> -> vector<2x8x8xf32>
    "tpu.trace_stop"() : () -> ()
    %cst_63 = arith.constant 2.500000e-01 : f32
    %148 = vector.broadcast %cst_63 : f32 to vector<2x8x8xf32>
    %149 = arith.mulf %147, %148 : vector<2x8x8xf32>
    %cst_64 = arith.constant dense<0xFF800000> : vector<2x8xf32>
    %150 = vector.multi_reduction <maximumf>, %149, %cst_64 [2] : vector<2x8x8xf32> to vector<2x8xf32>
    %151 = vector.shape_cast %150 : vector<2x8xf32> to vector<2x8x1xf32>
    %152 = vector.broadcast %151 : vector<2x8x1xf32> to vector<2x8x8xf32>
    %153 = arith.subf %149, %152 : vector<2x8x8xf32>
    %154 = math.exp %153 : vector<2x8x8xf32>
    %cst_65 = arith.constant dense<0.000000e+00> : vector<2x8xf32>
    %155 = vector.multi_reduction <add>, %154, %cst_65 [2] : vector<2x8x8xf32> to vector<2x8xf32>
    %156 = vector.shape_cast %155 : vector<2x8xf32> to vector<2x8x1xf32>
    %157 = tpu.reciprocal %156 {approx = true} : vector<2x8x1xf32> -> vector<2x8x1xf32>
    %158 = vector.broadcast %157 : vector<2x8x1xf32> to vector<2x8x8xf32>
    %159 = arith.mulf %154, %158 : vector<2x8x8xf32>
    "tpu.trace_start"() <{level = 10 : i32, message = "bnm,bmd->bnd"}> : () -> ()
    %cst_66 = arith.constant dense<0.000000e+00> : vector<2x8x16xf32>
    %160 = tpu.matmul %159, %146, %cst_66 {dimension_numbers = #tpu.dot_dimension_numbers<[2], [1], [1], [2], [0, 0, 0, 1, 1, 2], [0], [0]>} : vector<2x8x8xf32>, vector<2x8x16xf32>, vector<2x8x16xf32> -> vector<2x8x16xf32>
    "tpu.trace_stop"() : () -> ()
    %c0_67 = arith.constant 0 : index
    %c0_68 = arith.constant 0 : index
    %c96 = arith.constant 96 : index
    %161 = vector.load %arg19[%c0_67, %c0_68, %c96] : memref<2x8x128xf32, #tpu.memory_space<vmem>>, vector<2x8x16xf32>
    tpu.vector_store %arg19[%c0_67, %c0_68, %c96], %160 {strides = array<i32>} : memref<2x8x128xf32, #tpu.memory_space<vmem>>, vector<2x8x16xf32>,
    %162 = vector.extract_strided_slice %35 {offsets = [0, 0, 112], sizes = [2, 8, 16], strides = [1, 1, 1]} : vector<2x8x384xf32> to vector<2x8x16xf32>
    %163 = vector.extract_strided_slice %35 {offsets = [0, 0, 240], sizes = [2, 8, 16], strides = [1, 1, 1]} : vector<2x8x384xf32> to vector<2x8x16xf32>
    %164 = vector.extract_strided_slice %35 {offsets = [0, 0, 368], sizes = [2, 8, 16], strides = [1, 1, 1]} : vector<2x8x384xf32> to vector<2x8x16xf32>
    "tpu.trace_start"() <{level = 10 : i32, message = "bnd,bmd->bnm"}> : () -> ()
    %cst_69 = arith.constant dense<0.000000e+00> : vector<2x8x8xf32>
    %165 = tpu.matmul %162, %163, %cst_69 {dimension_numbers = #tpu.dot_dimension_numbers<[2], [2], [1], [1], [0, 0, 0, 1, 1, 1], [0], [0]>} : vector<2x8x16xf32>, vector<2x8x16xf32>, vector<2x8x8xf32> -> vector<2x8x8xf32>
    "tpu.trace_stop"() : () -> ()
    %cst_70 = arith.constant 2.500000e-01 : f32
    %166 = vector.broadcast %cst_70 : f32 to vector<2x8x8xf32>
    %167 = arith.mulf %165, %166 : vector<2x8x8xf32>
    %cst_71 = arith.constant dense<0xFF800000> : vector<2x8xf32>
    %168 = vector.multi_reduction <maximumf>, %167, %cst_71 [2] : vector<2x8x8xf32> to vector<2x8xf32>
    %169 = vector.shape_cast %168 : vector<2x8xf32> to vector<2x8x1xf32>
    %170 = vector.broadcast %169 : vector<2x8x1xf32> to vector<2x8x8xf32>
    %171 = arith.subf %167, %170 : vector<2x8x8xf32>
    %172 = math.exp %171 : vector<2x8x8xf32>
    %cst_72 = arith.constant dense<0.000000e+00> : vector<2x8xf32>
    %173 = vector.multi_reduction <add>, %172, %cst_72 [2] : vector<2x8x8xf32> to vector<2x8xf32>
    %174 = vector.shape_cast %173 : vector<2x8xf32> to vector<2x8x1xf32>
    %175 = tpu.reciprocal %174 {approx = true} : vector<2x8x1xf32> -> vector<2x8x1xf32>
    %176 = vector.broadcast %175 : vector<2x8x1xf32> to vector<2x8x8xf32>
    %177 = arith.mulf %172, %176 : vector<2x8x8xf32>
    "tpu.trace_start"() <{level = 10 : i32, message = "bnm,bmd->bnd"}> : () -> ()
    %cst_73 = arith.constant dense<0.000000e+00> : vector<2x8x16xf32>
    %178 = tpu.matmul %177, %164, %cst_73 {dimension_numbers = #tpu.dot_dimension_numbers<[2], [1], [1], [2], [0, 0, 0, 1, 1, 2], [0], [0]>} : vector<2x8x8xf32>, vector<2x8x16xf32>, vector<2x8x16xf32> -> vector<2x8x16xf32>
    "tpu.trace_stop"() : () -> ()
    %c0_74 = arith.constant 0 : index
    %c0_75 = arith.constant 0 : index
    %c112 = arith.constant 112 : index
    %179 = vector.load %arg19[%c0_74, %c0_75, %c112] : memref<2x8x128xf32, #tpu.memory_space<vmem>>, vector<2x8x16xf32>
    tpu.vector_store %arg19[%c0_74, %c0_75, %c112], %178 {strides = array<i32>} : memref<2x8x128xf32, #tpu.memory_space<vmem>>, vector<2x8x16xf32>,
    %c0_76 = arith.constant 0 : index
    %c0_77 = arith.constant 0 : index
    %c0_78 = arith.constant 0 : index
    %180 = vector.load %arg19[%c0_76, %c0_77, %c0_78] : memref<2x8x128xf32, #tpu.memory_space<vmem>>, vector<2x8x128xf32>
    %181 = vector.shape_cast %180 : vector<2x8x128xf32> to vector<16x128xf32>
    %c0_79 = arith.constant 0 : index
    %c0_80 = arith.constant 0 : index
    %c0_81 = arith.constant 0 : index
    %182 = vector.load %arg7[%c0_79, %c0_80, %c0_81] : memref<1x128x128xf32, #tpu.memory_space<vmem>>, vector<1x128x128xf32>
    %183 = vector.shape_cast %182 : vector<1x128x128xf32> to vector<128x128xf32>
    %cst_82 = arith.constant dense<0.000000e+00> : vector<16x128xf32>
    %184 = tpu.matmul %181, %183, %cst_82 {dimension_numbers = #tpu.dot_dimension_numbers<[1], [0], [0], [1], [0, 0, 1, 1], [], []>} : vector<16x128xf32>, vector<128x128xf32>, vector<16x128xf32> -> vector<16x128xf32>
    %c0_83 = arith.constant 0 : index
    %c0_84 = arith.constant 0 : index
    %c0_85 = arith.constant 0 : index
    %185 = vector.load %arg8[%c0_83, %c0_84, %c0_85] : memref<1x1x128xf32, #tpu.memory_space<vmem>>, vector<1x1x128xf32>
    %186 = vector.shape_cast %185 : vector<1x1x128xf32> to vector<1x128xf32>
    %187 = vector.broadcast %186 : vector<1x128xf32> to vector<16x128xf32>
    %188 = arith.addf %184, %187 : vector<16x128xf32>
    %189 = arith.addf %3, %188 : vector<16x128xf32>
    %c0_86 = arith.constant 0 : index
    %c0_87 = arith.constant 0 : index
    %c0_88 = arith.constant 0 : index
    %190 = vector.load %arg9[%c0_86, %c0_87, %c0_88] : memref<1x1x128xf32, #tpu.memory_space<vmem>>, vector<1x1x128xf32>
    %191 = vector.shape_cast %190 : vector<1x1x128xf32> to vector<1x128xf32>
    %c0_89 = arith.constant 0 : index
    %c0_90 = arith.constant 0 : index
    %c0_91 = arith.constant 0 : index
    %192 = vector.load %arg10[%c0_89, %c0_90, %c0_91] : memref<1x1x128xf32, #tpu.memory_space<vmem>>, vector<1x1x128xf32>
    %193 = vector.shape_cast %192 : vector<1x1x128xf32> to vector<1x128xf32>
    %cst_92 = arith.constant dense<0.000000e+00> : vector<16xf32>
    %194 = vector.multi_reduction <add>, %189, %cst_92 [1] : vector<16x128xf32> to vector<16xf32>
    %195 = vector.shape_cast %194 : vector<16xf32> to vector<16x1xf32>
    %cst_93 = arith.constant 1.280000e+02 : f32
    %196 = vector.broadcast %cst_93 : f32 to vector<16x1xf32>
    %197 = arith.divf %195, %196 : vector<16x1xf32>
    %198 = vector.broadcast %197 : vector<16x1xf32> to vector<16x128xf32>
    %199 = arith.subf %189, %198 : vector<16x128xf32>
    %200 = arith.mulf %199, %199 : vector<16x128xf32>
    %cst_94 = arith.constant dense<0.000000e+00> : vector<16xf32>
    %201 = vector.multi_reduction <add>, %200, %cst_94 [1] : vector<16x128xf32> to vector<16xf32>
    %202 = vector.shape_cast %201 : vector<16xf32> to vector<16x1xf32>
    %cst_95 = arith.constant 1.280000e+02 : f32
    %203 = vector.broadcast %cst_95 : f32 to vector<16x1xf32>
    %204 = arith.divf %202, %203 : vector<16x1xf32>
    %cst_96 = arith.constant 9.99999997E-7 : f32
    %205 = vector.broadcast %cst_96 : f32 to vector<16x1xf32>
    %206 = arith.addf %204, %205 : vector<16x1xf32>
    %207 = math.rsqrt %206 : vector<16x1xf32>
    %208 = vector.broadcast %207 : vector<16x1xf32> to vector<16x128xf32>
    %209 = arith.mulf %199, %208 : vector<16x128xf32>
    %210 = vector.broadcast %191 : vector<1x128xf32> to vector<16x128xf32>
    %211 = arith.mulf %209, %210 : vector<16x128xf32>
    %212 = vector.broadcast %193 : vector<1x128xf32> to vector<16x128xf32>
    %213 = arith.addf %211, %212 : vector<16x128xf32>
    %c0_97 = arith.constant 0 : index
    %c0_98 = arith.constant 0 : index
    %c0_99 = arith.constant 0 : index
    %214 = vector.load %arg11[%c0_97, %c0_98, %c0_99] : memref<1x128x256xf32, #tpu.memory_space<vmem>>, vector<1x128x256xf32>
    %215 = vector.shape_cast %214 : vector<1x128x256xf32> to vector<128x256xf32>
    %cst_100 = arith.constant dense<0.000000e+00> : vector<16x256xf32>
    %216 = tpu.matmul %213, %215, %cst_100 {dimension_numbers = #tpu.dot_dimension_numbers<[1], [0], [0], [1], [0, 0, 1, 1], [], []>} : vector<16x128xf32>, vector<128x256xf32>, vector<16x256xf32> -> vector<16x256xf32>
    %c0_101 = arith.constant 0 : index
    %c0_102 = arith.constant 0 : index
    %c0_103 = arith.constant 0 : index
    %217 = vector.load %arg12[%c0_101, %c0_102, %c0_103] : memref<1x1x256xf32, #tpu.memory_space<vmem>>, vector<1x1x256xf32>
    %218 = vector.shape_cast %217 : vector<1x1x256xf32> to vector<1x256xf32>
    %219 = vector.broadcast %218 : vector<1x256xf32> to vector<16x256xf32>
    %220 = arith.addf %216, %219 : vector<16x256xf32>
    %cst_104 = arith.constant 5.000000e-01 : f32
    %221 = vector.broadcast %cst_104 : f32 to vector<16x256xf32>
    %222 = arith.mulf %221, %220 : vector<16x256xf32>
    %cst_105 = arith.constant 0.707106769 : f32
    %223 = vector.broadcast %cst_105 : f32 to vector<16x256xf32>
    %224 = arith.mulf %220, %223 : vector<16x256xf32>
    %225 = math.erf %224 : vector<16x256xf32>
    %cst_106 = arith.constant 1.000000e+00 : f32
    %226 = vector.broadcast %cst_106 : f32 to vector<16x256xf32>
    %227 = arith.addf %226, %225 : vector<16x256xf32>
    %228 = arith.mulf %222, %227 : vector<16x256xf32>
    %c0_107 = arith.constant 0 : index
    %c0_108 = arith.constant 0 : index
    %c0_109 = arith.constant 0 : index
    %229 = vector.load %arg13[%c0_107, %c0_108, %c0_109] : memref<1x256x128xf32, #tpu.memory_space<vmem>>, vector<1x256x128xf32>
    %230 = vector.shape_cast %229 : vector<1x256x128xf32> to vector<256x128xf32>
    %cst_110 = arith.constant dense<0.000000e+00> : vector<16x128xf32>
    %231 = tpu.matmul %228, %230, %cst_110 {dimension_numbers = #tpu.dot_dimension_numbers<[1], [0], [0], [1], [0, 0, 1, 1], [], []>} : vector<16x256xf32>, vector<256x128xf32>, vector<16x128xf32> -> vector<16x128xf32>
    %c0_111 = arith.constant 0 : index
    %c0_112 = arith.constant 0 : index
    %c0_113 = arith.constant 0 : index
    %232 = vector.load %arg14[%c0_111, %c0_112, %c0_113] : memref<1x1x128xf32, #tpu.memory_space<vmem>>, vector<1x1x128xf32>
    %233 = vector.shape_cast %232 : vector<1x1x128xf32> to vector<1x128xf32>
    %234 = vector.broadcast %233 : vector<1x128xf32> to vector<16x128xf32>
    %235 = arith.addf %231, %234 : vector<16x128xf32>
    %236 = arith.addf %189, %235 : vector<16x128xf32>
    %c0_114 = arith.constant 0 : index
    %c0_115 = arith.constant 0 : index
    %237 = vector.load %arg18[%c0_114, %c0_115] : memref<16x128xf32, #tpu.memory_space<vmem>>, vector<16x128xf32>
    tpu.vector_store %arg18[%c0_114, %c0_115], %236 {strides = array<i32>} : memref<16x128xf32, #tpu.memory_space<vmem>>, vector<16x128xf32>,
    %c3_i32 = arith.constant 3 : i32
    %238 = arith.cmpi eq, %arg0, %c3_i32 : i32
    %239 = arith.extui %238 : i1 to i32
    %c0_i32_116 = arith.constant 0 : i32
    %240 = arith.cmpi ne, %239, %c0_i32_116 : i32
    scf.if %240 {
      %c0_117 = arith.constant 0 : index
      %c0_118 = arith.constant 0 : index
      %241 = vector.load %arg15[%c0_117, %c0_118] : memref<1x128xf32, #tpu.memory_space<vmem>>, vector<1x128xf32>
      %c0_119 = arith.constant 0 : index
      %c0_120 = arith.constant 0 : index
      %242 = vector.load %arg16[%c0_119, %c0_120] : memref<1x128xf32, #tpu.memory_space<vmem>>, vector<1x128xf32>
      %cst_121 = arith.constant dense<0.000000e+00> : vector<16xf32>
      %243 = vector.multi_reduction <add>, %236, %cst_121 [1] : vector<16x128xf32> to vector<16xf32>
      %244 = vector.shape_cast %243 : vector<16xf32> to vector<16x1xf32>
      %cst_122 = arith.constant 1.280000e+02 : f32
      %245 = vector.broadcast %cst_122 : f32 to vector<16x1xf32>
      %246 = arith.divf %244, %245 : vector<16x1xf32>
      %247 = vector.broadcast %246 : vector<16x1xf32> to vector<16x128xf32>
      %248 = arith.subf %236, %247 : vector<16x128xf32>
      %249 = arith.mulf %248, %248 : vector<16x128xf32>
      %cst_123 = arith.constant dense<0.000000e+00> : vector<16xf32>
      %250 = vector.multi_reduction <add>, %249, %cst_123 [1] : vector<16x128xf32> to vector<16xf32>
      %251 = vector.shape_cast %250 : vector<16xf32> to vector<16x1xf32>
      %cst_124 = arith.constant 1.280000e+02 : f32
      %252 = vector.broadcast %cst_124 : f32 to vector<16x1xf32>
      %253 = arith.divf %251, %252 : vector<16x1xf32>
      %cst_125 = arith.constant 9.99999997E-7 : f32
      %254 = vector.broadcast %cst_125 : f32 to vector<16x1xf32>
      %255 = arith.addf %253, %254 : vector<16x1xf32>
      %256 = math.rsqrt %255 : vector<16x1xf32>
      %257 = vector.broadcast %256 : vector<16x1xf32> to vector<16x128xf32>
      %258 = arith.mulf %248, %257 : vector<16x128xf32>
      %259 = vector.broadcast %241 : vector<1x128xf32> to vector<16x128xf32>
      %260 = arith.mulf %258, %259 : vector<16x128xf32>
      %261 = vector.broadcast %242 : vector<1x128xf32> to vector<16x128xf32>
      %262 = arith.addf %260, %261 : vector<16x128xf32>
      %263 = vector.shape_cast %262 : vector<16x128xf32> to vector<2x8x128xf32>
      %c0_126 = arith.constant 0 : index
      %c0_127 = arith.constant 0 : index
      %c0_128 = arith.constant 0 : index
      %264 = vector.load %arg17[%c0_126, %c0_127, %c0_128] : memref<2x8x128xf32, #tpu.memory_space<vmem>>, vector<2x8x128xf32>
      tpu.vector_store %arg17[%c0_126, %c0_127, %c0_128], %263 {strides = array<i32>} : memref<2x8x128xf32, #tpu.memory_space<vmem>>, vector<2x8x128xf32>,
    } else {
    }
    return
  }
  func.func @transform_0(%arg0: i32) -> (i32, i32, i32) {
    %c0_i32 = arith.constant 0 : i32
    %c0_i32_0 = arith.constant 0 : i32
    %c0_i32_1 = arith.constant 0 : i32
    %c0_i32_2 = arith.constant 0 : i32
    return %c0_i32, %c0_i32_0, %c0_i32_1 : i32, i32, i32
  }
  func.func @transform_1(%arg0: i32) -> (i32, i32, i32) {
    %c0_i32 = arith.constant 0 : i32
    %c0_i32_0 = arith.constant 0 : i32
    %c0_i32_1 = arith.constant 0 : i32
    %c0_i32_2 = arith.constant 0 : i32
    return %c0_i32, %c0_i32_0, %c0_i32_1 : i32, i32, i32
  }
  func.func @transform_2(%arg0: i32) -> (i32, i32, i32) {
    %c0_i32 = arith.constant 0 : i32
    %c0_i32_0 = arith.constant 0 : i32
    %c0_i32_1 = arith.constant 0 : i32
    return %arg0, %c0_i32, %c0_i32_0 : i32, i32, i32
  }
  func.func @transform_3(%arg0: i32) -> (i32, i32, i32) {
    %c0_i32 = arith.constant 0 : i32
    %c0_i32_0 = arith.constant 0 : i32
    %c0_i32_1 = arith.constant 0 : i32
    return %arg0, %c0_i32, %c0_i32_0 : i32, i32, i32
  }
  func.func @transform_4(%arg0: i32) -> (i32, i32, i32) {
    %c0_i32 = arith.constant 0 : i32
    %c0_i32_0 = arith.constant 0 : i32
    %c0_i32_1 = arith.constant 0 : i32
    return %arg0, %c0_i32, %c0_i32_0 : i32, i32, i32
  }
  func.func @transform_5(%arg0: i32) -> (i32, i32, i32) {
    %c0_i32 = arith.constant 0 : i32
    %c0_i32_0 = arith.constant 0 : i32
    %c0_i32_1 = arith.constant 0 : i32
    return %arg0, %c0_i32, %c0_i32_0 : i32, i32, i32
  }
  func.func @transform_6(%arg0: i32) -> (i32, i32, i32) {
    %c0_i32 = arith.constant 0 : i32
    %c0_i32_0 = arith.constant 0 : i32
    %c0_i32_1 = arith.constant 0 : i32
    return %arg0, %c0_i32, %c0_i32_0 : i32, i32, i32
  }
  func.func @transform_7(%arg0: i32) -> (i32, i32, i32) {
    %c0_i32 = arith.constant 0 : i32
    %c0_i32_0 = arith.constant 0 : i32
    %c0_i32_1 = arith.constant 0 : i32
    return %arg0, %c0_i32, %c0_i32_0 : i32, i32, i32
  }
  func.func @transform_8(%arg0: i32) -> (i32, i32, i32) {
    %c0_i32 = arith.constant 0 : i32
    %c0_i32_0 = arith.constant 0 : i32
    %c0_i32_1 = arith.constant 0 : i32
    return %arg0, %c0_i32, %c0_i32_0 : i32, i32, i32
  }
  func.func @transform_9(%arg0: i32) -> (i32, i32, i32) {
    %c0_i32 = arith.constant 0 : i32
    %c0_i32_0 = arith.constant 0 : i32
    %c0_i32_1 = arith.constant 0 : i32
    return %arg0, %c0_i32, %c0_i32_0 : i32, i32, i32
  }
  func.func @transform_10(%arg0: i32) -> (i32, i32, i32) {
    %c0_i32 = arith.constant 0 : i32
    %c0_i32_0 = arith.constant 0 : i32
    %c0_i32_1 = arith.constant 0 : i32
    return %arg0, %c0_i32, %c0_i32_0 : i32, i32, i32
  }
  func.func @transform_11(%arg0: i32) -> (i32, i32, i32) {
    %c0_i32 = arith.constant 0 : i32
    %c0_i32_0 = arith.constant 0 : i32
    %c0_i32_1 = arith.constant 0 : i32
    return %arg0, %c0_i32, %c0_i32_0 : i32, i32, i32
  }
  func.func @transform_12(%arg0: i32) -> (i32, i32, i32) {
    %c0_i32 = arith.constant 0 : i32
    %c0_i32_0 = arith.constant 0 : i32
    %c0_i32_1 = arith.constant 0 : i32
    return %arg0, %c0_i32, %c0_i32_0 : i32, i32, i32
  }
  func.func @transform_13(%arg0: i32) -> (i32, i32, i32) {
    %c0_i32 = arith.constant 0 : i32
    %c0_i32_0 = arith.constant 0 : i32
    %c0_i32_1 = arith.constant 0 : i32
    return %arg0, %c0_i32, %c0_i32_0 : i32, i32, i32
  }
  func.func @transform_14(%arg0: i32) -> (i32, i32) {
    %c0_i32 = arith.constant 0 : i32
    %c0_i32_0 = arith.constant 0 : i32
    %c0_i32_1 = arith.constant 0 : i32
    return %c0_i32, %c0_i32_0 : i32, i32
  }
  func.func @transform_15(%arg0: i32) -> (i32, i32) {
    %c0_i32 = arith.constant 0 : i32
    %c0_i32_0 = arith.constant 0 : i32
    %c0_i32_1 = arith.constant 0 : i32
    return %c0_i32, %c0_i32_0 : i32, i32
  }
  func.func @transform_16(%arg0: i32) -> (i32, i32, i32) {
    %c0_i32 = arith.constant 0 : i32
    %c0_i32_0 = arith.constant 0 : i32
    %c0_i32_1 = arith.constant 0 : i32
    %c0_i32_2 = arith.constant 0 : i32
    return %c0_i32, %c0_i32_0, %c0_i32_1 : i32, i32, i32
  }
}

</mosaic_0001>

<bundles_post_ra>
// kernel: temporal_features_forward.1
= control target key start
LH: loop header
LB: loop body
LE: loop exit
PB: predicated region body
PF: predicated region fallthrough
CT: control target
= control target key end

     0   :  { %s7023_s0 = inlined_call_operand.hbm [shape: f32[2,8,128], index: 0, kind: input, shape index: {}]   ;;  %s7024_s1 = inlined_call_operand.vmem [shape: f32[1,8,128], index: 1, kind: input, shape index: {}]   ;;  %s7025_s2 = inlined_call_operand.hbm [shape: f32[4,1,128], index: 2, kind: input, shape index: {}]   ;;  %s7026_s3 = inlined_call_operand.hbm [shape: f32[4,1,128], index: 3, kind: input, shape index: {}]   ;;  %s7027_s4 = inlined_call_operand.hbm [shape: f32[4,128,384], index: 4, kind: input, shape index: {}]   ;;  %s7028_s5 = inlined_call_operand.vmem [shape: f32[4,1,384], index: 5, kind: input, shape index: {}]   ;;  %s7029_s6 = inlined_call_operand.hbm [shape: f32[4,128,128], index: 6, kind: input, shape index: {}]   ;;  %s7030_s7 = inlined_call_operand.hbm [shape: f32[4,1,128], index: 7, kind: input, shape index: {}]   ;;  %s7031_s8 = inlined_call_operand.hbm [shape: f32[4,1,128], index: 8, kind: input, shape index: {}]   ;;  %s7032_s9 = inlined_call_operand.hbm [shape: f32[4,1,128], index: 9, kind: input, shape index: {}]   ;;  %s7033_s10 = inlined_call_operand.hbm [shape: f32[4,128,256], index: 10, kind: input, shape index: {}]   ;;  %s7034_s11 = inlined_call_operand.hbm [shape: f32[4,1,256], index: 11, kind: input, shape index: {}]   ;;  %s7035_s12 = inlined_call_operand.hbm [shape: f32[4,256,128], index: 12, kind: input, shape index: {}]   ;;  %s7036_s13 = inlined_call_operand.hbm [shape: f32[4,1,128], index: 13, kind: input, shape index: {}]   ;;  %s7037_s14 = inlined_call_operand.hbm [shape: f32[1,128], index: 14, kind: input, shape index: {}]   ;;  %s7038_s15 = inlined_call_operand.hbm [shape: f32[1,128], index: 15, kind: input, shape index: {}]   ;;  %s7039_s16 = inlined_call_operand.hbm [shape: f32[2,8,128], index: 16, kind: output, shape index: {}]  }
   0x1   :  { %7060 = sst [smem:[#allocation45_spill]] %s7023_s0 }
   0x2   :  { %7061 = sst [smem:[#allocation46_spill]] %s7024_s1 }
   0x3   :  { %7062 = sst [smem:[#allocation47_spill]] %s7025_s2 }
   0x4   :  { %7063 = sst [smem:[#allocation48_spill]] %s7027_s4 }
   0x5   :  { %7064 = sst [smem:[#allocation49_spill]] %s7028_s5 }
   0x6   :  { %7065 = sst [smem:[#allocation50_spill]] %s7030_s7 }
   0x7   :  { %7066 = sst [smem:[#allocation51_spill]] %s7037_s14 }
   0x8   :  { %7067 = sst [smem:[#allocation52_spill]] %s7039_s16 }
   0x9   :  { %21 = vsyncpa [#allocation5], 0 }
   0xa   :  { %22 = vsyncpa [#allocation8], 0 }
   0xb   :  { %24 = vsyncpa [#allocation8 + $0x1], 0 }
   0xc   :  { %25 = vsyncpa [#allocation11], 0 }
   0xd   :  { %27 = vsyncpa [#allocation11 + $0x1], 0 }
   0xe   :  { %28 = vsyncpa [#allocation14], 0 }
   0xf   :  { %30 = vsyncpa [#allocation14 + $0x1], 0 }
  0x10   :  { %31 = vsyncpa [#allocation17], 0 }
  0x11   :  { %33 = vsyncpa [#allocation17 + $0x1], 0 }
  0x12   :  { %34 = vsyncpa [#allocation20], 0 }
  0x13   :  { %36 = vsyncpa [#allocation20 + $0x1], 0 }
  0x14   :  { %37 = vsyncpa [#allocation23], 0 }
  0x15   :  { %39 = vsyncpa [#allocation23 + $0x1], 0 }
  0x16   :  { %40 = vsyncpa [#allocation26], 0 }
  0x17   :  { %41 = vsyncpa [#allocation6], 0  ;;  %s5978_s21 = smov 0   ;;  %s5980_s22 = smov 0  }
  0x18   :  { %s5982_s23 = smov 0   ;;  %s5984_s24 = smov 0  }
  0x19 LB: > { %7068 = sst [smem:[#allocation38_spill]] %s5851_s22  ;;  %s5997_s25 = sadd.s32 4294967295, %s5859_s24   ;;  %s5859_s24 = sphi %s5984_s24, %s7113_s24   ;;  %s5855_s23 = sphi %s5982_s23, %s7116_s23   ;;  %s5851_s22 = sphi %s5980_s22, %s7115_s22   ;;  %s5847_s21 = sphi %s5978_s21, %s7114_s21  }
  0x1a   : > { %7069 = sst [smem:[#allocation39_spill]] %s5855_s23  ;;  %s6000_s26 = sadd.s32 1, %s5859_s24  }
  0x1b   : > { %7070 = sst [smem:[#allocation40_spill]] %s5997_s25  ;;  %s93_s27 = ssub.s32 %s5859_s24, %s6000_s26 }
  0x1c   : > { %7071 = sst [smem:[#allocation41_spill]] %s6000_s26  ;;  %s96_s28 = sadd.s32 1, %s5855_s23 }
  0x1d   : > { %p94_p0 = scmp.eq.s32.totalorder %s93_s27, 0  ;;  %p103_p1 = scmp.ne.s32.totalorder %s5855_s23, %s5851_s22 }
  0x1e   : > { %p104_p2 = scmp.eq.s32.totalorder %s5859_s24, 0  ;;  %p109_p3 = scmp.ne.s32.totalorder %s5851_s22, %s5847_s21 }
  0x1f   : > { %s6010_s29 = scalar_select %p94_p0, %s5855_s23, %s96_s28  }
  0x20   : > { %p6012_p4 = por %p104_p2, %p103_p1  ;;  %p7040_p5 = scmp.eq.s32.totalorder %s5997_s25, 0 }
  0x21   : > { %7072 = sst [smem:[#allocation42_spill]] %s6010_s29  ;;  %p4679_p6 = scmp.ge.s32.totalorder %s5859_s24, 1 }
  0x22   : > { %p469_p7 = scmp.lt.s32.totalorder %s5859_s24, 5  ;;  %p6021_p8 = por %p7040_p5, %p109_p3 }
  0x23   : > { %s5861_s18 = smov [#allocation24]   ;;  %p5234_p12 = scmp.lt.s32.totalorder %s5859_s24, 4 }
  0x24   : > { %s7074_s0 = scalar_select %p6021_p8, 1, 0 }
  0x25   : > { %p6026_p10 = pnand %p4679_p6, %p469_p7  ;;  %s498_s19 = sshll.u32 %s5861_s18, 4  ;;  %s499_s19 = int_to_ptr.vmem [resolvable:$true] %s498_s19 }
  0x26   : > { %7075 = sst [smem:[#allocation43_spill]] %s7074_s0  ;;  %s6034_s20 = sand.u32 1, %s5855_s23  }
  0x27   : > { %s7076_s17 = scalar_select %p6026_p10, 1, 0 }
  0x28   : > { %p5187_p11 = pneg %p6026_p10  ;;  %s6043_s27 = sand.u32 1, %s5859_s24  }
  0x29   : > { %7077 = sst [smem:[#allocation44_spill]] %s7076_s17  ;;  %p6047_p0 = pnand %p5234_p12, %p6012_p4 }
  0x2a   : > { %p6038_p13 = pnand %p5187_p11, %p7040_p5  ;;  %s5390_s18 = scalar_lea.vmem %s499_s19, 16 }
  0x2b   : > { %p5391_p2 = scmp.ne.s32.totalorder %s499_s19, %s5390_s18  ;;  %s5397_s29 = scalar_lea.vmem %s499_s19, 32 }
  0x2c   : > { %s7078_s21 = scalar_select %p6038_p13, 1, 0 }
  0x2d   : > { %p7047_p1 = pneg %p6038_p13  ;;  %p5398_p7 = scmp.lt.s32.totalorder %s499_s19, %s499_s19 }
  0x2e   : > { %p5399_p11 = scmp.lt.s32.totalorder %s5397_s29, %s5390_s18 }
  0x2f   : > { %p5393_p3 = pnand %p5391_p2, %p7047_p1 }
  0x30   : > { %p5400_p9 = por %p5399_p11, %p5398_p7 }
  0x31   : > { %p5394_p6 = pneg %p5393_p3 }
  0x33   : > { %p5401_p5 = pnand %p5400_p9, %p5394_p6 }
  0x35   : > { %5404 = shalt.err (!%p5401_p5)
}
  0x36   : > { %s7080_s14 = sld [smem:[#allocation51_spill]]  ;;  %s6062_s26 = sshll.u32 %s5859_s24, 4 }
  0x37   : > { %s7081_s2 = sld [smem:[#allocation47_spill]]  ;;  %s523_s18 = scalar_lea.vmem [#allocation7], %s6034_s20 }
  0x38   : > { %s530_s5 = sshll.u32 %s523_s18, 4  ;;  %p6076_p5 = pneg %p6047_p0  ;;  %s531_s5 = int_to_ptr.vmem [resolvable:$true] %s530_s5 }
  0x3c   : > { %5193 = dma.hbm_to_vmem [thread:$0]  (!%p6038_p13), %s7080_s14, 16, %s499_s19, [#allocation23]  }
  0x3d   : > { %s6068_s29 = scalar_lea.hbm %s7081_s2, %s6062_s26  ;;  %s5410_s14 = scalar_lea.hbm %s7081_s2, 64 }
  0x3e   : > { %s5405_s30 = scalar_lea.hbm %s6068_s29, 16  ;;  %p5411_p2 = scmp.lt.s32.totalorder %s6068_s29, %s7081_s2 }
  0x3f   : > { %p5406_p4 = scmp.ne.s32.totalorder %s6068_s29, %s5405_s30  ;;  %p5412_p3 = scmp.lt.s32.totalorder %s5410_s14, %s5405_s30 }
  0x41   : > { %p5408_p9 = pnand %p6076_p5, %p5406_p4  ;;  %p5413_p6 = por %p5412_p3, %p5411_p2 }
  0x43   : > { %p5409_p12 = pneg %p5408_p9 }
  0x45   : > { %p5414_p7 = pnand %p5413_p6, %p5409_p12 }
  0x47   : > { %5417 = shalt.err (!%p5414_p7)
}
  0x48   : > { %s5418_s18 = scalar_lea.vmem %s531_s5, 16  ;;  %s5862_s23 = smov [#allocation7]  }
  0x49   : > { %p5419_p11 = scmp.ne.s32.totalorder %s531_s5, %s5418_s18  ;;  %s5423_s25 = sshll.u32 %s5862_s23, 4  ;;  %s5424_s25 = int_to_ptr.vmem [resolvable:$false] %s5423_s25 }
  0x4a   : > { %s5425_s17 = scalar_lea.vmem %s5424_s25, 32  ;;  %p5426_p4 = scmp.lt.s32.totalorder %s531_s5, %s5424_s25 }
  0x4b   : > { %p5421_p1 = pnand %p5419_p11, %p6076_p5  ;;  %p5427_p9 = scmp.lt.s32.totalorder %s5425_s17, %s5418_s18 }
  0x4d   : > { %p5422_p8 = pneg %p5421_p1  ;;  %p5428_p10 = por %p5427_p9, %p5426_p4 }
  0x4f   : > { %p5429_p13 = pnand %p5428_p10, %p5422_p8 }
  0x51   : > { %5432 = shalt.err (!%p5429_p13)
}
  0x52   : > { %s7083_s14 = scalar_lea.sflag [#allocation8], %s6043_s27  ;;  %s5145_s22 = smul.u32 384, %s6034_s20 }
  0x53   : > { %5200 = dma.hbm_to_vmem [thread:$0]  (!%p6047_p0), %s6068_s29, 16, %s531_s5, %s7083_s14  }
  0x54   : > { %s5146_s0 = smul.u32 6144, %s5859_s24  ;;  %s7084_s4 = sld [smem:[#allocation48_spill]] }
  0x55   : > { %s558_s17 = scalar_lea.vmem [#allocation10], %s5145_s22  ;;  %s7057_s16 = scalar_lea.sflag [#allocation11], %s6043_s27 }
  0x56   : > { %s565_s1 = sshll.u32 %s558_s17, 4  ;;  %s6103_s1 = int_to_ptr.vmem [resolvable:$true] %s565_s1 }
  0x5a   : > { %s6101_s25 = scalar_lea.hbm %s7084_s4, %s5146_s0  ;;  %s5438_s14 = scalar_lea.hbm %s7084_s4, 24576 }
  0x5b   : > { %s5433_s18 = scalar_lea.hbm %s6101_s25, 6144  ;;  %p5439_p1 = scmp.lt.s32.totalorder %s6101_s25, %s7084_s4 }
  0x5c   : > { %p5434_p8 = scmp.ne.s32.totalorder %s6101_s25, %s5433_s18  ;;  %p5440_p12 = scmp.lt.s32.totalorder %s5438_s14, %s5433_s18 }
  0x5e   : > { %p5436_p10 = pnand %p5434_p8, %p6076_p5  ;;  %p5441_p2 = por %p5440_p12, %p5439_p1 }
  0x60   : > { %p5437_p13 = pneg %p5436_p10 }
  0x62   : > { %p5442_p3 = pnand %p5441_p2, %p5437_p13 }
  0x64   : > { %5445 = shalt.err (!%p5442_p3)
}
  0x65   : > { %s5446_s22 = scalar_lea.vmem %s6103_s1, 6144  ;;  %s5863_s30 = smov [#allocation10]  }
  0x66   : > { %p5447_p6 = scmp.ne.s32.totalorder %s6103_s1, %s5446_s22  ;;  %s5451_s17 = sshll.u32 %s5863_s30, 4  ;;  %s5452_s17 = int_to_ptr.vmem [resolvable:$false] %s5451_s17 }
  0x67   : > { %s5453_s5 = scalar_lea.vmem %s5452_s17, 12288  ;;  %p5454_p4 = scmp.lt.s32.totalorder %s6103_s1, %s5452_s17 }
  0x68   : > { %p5449_p7 = pnand %p5447_p6, %p6076_p5  ;;  %p5455_p9 = scmp.lt.s32.totalorder %s5453_s5, %s5446_s22 }
  0x6a   : > { %p5450_p11 = pneg %p5449_p7  ;;  %p5456_p8 = por %p5455_p9, %p5454_p4 }
  0x6c   : > { %p5457_p10 = pnand %p5456_p8, %p5450_p11 }
  0x6e   : > { %5460 = shalt.err (!%p5457_p10)
}
  0x6f   : > { %s5864_s18 = smov 384   ;;  %s5865_s29 = smov 24  }
  0x70   : > { %5206 = dma.hbm_to_vmem [thread:$0]  (!%p6047_p0), %s6101_s25, 6144, %s6103_s1, %s7057_s16, %s5864_s18, %s5864_s18, %s5865_s29  }
  0x71   : > { %s7085_s7 = sld [smem:[#allocation50_spill]]  ;;  %s606_s22 = scalar_lea.vmem [#allocation13], %s6034_s20 }
  0x72   : > { %s613_s30 = sshll.u32 %s606_s22, 4  ;;  %s7056_s17 = scalar_lea.sflag [#allocation14], %s6043_s27  ;;  %s614_s30 = int_to_ptr.vmem [resolvable:$true] %s613_s30 }
  0x77   : > { %s6132_s0 = scalar_lea.hbm %s7085_s7, %s6062_s26  ;;  %s5466_s25 = scalar_lea.hbm %s7085_s7, 64 }
  0x78   : > { %s5461_s5 = scalar_lea.hbm %s6132_s0, 16  ;;  %p5467_p2 = scmp.lt.s32.totalorder %s6132_s0, %s7085_s7 }
  0x79   : > { %p5462_p13 = scmp.ne.s32.totalorder %s6132_s0, %s5461_s5  ;;  %p5468_p3 = scmp.lt.s32.totalorder %s5466_s25, %s5461_s5 }
  0x7b   : > { %p5464_p1 = pnand %p5462_p13, %p6076_p5  ;;  %p5469_p6 = por %p5468_p3, %p5467_p2 }
  0x7d   : > { %p5465_p12 = pneg %p5464_p1 }
  0x7f   : > { %p5470_p7 = pnand %p5469_p6, %p5465_p12 }
  0x81   : > { %5473 = shalt.err (!%p5470_p7)
}
  0x82   : > { %s5474_s29 = scalar_lea.vmem %s614_s30, 16  ;;  %s5866_s14 = smov [#allocation13]  }
  0x83   : > { %p5475_p11 = scmp.ne.s32.totalorder %s614_s30, %s5474_s29  ;;  %s5479_s23 = sshll.u32 %s5866_s14, 4  ;;  %s5480_s23 = int_to_ptr.vmem [resolvable:$false] %s5479_s23 }
  0x84   : > { %s5481_s22 = scalar_lea.vmem %s5480_s23, 32  ;;  %p5482_p8 = scmp.lt.s32.totalorder %s614_s30, %s5480_s23 }
  0x85   : > { %p5477_p4 = pnand %p5475_p11, %p6076_p5  ;;  %p5483_p10 = scmp.lt.s32.totalorder %s5481_s22, %s5474_s29 }
  0x87   : > { %p5478_p9 = pneg %p5477_p4  ;;  %p5484_p13 = por %p5483_p10, %p5482_p8 }
  0x89   : > { %p5485_p1 = pnand %p5484_p13, %p5478_p9 }
  0x8b   : > { %5488 = shalt.err (!%p5485_p1)
}
  0x8c   : > { %5212 = dma.hbm_to_vmem [thread:$0]  (!%p6047_p0), %s6132_s0, 16, %s614_s30, %s7056_s17  }
  0x8d   : > { %s6158_s5 = scalar_lea.hbm %s7032_s9, %s6062_s26  ;;  %s640_s25 = scalar_lea.vmem [#allocation16], %s6034_s20 }
  0x8e   : > { %s647_s1 = sshll.u32 %s640_s25, 4  ;;  %s4696_s18 = sshll.u32 %s6034_s20, 1  ;;  %s648_s1 = int_to_ptr.vmem [resolvable:$true] %s647_s1 }
  0x8f   : > { %s7059_s29 = scalar_lea.sflag [#allocation17], %s6043_s27  ;;  %s5489_s14 = scalar_lea.hbm %s6158_s5, 16 }
  0x90   : > { %p5490_p12 = scmp.ne.s32.totalorder %s6158_s5, %s5489_s14  ;;  %s5494_s30 = scalar_lea.hbm %s7032_s9, 64 }
  0x91   : > { %p5495_p6 = scmp.lt.s32.totalorder %s6158_s5, %s7032_s9  ;;  %p5496_p7 = scmp.lt.s32.totalorder %s5494_s30, %s5489_s14 }
  0x92   : > { %p5492_p2 = pnand %p5490_p12, %p6076_p5 }
  0x93   : > { %p5497_p11 = por %p5496_p7, %p5495_p6 }
  0x94   : > { %p5493_p3 = pneg %p5492_p2 }
  0x96   : > { %p5498_p4 = pnand %p5497_p11, %p5493_p3 }
  0x98   : > { %5501 = shalt.err (!%p5498_p4)
}
  0x99   : > { %s5502_s4 = scalar_lea.vmem %s648_s1, 16  ;;  %s5867_s25 = smov [#allocation16]  }
  0x9a   : > { %p5503_p9 = scmp.ne.s32.totalorder %s648_s1, %s5502_s4  ;;  %s5507_s17 = sshll.u32 %s5867_s25, 4  ;;  %s5508_s17 = int_to_ptr.vmem [resolvable:$false] %s5507_s17 }
  0x9b   : > { %s5509_s16 = scalar_lea.vmem %s5508_s17, 32  ;;  %p5510_p13 = scmp.lt.s32.totalorder %s648_s1, %s5508_s17 }
  0x9c   : > { %p5505_p8 = pnand %p5503_p9, %p6076_p5  ;;  %p5511_p1 = scmp.lt.s32.totalorder %s5509_s16, %s5502_s4 }
  0x9e   : > { %p5506_p10 = pneg %p5505_p8  ;;  %p5512_p12 = por %p5511_p1, %p5510_p13 }
  0xa0   : > { %p5513_p2 = pnand %p5512_p12, %p5506_p10 }
  0xa2   : > { %5516 = shalt.err (!%p5513_p2)
}
  0xa3   : > { %5218 = dma.hbm_to_vmem [thread:$0]  (!%p6047_p0), %s6158_s5, 16, %s648_s1, %s7059_s29  }
  0xa4   : > { %s4775_s14 = sshll.u32 %s5859_s24, 5  ;;  %s679_s16 = scalar_lea.vmem [#allocation19], %s4696_s18 }
  0xa5   : > { %s6185_s30 = scalar_lea.hbm %s7034_s11, %s4775_s14  ;;  %s687_s17 = sshll.u32 %s679_s16, 4  ;;  %s688_s17 = int_to_ptr.vmem [resolvable:$true] %s687_s17 }
  0xa6   : > { %s7058_s22 = scalar_lea.sflag [#allocation20], %s6043_s27  ;;  %s5517_s2 = scalar_lea.hbm %s6185_s30, 32 }
  0xa7   : > { %p5518_p3 = scmp.ne.s32.totalorder %s6185_s30, %s5517_s2  ;;  %s5522_s1 = scalar_lea.hbm %s7034_s11, 128 }
  0xa8   : > { %p5523_p11 = scmp.lt.s32.totalorder %s6185_s30, %s7034_s11  ;;  %p5524_p4 = scmp.lt.s32.totalorder %s5522_s1, %s5517_s2 }
  0xa9   : > { %p5520_p6 = pnand %p5518_p3, %p6076_p5 }
  0xaa   : > { %p5525_p9 = por %p5524_p4, %p5523_p11 }
  0xab   : > { %p5521_p7 = pneg %p5520_p6 }
  0xad   : > { %p5526_p8 = pnand %p5525_p9, %p5521_p7 }
  0xaf   : > { %5529 = shalt.err (!%p5526_p8)
}
  0xb0   : > { %s5530_s18 = scalar_lea.vmem %s688_s17, 32  ;;  %s5868_s14 = smov [#allocation19]  }
  0xb1   : > { %p5531_p10 = scmp.ne.s32.totalorder %s688_s17, %s5530_s18  ;;  %s5535_s0 = sshll.u32 %s5868_s14, 4  ;;  %s5536_s0 = int_to_ptr.vmem [resolvable:$false] %s5535_s0 }
  0xb2   : > { %s5537_s16 = scalar_lea.vmem %s5536_s0, 64  ;;  %p5538_p12 = scmp.lt.s32.totalorder %s688_s17, %s5536_s0 }
  0xb3   : > { %p5533_p13 = pnand %p5531_p10, %p6076_p5  ;;  %p5539_p2 = scmp.lt.s32.totalorder %s5537_s16, %s5530_s18 }
  0xb5   : > { %p5534_p1 = pneg %p5533_p13  ;;  %p5540_p3 = por %p5539_p2, %p5538_p12 }
  0xb7   : > { %p5541_p6 = pnand %p5540_p3, %p5534_p1 }
  0xb9   : > { %5544 = shalt.err (!%p5541_p6)
}
  0xba   : > { %5224 = dma.hbm_to_vmem [thread:$0]  (!%p6047_p0), %s6185_s30, 32, %s688_s17, %s7058_s22  }
  0xbb   : > { %s5869_s2 = smov [#allocation4]   ;;  %p7086_p11 = scmp.ne.s32.totalorder %s7078_s21, 0 }
  0xbc   : > { %s481_s4 = sshll.u32 %s5869_s2, 4  ;;  %s482_s4 = int_to_ptr.vmem [resolvable:$true] %s481_s4 }
  0xbd   : > { %s5556_s5 = scalar_lea.vmem %s482_s4, 256  ;;  %p7087_p4 = pneg %p7086_p11 }
  0xbe   : > { %p5557_p7 = scmp.ne.s32.totalorder %s482_s4, %s5556_s5  ;;  %p5564_p10 = scmp.lt.s32.totalorder %s482_s4, %s482_s4 }
  0xbf   : > { %p5565_p13 = scmp.lt.s32.totalorder %s5556_s5, %s5556_s5 }
  0xc0   : > { %p5559_p9 = pnand %p5557_p7, %p7087_p4 }
  0xc1   : > { %p5566_p1 = por %p5565_p13, %p5564_p10 }
  0xc2   : > { %p5560_p8 = pneg %p5559_p9 }
  0xc4   : > { %p5567_p12 = pnand %p5566_p1, %p5560_p8 }
  0xc6   : > { %5570 = shalt.err (!%p5567_p12)
}
  0xc7   : > { %s5870_s1 = smov 128   ;;  %s5871_s30 = smov 8  }
  0xc8   : > { %s7088_s23 = sld [smem:[#allocation45_spill]]  ;;  %s5872_s18 = smov [#allocation25]  }
  0xc9   : > { %s509_s14 = sshll.u32 %s5872_s18, 4  ;;  %s6221_s2 = scalar_lea.hbm %s7026_s3, %s6062_s26  ;;  %s510_s14 = int_to_ptr.vmem [resolvable:$true] %s509_s14 }
  0xca   : > { %s540_s5 = scalar_lea.vmem [#allocation9], %s6034_s20  ;;  %s5582_s29 = scalar_lea.vmem %s510_s14, 16 }
  0xcb   : > { %s547_s22 = sshll.u32 %s540_s5, 4  ;;  %p5583_p2 = scmp.ne.s32.totalorder %s510_s14, %s5582_s29  ;;  %s548_s22 = int_to_ptr.vmem [resolvable:$true] %s547_s22 }
  0xcc   : > { %p7089_p3 = pmov %p7087_p4  ;;  %s5589_s7 = scalar_lea.vmem %s510_s14, 32 }
  0xcd   : > { %p5590_p4 = scmp.lt.s32.totalorder %s510_s14, %s510_s14  ;;  %p5591_p9 = scmp.lt.s32.totalorder %s5589_s7, %s5582_s29 }
  0xce   : > { %5190 = dma.hbm_to_vmem [thread:$0]  (!%p7086_p11), %s7088_s23, 256, %s482_s4, [#allocation5], %s5870_s1, %s5870_s1, %s5871_s30  }
  0xcf   : > { %p5585_p6 = pnand %p5583_p2, %p7089_p3  ;;  %p5592_p8 = por %p5591_p9, %p5590_p4 }
  0xd1   : > { %p5586_p7 = pneg %p5585_p6 }
  0xd3   : > { %p5593_p10 = pnand %p5592_p8, %p5586_p7 }
  0xd5   : > { %5596 = shalt.err (!%p5593_p10)
}
  0xd6   : > { %5196 = dma.hbm_to_vmem [thread:$0]  (!%p7086_p11), %s7038_s15, 16, %s510_s14, [#allocation26]  }
  0xd7   : > { %s4687_s25 = sshll.u32 %s6034_s20, 7  ;;  %s5597_s23 = scalar_lea.hbm %s6221_s2, 16 }
  0xd8   : > { %p5598_p13 = scmp.ne.s32.totalorder %s6221_s2, %s5597_s23  ;;  %s5602_s21 = scalar_lea.hbm %s7026_s3, 64 }
  0xd9   : > { %p5603_p2 = scmp.lt.s32.totalorder %s6221_s2, %s7026_s3  ;;  %p5604_p3 = scmp.lt.s32.totalorder %s5602_s21, %s5597_s23 }
  0xda   : > { %p5600_p1 = pnand %p5598_p13, %p6076_p5 }
  0xdb   : > { %p5605_p6 = por %p5604_p3, %p5603_p2 }
  0xdc   : > { %p5601_p12 = pneg %p5600_p1 }
  0xde   : > { %p5606_p7 = pnand %p5605_p6, %p5601_p12 }
  0xe0   : > { %5609 = shalt.err (!%p5606_p7)
}
  0xe1   : > { %s5610_s14 = scalar_lea.vmem %s548_s22, 16  ;;  %s5873_s16 = smov [#allocation9]  }
  0xe2   : > { %p5611_p11 = scmp.ne.s32.totalorder %s548_s22, %s5610_s14  ;;  %s5615_s5 = sshll.u32 %s5873_s16, 4  ;;  %s5616_s5 = int_to_ptr.vmem [resolvable:$false] %s5615_s5 }
  0xe3   : > { %s5617_s4 = scalar_lea.vmem %s5616_s5, 32  ;;  %p5618_p8 = scmp.lt.s32.totalorder %s548_s22, %s5616_s5 }
  0xe4   : > { %p5613_p4 = pnand %p5611_p11, %p6076_p5  ;;  %p5619_p10 = scmp.lt.s32.totalorder %s5617_s4, %s5610_s14 }
  0xe6   : > { %p5614_p9 = pneg %p5613_p4  ;;  %p5620_p13 = por %p5619_p10, %p5618_p8 }
  0xe8   : > { %p5621_p1 = pnand %p5620_p13, %p5614_p9 }
  0xea   : > { %5624 = shalt.err (!%p5621_p1)
}
  0xeb   : > { %s7090_s17 = scalar_lea.sflag [#allocation8], %s6043_s27  ;;  %s4773_s23 = sshll.u32 %s5859_s24, 11 }
  0xec   : > { %5203 = dma.hbm_to_vmem [thread:$0]  (!%p6047_p0), %s6221_s2, 16, %s548_s22, %s7090_s17  }
  0xed   : > { %s6255_s21 = scalar_lea.hbm %s7029_s6, %s4773_s23  ;;  %s586_s18 = scalar_lea.vmem [#allocation12], %s4687_s25 }
  0xee   : > { %s593_s0 = sshll.u32 %s586_s18, 4  ;;  %s5625_s14 = scalar_lea.hbm %s6255_s21, 2048  ;;  %s594_s0 = int_to_ptr.vmem [resolvable:$true] %s593_s0 }
  0xef   : > { %p5626_p12 = scmp.ne.s32.totalorder %s6255_s21, %s5625_s14  ;;  %s5630_s22 = scalar_lea.hbm %s7029_s6, 8192 }
  0xf0   : > { %p5631_p6 = scmp.lt.s32.totalorder %s6255_s21, %s7029_s6  ;;  %p5632_p7 = scmp.lt.s32.totalorder %s5630_s22, %s5625_s14 }
  0xf1   : > { %p5628_p2 = pnand %p5626_p12, %p6076_p5 }
  0xf2   : > { %p5633_p11 = por %p5632_p7, %p5631_p6 }
  0xf3   : > { %p5629_p3 = pneg %p5628_p2 }
  0xf5   : > { %p5634_p4 = pnand %p5633_p11, %p5629_p3 }
  0xf7   : > { %5637 = shalt.err (!%p5634_p4)
}
  0xf8   : > { %s5638_s25 = scalar_lea.vmem %s594_s0, 2048  ;;  %s5874_s17 = smov [#allocation12]  }
  0xf9   : > { %p5639_p9 = scmp.ne.s32.totalorder %s594_s0, %s5638_s25  ;;  %s5643_s23 = sshll.u32 %s5874_s17, 4  ;;  %s5644_s23 = int_to_ptr.vmem [resolvable:$false] %s5643_s23 }
  0xfa   : > { %s5645_s7 = scalar_lea.vmem %s5644_s23, 4096  ;;  %p5646_p13 = scmp.lt.s32.totalorder %s594_s0, %s5644_s23 }
  0xfb   : > { %p5641_p8 = pnand %p5639_p9, %p6076_p5  ;;  %p5647_p1 = scmp.lt.s32.totalorder %s5645_s7, %s5638_s25 }
  0xfd   : > { %p5642_p10 = pneg %p5641_p8  ;;  %p5648_p12 = por %p5647_p1, %p5646_p13 }
  0xff   : > { %p5649_p2 = pnand %p5648_p12, %p5642_p10 }
 0x101   : > { %5652 = shalt.err (!%p5649_p2)
}
 0x102   : > { %s7091_s29 = scalar_lea.sflag [#allocation11], %s6043_s27  ;;  %s6282_s16 = scalar_lea.hbm %s7031_s8, %s6062_s26 }
 0x103   : > { %5209 = dma.hbm_to_vmem [thread:$0]  (!%p6047_p0), %s6255_s21, 2048, %s594_s0, %s7091_s29, %s5870_s1, %s5870_s1, %s5871_s30  }
 0x104   : > { %s623_s5 = scalar_lea.vmem [#allocation15], %s6034_s20  ;;  %s4693_s2 = sshll.u32 %s6034_s20, 8 }
 0x105   : > { %s630_s22 = sshll.u32 %s623_s5, 4  ;;  %s5653_s4 = scalar_lea.hbm %s6282_s16, 16  ;;  %s631_s22 = int_to_ptr.vmem [resolvable:$true] %s630_s22 }
 0x106   : > { %p5654_p3 = scmp.ne.s32.totalorder %s6282_s16, %s5653_s4  ;;  %s5658_s21 = scalar_lea.hbm %s7031_s8, 64 }
 0x107   : > { %p5659_p11 = scmp.lt.s32.totalorder %s6282_s16, %s7031_s8  ;;  %p5660_p4 = scmp.lt.s32.totalorder %s5658_s21, %s5653_s4 }
 0x108   : > { %p5656_p6 = pnand %p5654_p3, %p6076_p5 }
 0x109   : > { %p5661_p9 = por %p5660_p4, %p5659_p11 }
 0x10a   : > { %p5657_p7 = pneg %p5656_p6 }
 0x10c   : > { %p5662_p8 = pnand %p5661_p9, %p5657_p7 }
 0x10e   : > { %5665 = shalt.err (!%p5662_p8)
}
 0x10f   : > { %s5666_s7 = scalar_lea.vmem %s631_s22, 16  ;;  %s5875_s29 = smov [#allocation15]  }
 0x110   : > { %p5667_p10 = scmp.ne.s32.totalorder %s631_s22, %s5666_s7  ;;  %s5671_s18 = sshll.u32 %s5875_s29, 4  ;;  %s5672_s18 = int_to_ptr.vmem [resolvable:$false] %s5671_s18 }
 0x111   : > { %s5673_s14 = scalar_lea.vmem %s5672_s18, 32  ;;  %p5674_p12 = scmp.lt.s32.totalorder %s631_s22, %s5672_s18 }
 0x112   : > { %p5669_p13 = pnand %p5667_p10, %p6076_p5  ;;  %p5675_p2 = scmp.lt.s32.totalorder %s5673_s14, %s5666_s7 }
 0x114   : > { %p5670_p1 = pneg %p5669_p13  ;;  %p5676_p3 = por %p5675_p2, %p5674_p12 }
 0x116   : > { %p5677_p6 = pnand %p5676_p3, %p5670_p1 }
 0x118   : > { %5680 = shalt.err (!%p5677_p6)
}
 0x119   : > { %s7092_s5 = scalar_lea.sflag [#allocation14], %s6043_s27  ;;  %s4774_s4 = sshll.u32 %s5859_s24, 12 }
 0x11a   : > { %5215 = dma.hbm_to_vmem [thread:$0]  (!%p6047_p0), %s6282_s16, 16, %s631_s22, %s7092_s5  }
 0x11b   : > { %s6310_s21 = scalar_lea.hbm %s7033_s10, %s4774_s4  ;;  %s658_s0 = scalar_lea.vmem [#allocation18], %s4693_s2 }
 0x11c   : > { %s665_s23 = sshll.u32 %s658_s0, 4  ;;  %s5681_s7 = scalar_lea.hbm %s6310_s21, 4096  ;;  %s6314_s23 = int_to_ptr.vmem [resolvable:$true] %s665_s23 }
 0x11d   : > { %p5682_p7 = scmp.ne.s32.totalorder %s6310_s21, %s5681_s7  ;;  %s5686_s29 = scalar_lea.hbm %s7033_s10, 16384 }
 0x11e   : > { %p5687_p9 = scmp.lt.s32.totalorder %s6310_s21, %s7033_s10  ;;  %p5688_p8 = scmp.lt.s32.totalorder %s5686_s29, %s5681_s7 }
 0x11f   : > { %p5684_p11 = pnand %p5682_p7, %p6076_p5 }
 0x120   : > { %p5689_p10 = por %p5688_p8, %p5687_p9 }
 0x121   : > { %p5685_p4 = pneg %p5684_p11 }
 0x123   : > { %p5690_p13 = pnand %p5689_p10, %p5685_p4 }
 0x125   : > { %5693 = shalt.err (!%p5690_p13)
}
 0x126   : > { %s5694_s5 = scalar_lea.vmem %s6314_s23, 4096  ;;  %s5876_s25 = smov [#allocation18]  }
 0x127   : > { %p5695_p1 = scmp.ne.s32.totalorder %s6314_s23, %s5694_s5  ;;  %s5699_s17 = sshll.u32 %s5876_s25, 4  ;;  %s5700_s17 = int_to_ptr.vmem [resolvable:$false] %s5699_s17 }
 0x128   : > { %s5701_s0 = scalar_lea.vmem %s5700_s17, 8192  ;;  %p5702_p3 = scmp.lt.s32.totalorder %s6314_s23, %s5700_s17 }
 0x129   : > { %p5697_p12 = pnand %p5695_p1, %p6076_p5  ;;  %p5703_p6 = scmp.lt.s32.totalorder %s5701_s0, %s5694_s5 }
 0x12b   : > { %p5698_p2 = pneg %p5697_p12  ;;  %p5704_p7 = por %p5703_p6, %p5702_p3 }
 0x12d   : > { %p5705_p11 = pnand %p5704_p7, %p5698_p2 }
 0x12f   : > { %5708 = shalt.err (!%p5705_p11)
}
 0x130   : > { %s5877_s7 = smov 256   ;;  %s5878_s16 = smov 16  }
 0x131   : > { %s7093_s22 = scalar_lea.sflag [#allocation17], %s6043_s27  ;;  %s6343_s14 = scalar_lea.hbm %s7035_s12, %s4774_s4 }
 0x132   : > { %5221 = dma.hbm_to_vmem [thread:$0]  (!%p6047_p0), %s6310_s21, 4096, %s6314_s23, %s7093_s22, %s5877_s7, %s5877_s7, %s5878_s16  }
 0x133   : > { %s698_s5 = scalar_lea.vmem [#allocation21], %s4693_s2  ;;  %s5709_s17 = scalar_lea.hbm %s6343_s14, 4096 }
 0x134   : > { %s705_s25 = sshll.u32 %s698_s5, 4  ;;  %p5710_p4 = scmp.ne.s32.totalorder %s6343_s14, %s5709_s17  ;;  %s706_s25 = int_to_ptr.vmem [resolvable:$true] %s705_s25 }
 0x135   : > { %s5714_s24 = scalar_lea.hbm %s7035_s12, 16384  ;;  %p5715_p10 = scmp.lt.s32.totalorder %s6343_s14, %s7035_s12 }
 0x136   : > { %p5712_p9 = pnand %p5710_p4, %p6076_p5  ;;  %p5716_p13 = scmp.lt.s32.totalorder %s5714_s24, %s5709_s17 }
 0x138   : > { %p5713_p8 = pneg %p5712_p9  ;;  %p5717_p1 = por %p5716_p13, %p5715_p10 }
 0x13a   : > { %p5718_p12 = pnand %p5717_p1, %p5713_p8 }
 0x13c   : > { %5721 = shalt.err (!%p5718_p12)
}
 0x13d   : > { %s5722_s2 = scalar_lea.vmem %s706_s25, 4096  ;;  %s5879_s4 = smov [#allocation21]  }
 0x13e   : > { %p5723_p2 = scmp.ne.s32.totalorder %s706_s25, %s5722_s2  ;;  %s5727_s16 = sshll.u32 %s5879_s4, 4  ;;  %s5728_s16 = int_to_ptr.vmem [resolvable:$false] %s5727_s16 }
 0x13f   : > { %s5729_s22 = scalar_lea.vmem %s5728_s16, 8192  ;;  %p5730_p7 = scmp.lt.s32.totalorder %s706_s25, %s5728_s16 }
 0x140   : > { %p5725_p3 = pnand %p5723_p2, %p6076_p5  ;;  %p5731_p11 = scmp.lt.s32.totalorder %s5729_s22, %s5722_s2 }
 0x142   : > { %p5726_p6 = pneg %p5725_p3  ;;  %p5732_p4 = por %p5731_p11, %p5730_p7 }
 0x144   : > { %p5733_p9 = pnand %p5732_p4, %p5726_p6 }
 0x146   : > { %5736 = shalt.err (!%p5733_p9)
}
 0x147   : > { %s7094_s29 = scalar_lea.sflag [#allocation20], %s6043_s27  ;;  %s6372_s17 = scalar_lea.hbm %s7036_s13, %s6062_s26 }
 0x148   : > { %5227 = dma.hbm_to_vmem [thread:$0]  (!%p6047_p0), %s6343_s14, 4096, %s706_s25, %s7094_s29, %s5870_s1, %s5870_s1, %s5871_s30  }
 0x149   : > { %s718_s0 = scalar_lea.vmem [#allocation22], %s6034_s20  ;;  %s716_s24 = scalar_lea.sflag [#allocation23], %s6043_s27 }
 0x14a   : > { %s725_s21 = sshll.u32 %s718_s0, 4  ;;  %s5737_s23 = scalar_lea.hbm %s6372_s17, 16  ;;  %s726_s21 = int_to_ptr.vmem [resolvable:$true] %s725_s21 }
 0x14b   : > { %p5738_p8 = scmp.ne.s32.totalorder %s6372_s17, %s5737_s23  ;;  %s5742_s1 = scalar_lea.hbm %s7036_s13, 64 }
 0x14c   : > { %p5743_p1 = scmp.lt.s32.totalorder %s6372_s17, %s7036_s13  ;;  %p5744_p12 = scmp.lt.s32.totalorder %s5742_s1, %s5737_s23 }
 0x14d   : > { %p5740_p10 = pnand %p5738_p8, %p6076_p5 }
 0x14e   : > { %p5745_p2 = por %p5744_p12, %p5743_p1 }
 0x14f   : > { %p5741_p13 = pneg %p5740_p10 }
 0x151   : > { %p5746_p3 = pnand %p5745_p2, %p5741_p13 }
 0x153   : > { %5749 = shalt.err (!%p5746_p3)
}
 0x154   : > { %s5750_s26 = scalar_lea.vmem %s726_s21, 16  ;;  %s5880_s20 = smov [#allocation22]  }
 0x155   : > { %p5751_p6 = scmp.ne.s32.totalorder %s726_s21, %s5750_s26  ;;  %s5755_s27 = sshll.u32 %s5880_s20, 4  ;;  %s5756_s27 = int_to_ptr.vmem [resolvable:$false] %s5755_s27 }
 0x156   : > { %s5757_s25 = scalar_lea.vmem %s5756_s27, 32  ;;  %p5758_p4 = scmp.lt.s32.totalorder %s726_s21, %s5756_s27 }
 0x157   : > { %p5753_p7 = pnand %p5751_p6, %p6076_p5  ;;  %p5759_p9 = scmp.lt.s32.totalorder %s5757_s25, %s5750_s26 }
 0x159   : > { %p5754_p11 = pneg %p5753_p7  ;;  %p5760_p8 = por %p5759_p9, %p5758_p4 }
 0x15b   : > { %p5761_p10 = pnand %p5760_p8, %p5754_p11 }
 0x15d   : > { %5764 = shalt.err (!%p5761_p10)
}
 0x15e   : > { %5230 = dma.hbm_to_vmem [thread:$0]  (!%p6047_p0), %s6372_s17, 16, %s726_s21, %s716_s24  }
 0x15f   : > { %s7095_s4 = sld [smem:[#allocation44_spill]] }
 0x165   : > { %p7096_p13 = scmp.ne.s32.totalorder %s7095_s4, 0 }
 0x166   : > { %s7097_s16 = sld [smem:[#allocation40_spill]] (!%p7096_p13) }
 0x167   : > { %734 = sbr.rel (%p7096_p13) target bundleno = 6599 (0x19c7), region = 84 }
 0x16c   : > { %p7098_p1 = scmp.eq.s32.totalorder %s7097_s16, 0 }
 0x16e   : > { %5806 = dma.done.wait (%p7098_p1), [#allocation5], 256   ;;  %p7099_p5 = pmov %p7098_p1 }
 0x16f   : > { %s7100_s19 = sld [smem:[#allocation38_spill]]  ;;  %s6399_s29 = sand.u32 1, %s7097_s16  }
 0x170   : > { %5808 = vsyncadd (%p7099_p5), [#allocation5], 4294967040  ;;  %s7101_s22 = sld [smem:[#allocation43_spill]]  ;;  %s741_s28 = scalar_lea.sflag [#allocation8], %s6399_s29 }
 0x175   : > { %s6402_s18 = sand.u32 1, %s7100_s19  }
 0x176   : > { %s743_s5 = scalar_lea.vmem [#allocation7], %s6402_s18  ;;  %p7102_p0 = scmp.ne.s32.totalorder %s7101_s22, 0 }
 0x178   : > { %5810 = dma.done.wait (%p7102_p0), %s741_s28, 32  }
 0x179   : > { %5812 = vsyncadd (%p7102_p0), %s741_s28, 4294967264  ;;  %s5147_s17 = smul.u32 384, %s6402_s18  ;;  %s751_s0 = scalar_lea.vmem [#allocation9], %s6402_s18 }
 0x17a   : > { %s757_s21 = scalar_lea.sflag [#allocation11], %s6399_s29 }
 0x17b   : > { %s6413_s24 = scalar_lea.vmem [#allocation10], %s5147_s17 }
 0x17c   : > { %5814 = dma.done.wait (%p7102_p0), %s757_s21, 8192  }
 0x17d   : > { %5816 = vsyncadd (%p7102_p0), %s757_s21, 4294959104  ;;  %s4705_s23 = sshll.u32 %s6402_s18, 7  ;;  %s775_s2 = scalar_lea.sflag [#allocation14], %s6399_s29 }
 0x17e   : > { %s6420_s7 = scalar_lea.vmem [#allocation12], %s4705_s23  ;;  %s777_s1 = scalar_lea.vmem [#allocation13], %s6402_s18 }
 0x17f   : > { %5818 = dma.done.wait (%p7102_p0), %s775_s2, 32  }
 0x180   : > { %5820 = vsyncadd (%p7102_p0), %s775_s2, 4294967264  ;;  %s785_s30 = scalar_lea.vmem [#allocation15], %s6402_s18  ;;  %s791_s14 = scalar_lea.sflag [#allocation17], %s6399_s29 }
 0x181   : > { %s793_s26 = scalar_lea.vmem [#allocation16], %s6402_s18 }
 0x182   : > { %5822 = dma.done.wait (%p7102_p0), %s791_s14, 4112  }
 0x183   : > { %5824 = vsyncadd (%p7102_p0), %s791_s14, 4294963184  ;;  %s4706_s20 = sshll.u32 %s6402_s18, 8  ;;  %s4707_s27 = sshll.u32 %s6402_s18, 1 }
 0x184   : > { %s6437_s25 = scalar_lea.vmem [#allocation18], %s4706_s20  ;;  %s808_s4 = scalar_lea.sflag [#allocation20], %s6399_s29 }
 0x185   : > { %s6440_s19 = scalar_lea.vmem [#allocation19], %s4707_s27 }
 0x186   : > { %5826 = dma.done.wait (%p7102_p0), %s808_s4, 4128  }
 0x187   : > { %5828 = vsyncadd (%p7102_p0), %s808_s4, 4294963168  ;;  %s6446_s28 = scalar_lea.vmem [#allocation21], %s4706_s20  ;;  %s826_s17 = scalar_lea.sflag [#allocation23], %s6399_s29 }
 0x188   : > { %s828_s21 = scalar_lea.vmem [#allocation22], %s6402_s18 }
 0x189   : > { %5830 = dma.done.wait (%p7102_p0), %s826_s17, 16  }
 0x18a   : > { %5832 = vsyncadd (%p7102_p0), %s826_s17, 4294967280  ;;  %p7103_p12 = pmov %p7098_p1 }
 0x18b   : > { %p7104_p2 = pmov %p7098_p1 }
 0x18c   : > { %5834 = dma.done.wait (%p7103_p12), [#allocation23], 16  }
 0x18d   : > { %5836 = vsyncadd (%p7104_p2), [#allocation23], 4294967280  ;;  %p7105_p3 = pmov %p7098_p1 }
 0x18e   : > { %p7106_p6 = pmov %p7098_p1 }
 0x18f   : > { %5838 = dma.done.wait (%p7105_p3), [#allocation26], 16  }
 0x190   : > { %5840 = vsyncadd (%p7106_p6), [#allocation26], 4294967280  ;;  %p928_p7 = scmp.lt.s32.totalorder %s7097_s16, 3  ;;  %s7107_s14 = sld [smem:[#allocation49_spill]] }
 0x191   : > { %p7108_p11 = scmp.ne.s32.totalorder %s7097_s16, 0 }
 0x192   : > { %s929_s29 = scalar_select %p928_p7, %s7097_s16, 3 }
 0x193   : > { %935 = sbr.rel (%p7108_p11) target bundleno = 413 (0x19d), region = 144  ;;  %s7109_s17 = sld [smem:[#allocation46_spill]] (!%p7108_p11) }
 0x194   : > { %s5148_s23 = smul.u32 3, %s929_s29 }
 0x196   : > { %s6467_s20 = scalar_lea.vmem %s7107_s14, %s5148_s23 }
 0x198   : > { %v936_v0 = vld [vmem:[#allocation4] sm:$0xff]  ;;  %v937_v2 = vld [vmem:[#allocation4 + $0x8] sm:$0xff] }
 0x199   : > { %v938_v1 = vld [vmem:[%s7109_s17] sm:$0xff] }
 0x19a   : > { %v939_v3 = vadd.f32 %v938_v1, %v936_v0  ;;  %v940_v4 = vadd.f32 %v938_v1, %v937_v2 }
 0x19c   : > { %941 = vst [vmem:[#allocation2] sm:$0xff] %v939_v3  ;;  %942 = vst [vmem:[#allocation2 + $0x8] sm:$0xff] %v940_v4 }
 0x19d PF: > { %v1032_v7 = vld [vmem:[%s6413_s24 + $0x170] sm:$0xff]  ;;  %v1031_v8 = vld [vmem:[%s6413_s24 + $0x168] sm:$0xff]  ;;  %v1029_v9 = vld [vmem:[%s6413_s24 + $0x158] sm:$0xff]  ;;  %v5881_v61 = vmov 0.0   ;;  %vm5882_vm0 = vmmov 0   ;;  %vm1203_vm1 = vcmask 130048  }
 0x19e   : > { %1051 = vmatprep.subr.mxu0 %v1032_v7  ;;  %v1028_v10 = vld [vmem:[%s6413_s24 + $0x150] sm:$0xff]  ;;  %v1033_v11 = vld [vmem:[%s6413_s24 + $0x178] sm:$0xff]  ;;  %v1026_v12 = vld [vmem:[%s6413_s24 + $0x140] sm:$0xff]  ;;  %1115 = vmatprep.mubr.f32.mxu0 %v5881_v61  ;;  %vm1358_vm2 = vcmask 64512   ;;  %s5883_s16 = smov 112   ;;  %s5887_s29 = smov 48  }
 0x19f   : > { %1052 = vmatpush1.msra.mxu0 %v1031_v8  ;;  %4915 = vmatprep.subr.mxu1 %v1033_v11  ;;  %v1030_v13 = vld [vmem:[%s6413_s24 + $0x160] sm:$0xff]  ;;  %v1025_v14 = vld [vmem:[%s6413_s24 + $0x138] sm:$0xff]  ;;  %v1023_v15 = vld [vmem:[%s6413_s24 + $0x128] sm:$0xff]  ;;  %s5888_s23 = smov 32   ;;  %s5889_s2 = smov 16   ;;  %vm1871_vm3 = vcmask 261248  }
 0x1a0   : > { %1053 = vmatprep.subr.mxu0 %v1029_v9  ;;  %4916 = vmatpush3.msra.mxu1 %v1033_v11  ;;  %v1022_v16 = vld [vmem:[%s6413_s24 + $0x120] sm:$0xff]  ;;  %v1020_v25 = vld [vmem:[%s6413_s24 + $0x110] sm:$0xff]  ;;  %v1027_v26 = vld [vmem:[%s6413_s24 + $0x148] sm:$0xff]  ;;  %vm2214_vm4 = vcmask 392448   ;;  %vm2557_vm5 = vcmask 523648   ;;  %vm2900_vm6 = vcmask 654848  }
 0x1a1   : > { %1054 = vmatpush1.msra.mxu0 %v1028_v10  ;;  %4917 = vmatprep.subr.mxu1 %v1030_v13  ;;  %v1019_v27 = vld [vmem:[%s6413_s24 + $0x108] sm:$0xff]  ;;  %v1017_v28 = vld [vmem:[%s6413_s24 + $0xf8] sm:$0xff]  ;;  %v1024_v29 = vld [vmem:[%s6413_s24 + $0x130] sm:$0xff]  ;;  %vm3243_vm7 = vcmask 786048   ;;  %vm3586_vm8 = vcmask 917248   ;;  %vm3929_vm9 = vcmask 1048448  }
 0x1a2   : > { %1055 = vmatprep.subr.mxu0 %v1026_v12  ;;  %4918 = vmatpush3.msra.mxu1 %v1030_v13  ;;  %v1016_v30 = vld [vmem:[%s6413_s24 + $0xf0] sm:$0xff]  ;;  %v1014_v31 = vld [vmem:[%s6413_s24 + $0xe0] sm:$0xff]  ;;  %v1021_v32 = vld [vmem:[%s6413_s24 + $0x118] sm:$0xff] }
 0x1a3   : > { %v943_v5 = vld [vmem:[#allocation2] sm:$0xff]  ;;  %v944_v6 = vld [vmem:[#allocation2 + $0x8] sm:$0xff]  ;;  %1056 = vmatpush1.msra.mxu0 %v1025_v14  ;;  %4919 = vmatprep.subr.mxu1 %v1027_v26  ;;  %v1018_v35 = vld [vmem:[%s6413_s24 + $0x100] sm:$0xff] }
 0x1a4   : > { %947 = vadd.xlane.f32.xlu0 %v943_v5  ;;  %1057 = vmatprep.subr.mxu0 %v1023_v15  ;;  %v1013_v33 = vld [vmem:[%s6413_s24 + $0xd8] sm:$0xff]  ;;  %v1011_v34 = vld [vmem:[%s6413_s24 + $0xc8] sm:$0xff]  ;;  %v1010_v36 = vld [vmem:[%s6413_s24 + $0xc0] sm:$0xff] }
 0x1a5   : > { %1058 = vmatpush1.msra.mxu0 %v1022_v16  ;;  %4920 = vmatpush3.msra.mxu1 %v1027_v26  ;;  %v1008_v37 = vld [vmem:[%s6413_s24 + $0xb0] sm:$0xff]  ;;  %v1015_v38 = vld [vmem:[%s6413_s24 + $0xe8] sm:$0xff]  ;;  %v1005_v40 = vld [vmem:[%s6413_s24 + $0x98] sm:$0xff]  ;;  %v1036_v16 = vlaneseq }
 0x1a6   : > { %1059 = vmatprep.subr.mxu0 %v1020_v25  ;;  %4921 = vmatprep.subr.mxu1 %v1024_v29  ;;  %v1007_v39 = vld [vmem:[%s6413_s24 + $0xa8] sm:$0xff]  ;;  %v1012_v41 = vld [vmem:[%s6413_s24 + $0xd0] sm:$0xff]  ;;  %v1002_v43 = vld [vmem:[%s6413_s24 + $0x80] sm:$0xff] }
 0x1a7   : > { %1060 = vmatpush1.msra.mxu0 %v1019_v27  ;;  %4922 = vmatpush3.msra.mxu1 %v1024_v29  ;;  %v1004_v42 = vld [vmem:[%s6413_s24 + $0x90] sm:$0xff]  ;;  %v1009_v44 = vld [vmem:[%s6413_s24 + $0xb8] sm:$0xff]  ;;  %v999_v46 = vld [vmem:[%s6413_s24 + $0x68] sm:$0xff] }
 0x1a8   : > { %949 = vadd.xlane.f32.xlu0 %v944_v6  ;;  %1061 = vmatprep.subr.mxu0 %v1017_v28  ;;  %v1001_v45 = vld [vmem:[%s6413_s24 + $0x78] sm:$0xff]  ;;  %v1006_v47 = vld [vmem:[%s6413_s24 + $0xa0] sm:$0xff]  ;;  %v996_v49 = vld [vmem:[%s6413_s24 + $0x50] sm:$0xff] }
 0x1a9   : > { %1062 = vmatpush1.msra.mxu0 %v1016_v30  ;;  %4923 = vmatprep.subr.mxu1 %v1021_v32  ;;  %v998_v48 = vld [vmem:[%s6413_s24 + $0x60] sm:$0xff]  ;;  %v1003_v50 = vld [vmem:[%s6413_s24 + $0x88] sm:$0xff]  ;;  %v993_v52 = vld [vmem:[%s6413_s24 + $0x38] sm:$0xff] }
 0x1aa   : > { %1063 = vmatprep.subr.mxu0 %v1014_v31  ;;  %4924 = vmatpush3.msra.mxu1 %v1021_v32  ;;  %v995_v51 = vld [vmem:[%s6413_s24 + $0x48] sm:$0xff]  ;;  %v1000_v53 = vld [vmem:[%s6413_s24 + $0x70] sm:$0xff]  ;;  %v990_v55 = vld [vmem:[%s6413_s24 + $0x20] sm:$0xff] }
 0x1ab   : > { %1064 = vmatpush1.msra.mxu0 %v1013_v33  ;;  %4925 = vmatprep.subr.mxu1 %v1018_v35  ;;  %v992_v54 = vld [vmem:[%s6413_s24 + $0x30] sm:$0xff]  ;;  %v997_v56 = vld [vmem:[%s6413_s24 + $0x58] sm:$0xff]  ;;  %v987_v58 = vld [vmem:[%s6413_s24 + $0x8] sm:$0xff] }
 0x1ac   : > { %1065 = vmatprep.subr.mxu0 %v1011_v34  ;;  %4926 = vmatpush3.msra.mxu1 %v1018_v35  ;;  %v989_v57 = vld [vmem:[%s6413_s24 + $0x18] sm:$0xff]  ;;  %v994_v59 = vld [vmem:[%s6413_s24 + $0x40] sm:$0xff]  ;;  %v991_v62 = vld [vmem:[%s6413_s24 + $0x28] sm:$0xff] }
 0x1ad   : > { %1066 = vmatpush1.msra.mxu0 %v1010_v36  ;;  %4927 = vmatprep.subr.mxu1 %v1015_v38  ;;  %v986_v60 = vld [vmem:[%s6413_s24] sm:$0xff]  ;;  %v988_v63 = vld [vmem:[%s6413_s24 + $0x10] sm:$0xff]  ;;  %v4712_v7 = vld [vmem:[%s743_s5] ss:$0 sm:$0xff]  ;;  %s5884_s5 = smov 96   ;;  %s5886_s24 = smov 64  }
 0x1ae   : > { %1067 = vmatprep.subr.mxu0 %v1008_v37  ;;  %4928 = vmatpush3.msra.mxu1 %v1015_v38  ;;  %v4713_v9 = vld [vmem:[%s751_s0] ss:$0 sm:$0xff]  ;;  %s5885_s0 = smov 80  }
 0x1af   : > { %1068 = vmatpush1.msra.mxu0 %v1007_v39  ;;  %4929 = vmatprep.subr.mxu1 %v1012_v41 }
 0x1b0   : > { %1069 = vmatprep.subr.mxu0 %v1005_v40  ;;  %4930 = vmatpush3.msra.mxu1 %v1012_v41 }
 0x1b1   : > { %1070 = vmatpush1.msra.mxu0 %v1004_v42  ;;  %4931 = vmatprep.subr.mxu1 %v1009_v44 }
 0x1b2   : > { %1071 = vmatprep.subr.mxu0 %v1002_v43  ;;  %4932 = vmatpush3.msra.mxu1 %v1009_v44 }
 0x1b3   : > { %1072 = vmatpush1.msra.mxu0 %v1001_v45  ;;  %4933 = vmatprep.subr.mxu1 %v1006_v47 }
 0x1b4   : > { %1073 = vmatprep.subr.mxu0 %v999_v46  ;;  %4934 = vmatpush3.msra.mxu1 %v1006_v47 }
 0x1b5   : > { %1074 = vmatpush1.msra.mxu0 %v998_v48  ;;  %4935 = vmatprep.subr.mxu1 %v1003_v50 }
 0x1b6   : > { %1075 = vmatprep.subr.mxu0 %v996_v49  ;;  %4936 = vmatpush3.msra.mxu1 %v1003_v50 }
 0x1b7   : > { %1076 = vmatpush1.msra.mxu0 %v995_v51  ;;  %4937 = vmatprep.subr.mxu1 %v1000_v53 }
 0x1b8   : > { %1077 = vmatprep.subr.mxu0 %v993_v52  ;;  %4938 = vmatpush3.msra.mxu1 %v1000_v53 }
 0x1b9   : > { %1078 = vmatpush1.msra.mxu0 %v992_v54  ;;  %4939 = vmatprep.subr.mxu1 %v997_v56 }
 0x1ba   : > { %1079 = vmatprep.subr.mxu0 %v990_v55  ;;  %4940 = vmatpush3.msra.mxu1 %v997_v56 }
 0x1bb   : > { %1080 = vmatpush1.msra.mxu0 %v989_v57  ;;  %4941 = vmatprep.subr.mxu1 %v994_v59 }
 0x1bc   : > { %1081 = vmatprep.subr.mxu0 %v987_v58  ;;  %4942 = vmatpush3.msra.mxu1 %v994_v59 }
 0x1bd   : > { %1082 = vmatpush1.msra.mxu0 %v986_v60  ;;  %4943 = vmatprep.subr.mxu1 %v991_v62 }
 0x1be   : > { %4950 = vmatprep.subr.mxu0 %v5881_v61  ;;  %4944 = vmatpush3.msra.mxu1 %v991_v62 }
 0x1bf   : > { %4945 = vmatprep.subr.mxu1 %v988_v63 }
 0x1c0   : > { %4946 = vmatpush3.msra.mxu1 %v988_v63 }
 0x1c1   : > { %4980 = vmatprep.subr.mxu1 %v5881_v61 }
 0x22d   : > { %v948_v17 = vpop.xlane.xlu0 %947 }
 0x22e   : > { %v952_v18 = vmul.f32 0.0078125, %v948_v17  ;;  %v6544_v17 = vshrl.u32 %v1036_v16, 7 }
 0x230   : > { %v6484_v19 = vsub.f32 %v943_v5, %v952_v18  ;;  %v1042_v18 = vsub.s32 1, %v6544_v17 }
 0x231   : > { %v950_v20 = vpop.xlane.xlu0 %949 }
 0x232   : > { %v953_v21 = vmul.f32 0.0078125, %v950_v20  ;;  %v956_v22 = vmul.f32 %v6484_v19, %v6484_v19  ;;  %v1034_v20 = vld [vmem:[%s6467_s20] sm:$0x7] }
 0x234   : > { %v6488_v23 = vsub.f32 %v944_v6, %v953_v21  ;;  %958 = vadd.xlane.f32.xlu1 %v956_v22  ;;  %v1038_v21 = vsub.s32 0, %v6544_v17  ;;  %v1043_v22 = vrot.slane %v1034_v20, %v1042_v18 }
 0x236   : > { %v957_v24 = vmul.f32 %v6488_v23, %v6488_v23  ;;  %v1039_v25 = vrot.slane %v1034_v20, %v1038_v21 }
 0x238   : > { %960 = vadd.xlane.f32.xlu1 %v957_v24 }
 0x2bd   : > { %v959_v0 = vpop.xlane.xlu1 %958 }
 0x2be   : > { %v962_v1 = vmul.f32 0.0078125, %v959_v0 }
 0x2c0   : > { %v964_v2 = vadd.f32 1e-06, %v962_v1 }
 0x2c1   : > { %v961_v3 = vpop.xlane.xlu1 %960 }
 0x2c2   : > { %5293 = vrsqrt.f32 %v964_v2  ;;  %v963_v4 = vmul.f32 0.0078125, %v961_v3 }
 0x2c4   : > { %v965_v5 = vadd.f32 1e-06, %v963_v4 }
 0x2c6   : > { %5295 = vrsqrt.f32 %v965_v5 }
 0x2cf   : > { %v5294_v6 = vpop.eup %5293 }
 0x2d0   : > { %v968_v8 = vmul.f32 %v5294_v6, %v6484_v19  ;;  %v1046_v19 = vsub.s32 2, %v6544_v17 }
 0x2d2   : > { %v976_v10 = vmul.f32 %v4712_v7, %v968_v8  ;;  %v1047_v24 = vrot.slane %v1034_v20, %v1046_v19 }
 0x2d3   : > { %v5296_v11 = vpop.eup %5295 }
 0x2d4   : > { %v984_v12 = vadd.f32 %v4713_v9, %v976_v10  ;;  %v969_v13 = vmul.f32 %v5296_v11, %v6488_v23 }
 0x2d6   : > { %1116 = vmatmul.mubr.f32.vlgmr.msra.gmra.mxu0 %v984_v12  ;;  %4947 = vmatprep.mubr.f32.mxu1 %v984_v12  ;;  %v977_v14 = vmul.f32 %v4712_v7, %v969_v13 }
 0x2d7   : > { %1121 = vmatprep.mubr.f32.mxu0 %v5881_v61 }
 0x2d8   : > { %v985_v15 = vadd.f32 %v4713_v9, %v977_v14 }
 0x2da   : > { %1122 = vmatmul.mubr.f32.gmra.mxu0 %v985_v15  ;;  %4948 = vmatmul.mubr.f32.vlgmr.msra.gmra.mxu1 %v985_v15 }
 0x2db   : > { %4952 = vmatprep.mubr.msk.f32.mxu0 %vm5882_vm0, %v5881_v61  ;;  %4982 = vmatprep.mubr.msk.f32.mxu1 %vm5882_vm0, %v5881_v61 }
 0x396   : > { %v1117_v23 = vpop.f32.mrf.mxu0 }
 0x397   : > { %v6560_v31 = vadd.f32 %v1117_v23, %v1039_v25 }
 0x398   : > { %v1119_v26 = vpop.f32.mrf.mxu0 }
 0x399   : > { %v6554_v27 = vadd.f32 %v1119_v26, %v1043_v22 }
 0x39a   : > { %v1123_v28 = vpop.f32.mrf.mxu0  ;;  %v4949_v29 = vpop.f32.mrf.mxu1 }
 0x39b   : > { %v6556_v30 = vadd.f32 %v4949_v29, %v1047_v24  ;;  %4951 = vmatpush3.xpose.msk.msra.mxu0 %vm1203_vm1, %v6554_v27  ;;  %v6571_v35 = vadd.f32 %v1123_v28, %v1039_v25 }
 0x39c   : > { %v1125_v32 = vpop.f32.mrf.mxu0  ;;  %4955 = vmatprep.subr.mxu0 %v5881_v61  ;;  %v1194_v34 = vpop.f32.mrf.mxu1 }
 0x39d   : > { %v6563_v33 = vadd.f32 %v1125_v32, %v1043_v22  ;;  %v6574_v36 = vadd.f32 %v1194_v34, %v1047_v24 }
 0x39e   : > { %4953 = vmatmul.mubr.msk.f32.vlgmr.msra.gmra.mxu0 %vm1203_vm1, %v6560_v31 }
 0x39f   : > { %4956 = vmatpush3.xpose.msk.msra.mxu0 %vm1203_vm1, %v6563_v33  ;;  %4957 = vmatprep.mubr.msk.f32.mxu0 %vm5882_vm0, %v5881_v61 }
 0x3a0   : > { %4960 = vmatprep.subr.mxu0 %v5881_v61 }
 0x3a2   : > { %4958 = vmatmul.mubr.msk.f32.vlgmr.msra.gmra.mxu0 %vm1203_vm1, %v6571_v35 }
 0x3a3   : > { %4961 = vmatpush3.msra.mxu0 %v6574_v36  ;;  %4962 = vmatprep.mubr.msk.f32.mxu0 %vm5882_vm0, %v5881_v61 }
 0x3a4   : > { %4965 = vmatprep.subr.mxu0 %v5881_v61 }
 0x45e   : > { %v1276_v37 = vpop.f32.mrf.mxu0 }
 0x45f   : > { %v1356_v38 = vmul.f32 0.25, %v1276_v37 }
 0x460   : > { %v4954_v39 = vpop.f32.mrf.mxu0 }
 0x461   : > { %v1359_v40 = vsel %vm1358_vm2, %v1356_v38, -inf }
 0x462   : > { %1360 = vmax.xlane.f32.xlu0 %v1359_v40  ;;  %v1352_v41 = vpop.f32.mrf.mxu0 }
 0x463   : > { %v1357_v42 = vmul.f32 0.25, %v1352_v41 }
 0x464   : > { %v4959_v43 = vpop.f32.mrf.mxu0 }
 0x465   : > { %v1362_v44 = vsel %vm1358_vm2, %v1357_v42, -inf }
 0x466   : > { %1363 = vmax.xlane.f32.xlu1 %v1362_v44 }
 0x477   : > { %1529 = vrot.lane.b32.xlu1 %v6560_v31, %s5883_s16 }
 0x47b   : > { %1609 = vrot.lane.b32.xlu1 %v6563_v33, %s5883_s16 }
 0x4eb   : > { %v1361_v45 = vpop.xlane.xlu0 %1360 }
 0x4ec   : > { %v1365_v46 = vsub.f32 %v1356_v38, %v1361_v45 }
 0x4ee   : > { %v1367_v47 = vmul.f32 1.442695, %v1365_v46 }
 0x4ef   : > { %v1364_v48 = vpop.xlane.xlu1 %1363 }
 0x4f0   : > { %5297 = vpow2.f32 %v1367_v47  ;;  %v1366_v49 = vsub.f32 %v1357_v42, %v1364_v48 }
 0x4f2   : > { %v1369_v50 = vmul.f32 1.442695, %v1366_v49 }
 0x4f3   : > { %v1530_v55 = vpop.permute.xlu1 %1529 }
 0x4f4   : > { %5299 = vpow2.f32 %v1369_v50 }
 0x4f7   : > { %v1610_v56 = vpop.permute.xlu1 %1609 }
 0x4fd   : > { %v5298_v51 = vpop.eup %5297 }
 0x4fe   : > { %v1371_v52 = vsel %vm1358_vm2, %v5298_v51, 0.0 }
 0x4ff   : > { %1372 = vadd.xlane.f32.xlu0 %v1371_v52 }
 0x501   : > { %v5300_v53 = vpop.eup %5299 }
 0x502   : > { %v1374_v54 = vsel %vm1358_vm2, %v5300_v53, 0.0 }
 0x503   : > { %1375 = vadd.xlane.f32.xlu1 %v1374_v54 }
 0x514   : > { %1607 = vrot.lane.b32.xlu1 %v6571_v35, %s5883_s16 }
 0x515   : > { %1531 = vrot.lane.b32.xlu0 %v6554_v27, %s5883_s16 }
 0x588   : > { %v1373_v57 = vpop.xlane.xlu0 %1372 }
 0x589   : > { %5301 = vrcp.f32 %v1373_v57 }
 0x58c   : > { %v1376_v58 = vpop.xlane.xlu1 %1375  ;;  %v1532_v0 = vpop.permute.xlu0 %1531 }
 0x58d   : > { %5303 = vrcp.f32 %v1376_v58 }
 0x590   : > { %v1608_v1 = vpop.permute.xlu1 %1607 }
 0x596   : > { %v5302_v59 = vpop.eup %5301 }
 0x597   : > { %v1379_v60 = vmul.f32 %v5302_v59, %v5298_v51 }
 0x599   : > { %4963 = vmatmul.mubr.msk.f32.vlgmr.msra.gmra.mxu0 %vm1358_vm2, %v1379_v60 }
 0x59a   : > { %v5304_v62 = vpop.eup %5303  ;;  %4966 = vmatpush3.msra.mxu0 %v6556_v30  ;;  %4967 = vmatprep.mubr.msk.f32.mxu0 %vm5882_vm0, %v5881_v61 }
 0x59b   : > { %4970 = vmatprep.subr.mxu0 %v5881_v61  ;;  %v1380_v63 = vmul.f32 %v5304_v62, %v5300_v53 }
 0x59d   : > { %4968 = vmatmul.mubr.msk.f32.vlgmr.msra.gmra.mxu0 %vm1358_vm2, %v1380_v63 }
 0x59e   : > { %4971 = vmatpush3.xpose.msk.msra.mxu0 %vm1203_vm1, %v1532_v0  ;;  %4972 = vmatprep.mubr.msk.f32.mxu0 %vm5882_vm0, %v5881_v61 }
 0x59f   : > { %4975 = vmatprep.subr.mxu0 %v5881_v61 }
 0x5a1   : > { %4973 = vmatmul.mubr.msk.f32.vlgmr.msra.gmra.mxu0 %vm1203_vm1, %v1530_v55 }
 0x5a2   : > { %4976 = vmatpush3.xpose.msk.msra.mxu0 %vm1203_vm1, %v1610_v56  ;;  %4977 = vmatprep.mubr.msk.f32.mxu0 %vm5882_vm0, %v5881_v61 }
 0x5a3   : > { %4985 = vmatprep.subr.mxu0 %v5881_v61 }
 0x5a5   : > { %4978 = vmatmul.mubr.msk.f32.vlgmr.msra.gmra.mxu0 %vm1203_vm1, %v1608_v1 }
 0x5a6   : > { %4987 = vmatprep.mubr.msk.f32.mxu0 %vm5882_vm0, %v5881_v61 }
 0x659   : > { %v1450_v2 = vpop.f32.mrf.mxu0 }
 0x65a   : > { %1527 = vst.msk [vmem:[#allocation3] sm:$0xff] %vm1203_vm1, %v1450_v2 }
 0x65b   : > { %v4964_v3 = vpop.f32.mrf.mxu0 }
 0x65d   : > { %v1523_v4 = vpop.f32.mrf.mxu0 }
 0x65e   : > { %1528 = vst.msk [vmem:[#allocation3 + $0x8] sm:$0xff] %vm1203_vm1, %v1523_v4 }
 0x65f   : > { %v4969_v5 = vpop.f32.mrf.mxu0 }
 0x661   : > { %v1603_v6 = vpop.f32.mrf.mxu0 }
 0x662   : > { %v1685_v7 = vmul.f32 0.25, %v1603_v6 }
 0x663   : > { %v4974_v8 = vpop.f32.mrf.mxu0 }
 0x664   : > { %v1687_v9 = vsel %vm1358_vm2, %v1685_v7, -inf }
 0x665   : > { %1688 = vmax.xlane.f32.xlu0 %v1687_v9  ;;  %v1681_v10 = vpop.f32.mrf.mxu0 }
 0x666   : > { %v1686_v11 = vmul.f32 0.25, %v1681_v10 }
 0x667   : > { %v4979_v12 = vpop.f32.mrf.mxu0 }
 0x668   : > { %v1690_v13 = vsel %vm1358_vm2, %v1686_v11, -inf }
 0x669   : > { %1691 = vmax.xlane.f32.xlu1 %v1690_v13 }
 0x67a   : > { %1787 = vrot.lane.b32.xlu1 %v6556_v30, %s5883_s16 }
 0x67b   : > { %1710 = vrot.lane.b32.xlu0 %v6574_v36, %s5883_s16 }
 0x67e   : > { %1876 = vrot.lane.b32.xlu1 %v6554_v27, %s5884_s5 }
 0x682   : > { %1954 = vrot.lane.b32.xlu1 %v6563_v33, %s5884_s5 }
 0x686   : > { %1952 = vrot.lane.b32.xlu1 %v6571_v35, %s5884_s5 }
 0x6ee   : > { %v1689_v14 = vpop.xlane.xlu0 %1688 }
 0x6ef   : > { %v1693_v15 = vsub.f32 %v1685_v7, %v1689_v14 }
 0x6f1   : > { %v1695_v16 = vmul.f32 1.442695, %v1693_v15 }
 0x6f2   : > { %v1711_v19 = vpop.permute.xlu0 %1710  ;;  %v1692_v20 = vpop.xlane.xlu1 %1691 }
 0x6f3   : > { %5305 = vpow2.f32 %v1695_v16  ;;  %v1694_v22 = vsub.f32 %v1686_v11, %v1692_v20  ;;  %4981 = vmatpush3.msra.mxu1 %v1711_v19 }
 0x6f4   : > { %4990 = vmatprep.subr.mxu1 %v5881_v61 }
 0x6f5   : > { %v1697_v23 = vmul.f32 1.442695, %v1694_v22 }
 0x6f6   : > { %v1788_v24 = vpop.permute.xlu1 %1787 }
 0x6f7   : > { %5307 = vpow2.f32 %v1697_v23  ;;  %4986 = vmatpush3.msra.mxu0 %v1788_v24 }
 0x6f8   : > { %4995 = vmatprep.subr.mxu0 %v5881_v61 }
 0x6fa   : > { %v1877_v37 = vpop.permute.xlu1 %1876 }
 0x6fe   : > { %v1955_v41 = vpop.permute.xlu1 %1954 }
 0x700   : > { %v5306_v25 = vpop.eup %5305 }
 0x701   : > { %v1699_v26 = vsel %vm1358_vm2, %v5306_v25, 0.0 }
 0x702   : > { %1700 = vadd.xlane.f32.xlu0 %v1699_v26  ;;  %v1953_v44 = vpop.permute.xlu1 %1952 }
 0x704   : > { %v5308_v28 = vpop.eup %5307 }
 0x705   : > { %v1702_v29 = vsel %vm1358_vm2, %v5308_v28, 0.0 }
 0x706   : > { %1703 = vadd.xlane.f32.xlu0 %v1702_v29 }
 0x71c   : > { %1874 = vrot.lane.b32.xlu0 %v6560_v31, %s5884_s5 }
 0x78b   : > { %v1701_v32 = vpop.xlane.xlu0 %1700 }
 0x78c   : > { %5309 = vrcp.f32 %v1701_v32 }
 0x78f   : > { %v1704_v34 = vpop.xlane.xlu0 %1703 }
 0x790   : > { %5311 = vrcp.f32 %v1704_v34 }
 0x793   : > { %v1875_v43 = vpop.permute.xlu0 %1874 }
 0x799   : > { %v5310_v38 = vpop.eup %5309 }
 0x79a   : > { %v1707_v39 = vmul.f32 %v5310_v38, %v5306_v25 }
 0x79c   : > { %4983 = vmatmul.mubr.msk.f32.vlgmr.msra.gmra.mxu1 %vm1358_vm2, %v1707_v39 }
 0x79d   : > { %v5312_v40 = vpop.eup %5311  ;;  %4991 = vmatpush3.xpose.msk.msra.mxu1 %vm1203_vm1, %v1877_v37  ;;  %4992 = vmatprep.mubr.msk.f32.mxu1 %vm5882_vm0, %v5881_v61 }
 0x79e   : > { %v1708_v42 = vmul.f32 %v5312_v40, %v5308_v28  ;;  %5000 = vmatprep.subr.mxu1 %v5881_v61 }
 0x7a0   : > { %4988 = vmatmul.mubr.msk.f32.vlgmr.msra.gmra.mxu0 %vm1358_vm2, %v1708_v42  ;;  %4993 = vmatmul.mubr.msk.f32.vlgmr.msra.gmra.mxu1 %vm1203_vm1, %v1875_v43 }
 0x7a1   : > { %4996 = vmatpush3.xpose.msk.msra.mxu0 %vm1203_vm1, %v1955_v41  ;;  %4997 = vmatprep.mubr.msk.f32.mxu0 %vm5882_vm0, %v5881_v61 }
 0x7a2   : > { %5005 = vmatprep.subr.mxu0 %v5881_v61  ;;  %5002 = vmatprep.mubr.msk.f32.mxu1 %vm5882_vm0, %v5881_v61 }
 0x7a4   : > { %4998 = vmatmul.mubr.msk.f32.vlgmr.msra.gmra.mxu0 %vm1203_vm1, %v1953_v44 }
 0x7a5   : > { %5007 = vmatprep.mubr.msk.f32.mxu0 %vm5882_vm0, %v5881_v61 }
 0x85c   : > { %v6648_v45 = vpop.f32.mrf.mxu1 }
 0x85e   : > { %v4984_v46 = vpop.f32.mrf.mxu1 }
 0x860   : > { %v6650_v47 = vpop.f32.mrf.mxu0  ;;  %v1948_v48 = vpop.f32.mrf.mxu1 }
 0x861   : > { %v2030_v49 = vmul.f32 0.25, %v1948_v48 }
 0x862   : > { %v4989_v50 = vpop.f32.mrf.mxu0  ;;  %v4994_v51 = vpop.f32.mrf.mxu1 }
 0x863   : > { %v2032_v52 = vsel %vm1358_vm2, %v2030_v49, -inf }
 0x864   : > { %2033 = vmax.xlane.f32.xlu0 %v2032_v52  ;;  %v2026_v53 = vpop.f32.mrf.mxu0 }
 0x865   : > { %v2031_v54 = vmul.f32 0.25, %v2026_v53 }
 0x866   : > { %v4999_v55 = vpop.f32.mrf.mxu0 }
 0x867   : > { %v2035_v56 = vsel %vm1358_vm2, %v2031_v54, -inf }
 0x868   : > { %2036 = vmax.xlane.f32.xlu1 %v2035_v56 }
 0x879   : > { %2130 = vrot.lane.b32.xlu1 %v6556_v30, %s5884_s5 }
 0x87a   : > { %2054 = vrot.lane.b32.xlu0 %v6574_v36, %s5884_s5 }
 0x87d   : > { %2219 = vrot.lane.b32.xlu1 %v6554_v27, %s5885_s0 }
 0x881   : > { %2297 = vrot.lane.b32.xlu1 %v6563_v33, %s5885_s0 }
 0x885   : > { %2295 = vrot.lane.b32.xlu1 %v6571_v35, %s5885_s0 }
 0x8ed   : > { %v2034_v57 = vpop.xlane.xlu0 %2033 }
 0x8ee   : > { %v2038_v58 = vsub.f32 %v2030_v49, %v2034_v57 }
 0x8f0   : > { %v2040_v59 = vmul.f32 1.442695, %v2038_v58 }
 0x8f1   : > { %v2055_v60 = vpop.permute.xlu0 %2054  ;;  %v2037_v62 = vpop.xlane.xlu1 %2036 }
 0x8f2   : > { %5313 = vpow2.f32 %v2040_v59  ;;  %v2039_v63 = vsub.f32 %v2031_v54, %v2037_v62  ;;  %5001 = vmatpush3.msra.mxu1 %v2055_v60 }
 0x8f3   : > { %5010 = vmatprep.subr.mxu1 %v5881_v61 }
 0x8f4   : > { %v2042_v0 = vmul.f32 1.442695, %v2039_v63 }
 0x8f5   : > { %v2131_v1 = vpop.permute.xlu1 %2130 }
 0x8f6   : > { %5315 = vpow2.f32 %v2042_v0  ;;  %5006 = vmatpush3.msra.mxu0 %v2131_v1 }
 0x8f7   : > { %5015 = vmatprep.subr.mxu0 %v5881_v61 }
 0x8f9   : > { %v2220_v8 = vpop.permute.xlu1 %2219 }
 0x8fd   : > { %v2298_v12 = vpop.permute.xlu1 %2297 }
 0x8ff   : > { %v5314_v2 = vpop.eup %5313 }
 0x900   : > { %v2044_v3 = vsel %vm1358_vm2, %v5314_v2, 0.0 }
 0x901   : > { %2045 = vadd.xlane.f32.xlu0 %v2044_v3  ;;  %v2296_v15 = vpop.permute.xlu1 %2295 }
 0x903   : > { %v5316_v4 = vpop.eup %5315 }
 0x904   : > { %v2047_v5 = vsel %vm1358_vm2, %v5316_v4, 0.0 }
 0x905   : > { %2048 = vadd.xlane.f32.xlu0 %v2047_v5 }
 0x91b   : > { %2217 = vrot.lane.b32.xlu0 %v6560_v31, %s5885_s0 }
 0x98a   : > { %v2046_v6 = vpop.xlane.xlu0 %2045 }
 0x98b   : > { %5317 = vrcp.f32 %v2046_v6 }
 0x98e   : > { %v2049_v7 = vpop.xlane.xlu0 %2048 }
 0x98f   : > { %5319 = vrcp.f32 %v2049_v7 }
 0x992   : > { %v2218_v14 = vpop.permute.xlu0 %2217 }
 0x998   : > { %v5318_v9 = vpop.eup %5317 }
 0x999   : > { %v2052_v10 = vmul.f32 %v5318_v9, %v5314_v2 }
 0x99b   : > { %5003 = vmatmul.mubr.msk.f32.vlgmr.msra.gmra.mxu1 %vm1358_vm2, %v2052_v10 }
 0x99c   : > { %v5320_v11 = vpop.eup %5319  ;;  %5011 = vmatpush3.xpose.msk.msra.mxu1 %vm1203_vm1, %v2220_v8  ;;  %5012 = vmatprep.mubr.msk.f32.mxu1 %vm5882_vm0, %v5881_v61 }
 0x99d   : > { %v2053_v13 = vmul.f32 %v5320_v11, %v5316_v4  ;;  %5020 = vmatprep.subr.mxu1 %v5881_v61 }
 0x99f   : > { %5008 = vmatmul.mubr.msk.f32.vlgmr.msra.gmra.mxu0 %vm1358_vm2, %v2053_v13  ;;  %5013 = vmatmul.mubr.msk.f32.vlgmr.msra.gmra.mxu1 %vm1203_vm1, %v2218_v14 }
 0x9a0   : > { %5016 = vmatpush3.xpose.msk.msra.mxu0 %vm1203_vm1, %v2298_v12  ;;  %5017 = vmatprep.mubr.msk.f32.mxu0 %vm5882_vm0, %v5881_v61 }
 0x9a1   : > { %5025 = vmatprep.subr.mxu0 %v5881_v61  ;;  %5022 = vmatprep.mubr.msk.f32.mxu1 %vm5882_vm0, %v5881_v61 }
 0x9a3   : > { %5018 = vmatmul.mubr.msk.f32.vlgmr.msra.gmra.mxu0 %vm1203_vm1, %v2296_v15 }
 0x9a4   : > { %5027 = vmatprep.mubr.msk.f32.mxu0 %vm5882_vm0, %v5881_v61 }
 0xa5b   : > { %v6686_v16 = vpop.f32.mrf.mxu1 }
 0xa5d   : > { %v5004_v19 = vpop.f32.mrf.mxu1 }
 0xa5f   : > { %v6688_v20 = vpop.f32.mrf.mxu0  ;;  %v2291_v22 = vpop.f32.mrf.mxu1 }
 0xa60   : > { %v2373_v23 = vmul.f32 0.25, %v2291_v22 }
 0xa61   : > { %v5009_v24 = vpop.f32.mrf.mxu0  ;;  %v5014_v25 = vpop.f32.mrf.mxu1 }
 0xa62   : > { %v2375_v26 = vsel %vm1358_vm2, %v2373_v23, -inf }
 0xa63   : > { %2376 = vmax.xlane.f32.xlu0 %v2375_v26  ;;  %v2369_v28 = vpop.f32.mrf.mxu0 }
 0xa64   : > { %v2374_v29 = vmul.f32 0.25, %v2369_v28 }
 0xa65   : > { %v5019_v32 = vpop.f32.mrf.mxu0 }
 0xa66   : > { %v2378_v34 = vsel %vm1358_vm2, %v2374_v29, -inf }
 0xa67   : > { %2379 = vmax.xlane.f32.xlu1 %v2378_v34 }
 0xa78   : > { %2473 = vrot.lane.b32.xlu1 %v6556_v30, %s5885_s0 }
 0xa79   : > { %2397 = vrot.lane.b32.xlu0 %v6574_v36, %s5885_s0 }
 0xa7c   : > { %2562 = vrot.lane.b32.xlu1 %v6554_v27, %s5886_s24 }
 0xa80   : > { %2640 = vrot.lane.b32.xlu1 %v6563_v33, %s5886_s24 }
 0xa84   : > { %2638 = vrot.lane.b32.xlu1 %v6571_v35, %s5886_s24 }
 0xaec   : > { %v2377_v37 = vpop.xlane.xlu0 %2376 }
 0xaed   : > { %v2381_v38 = vsub.f32 %v2373_v23, %v2377_v37 }
 0xaef   : > { %v2383_v39 = vmul.f32 1.442695, %v2381_v38 }
 0xaf0   : > { %v2398_v40 = vpop.permute.xlu0 %2397  ;;  %v2380_v41 = vpop.xlane.xlu1 %2379 }
 0xaf1   : > { %5321 = vpow2.f32 %v2383_v39  ;;  %v2382_v42 = vsub.f32 %v2374_v29, %v2380_v41  ;;  %5021 = vmatpush3.msra.mxu1 %v2398_v40 }
 0xaf2   : > { %5030 = vmatprep.subr.mxu1 %v5881_v61 }
 0xaf3   : > { %v2385_v43 = vmul.f32 1.442695, %v2382_v42 }
 0xaf4   : > { %v2474_v44 = vpop.permute.xlu1 %2473 }
 0xaf5   : > { %5323 = vpow2.f32 %v2385_v43  ;;  %5026 = vmatpush3.msra.mxu0 %v2474_v44 }
 0xaf6   : > { %5035 = vmatprep.subr.mxu0 %v5881_v61 }
 0xaf8   : > { %v2563_v53 = vpop.permute.xlu1 %2562 }
 0xafc   : > { %v2641_v57 = vpop.permute.xlu1 %2640 }
 0xafe   : > { %v5322_v46 = vpop.eup %5321 }
 0xaff   : > { %v2387_v48 = vsel %vm1358_vm2, %v5322_v46, 0.0 }
 0xb00   : > { %2388 = vadd.xlane.f32.xlu0 %v2387_v48  ;;  %v2639_v60 = vpop.permute.xlu1 %2638 }
 0xb02   : > { %v5324_v49 = vpop.eup %5323 }
 0xb03   : > { %v2390_v50 = vsel %vm1358_vm2, %v5324_v49, 0.0 }
 0xb04   : > { %2391 = vadd.xlane.f32.xlu0 %v2390_v50 }
 0xb1a   : > { %2560 = vrot.lane.b32.xlu0 %v6560_v31, %s5886_s24 }
 0xb89   : > { %v2389_v51 = vpop.xlane.xlu0 %2388 }
 0xb8a   : > { %5325 = vrcp.f32 %v2389_v51 }
 0xb8d   : > { %v2392_v52 = vpop.xlane.xlu0 %2391 }
 0xb8e   : > { %5327 = vrcp.f32 %v2392_v52 }
 0xb91   : > { %v2561_v59 = vpop.permute.xlu0 %2560 }
 0xb97   : > { %v5326_v54 = vpop.eup %5325 }
 0xb98   : > { %v2395_v55 = vmul.f32 %v5326_v54, %v5322_v46 }
 0xb9a   : > { %5023 = vmatmul.mubr.msk.f32.vlgmr.msra.gmra.mxu1 %vm1358_vm2, %v2395_v55 }
 0xb9b   : > { %v5328_v56 = vpop.eup %5327  ;;  %5031 = vmatpush3.xpose.msk.msra.mxu1 %vm1203_vm1, %v2563_v53  ;;  %5032 = vmatprep.mubr.msk.f32.mxu1 %vm5882_vm0, %v5881_v61 }
 0xb9c   : > { %v2396_v58 = vmul.f32 %v5328_v56, %v5324_v49  ;;  %5040 = vmatprep.subr.mxu1 %v5881_v61 }
 0xb9e   : > { %5028 = vmatmul.mubr.msk.f32.vlgmr.msra.gmra.mxu0 %vm1358_vm2, %v2396_v58  ;;  %5033 = vmatmul.mubr.msk.f32.vlgmr.msra.gmra.mxu1 %vm1203_vm1, %v2561_v59 }
 0xb9f   : > { %5036 = vmatpush3.xpose.msk.msra.mxu0 %vm1203_vm1, %v2641_v57  ;;  %5037 = vmatprep.mubr.msk.f32.mxu0 %vm5882_vm0, %v5881_v61 }
 0xba0   : > { %5045 = vmatprep.subr.mxu0 %v5881_v61  ;;  %5042 = vmatprep.mubr.msk.f32.mxu1 %vm5882_vm0, %v5881_v61 }
 0xba2   : > { %5038 = vmatmul.mubr.msk.f32.vlgmr.msra.gmra.mxu0 %vm1203_vm1, %v2639_v60 }
 0xba3   : > { %5047 = vmatprep.mubr.msk.f32.mxu0 %vm5882_vm0, %v5881_v61 }
 0xc5a   : > { %v6724_v62 = vpop.f32.mrf.mxu1 }
 0xc5c   : > { %v5024_v63 = vpop.f32.mrf.mxu1 }
 0xc5e   : > { %v6726_v0 = vpop.f32.mrf.mxu0  ;;  %v2634_v1 = vpop.f32.mrf.mxu1 }
 0xc5f   : > { %v2716_v2 = vmul.f32 0.25, %v2634_v1 }
 0xc60   : > { %v5029_v3 = vpop.f32.mrf.mxu0  ;;  %v5034_v4 = vpop.f32.mrf.mxu1 }
 0xc61   : > { %v2718_v5 = vsel %vm1358_vm2, %v2716_v2, -inf }
 0xc62   : > { %2719 = vmax.xlane.f32.xlu0 %v2718_v5  ;;  %v2712_v6 = vpop.f32.mrf.mxu0 }
 0xc63   : > { %v2717_v7 = vmul.f32 0.25, %v2712_v6 }
 0xc64   : > { %v5039_v8 = vpop.f32.mrf.mxu0 }
 0xc65   : > { %v2721_v9 = vsel %vm1358_vm2, %v2717_v7, -inf }
 0xc66   : > { %2722 = vmax.xlane.f32.xlu1 %v2721_v9 }
 0xc77   : > { %2816 = vrot.lane.b32.xlu1 %v6556_v30, %s5886_s24 }
 0xc78   : > { %2740 = vrot.lane.b32.xlu0 %v6574_v36, %s5886_s24 }
 0xc7b   : > { %2905 = vrot.lane.b32.xlu1 %v6554_v27, %s5887_s29 }
 0xc7f   : > { %2983 = vrot.lane.b32.xlu1 %v6563_v33, %s5887_s29 }
 0xc83   : > { %2981 = vrot.lane.b32.xlu1 %v6571_v35, %s5887_s29 }
 0xceb   : > { %v2720_v10 = vpop.xlane.xlu0 %2719 }
 0xcec   : > { %v2724_v11 = vsub.f32 %v2716_v2, %v2720_v10 }
 0xcee   : > { %v2726_v12 = vmul.f32 1.442695, %v2724_v11 }
 0xcef   : > { %v2741_v13 = vpop.permute.xlu0 %2740  ;;  %v2723_v14 = vpop.xlane.xlu1 %2722 }
 0xcf0   : > { %5329 = vpow2.f32 %v2726_v12  ;;  %v2725_v15 = vsub.f32 %v2717_v7, %v2723_v14  ;;  %5041 = vmatpush3.msra.mxu1 %v2741_v13 }
 0xcf1   : > { %5050 = vmatprep.subr.mxu1 %v5881_v61 }
 0xcf2   : > { %v2728_v19 = vmul.f32 1.442695, %v2725_v15 }
 0xcf3   : > { %v2817_v22 = vpop.permute.xlu1 %2816 }
 0xcf4   : > { %5331 = vpow2.f32 %v2728_v19  ;;  %5046 = vmatpush3.msra.mxu0 %v2817_v22 }
 0xcf5   : > { %5055 = vmatprep.subr.mxu0 %v5881_v61 }
 0xcf7   : > { %v2906_v32 = vpop.permute.xlu1 %2905 }
 0xcfb   : > { %v2984_v39 = vpop.permute.xlu1 %2983 }
 0xcfd   : > { %v5330_v23 = vpop.eup %5329 }
 0xcfe   : > { %v2730_v24 = vsel %vm1358_vm2, %v5330_v23, 0.0 }
 0xcff   : > { %2731 = vadd.xlane.f32.xlu0 %v2730_v24  ;;  %v2982_v42 = vpop.permute.xlu1 %2981 }
 0xd01   : > { %v5332_v25 = vpop.eup %5331 }
 0xd02   : > { %v2733_v26 = vsel %vm1358_vm2, %v5332_v25, 0.0 }
 0xd03   : > { %2734 = vadd.xlane.f32.xlu0 %v2733_v26 }
 0xd19   : > { %2903 = vrot.lane.b32.xlu0 %v6560_v31, %s5887_s29 }
 0xd88   : > { %v2732_v28 = vpop.xlane.xlu0 %2731 }
 0xd89   : > { %5333 = vrcp.f32 %v2732_v28 }
 0xd8c   : > { %v2735_v29 = vpop.xlane.xlu0 %2734 }
 0xd8d   : > { %5335 = vrcp.f32 %v2735_v29 }
 0xd90   : > { %v2904_v41 = vpop.permute.xlu0 %2903 }
 0xd96   : > { %v5334_v34 = vpop.eup %5333 }
 0xd97   : > { %v2738_v37 = vmul.f32 %v5334_v34, %v5330_v23 }
 0xd99   : > { %5043 = vmatmul.mubr.msk.f32.vlgmr.msra.gmra.mxu1 %vm1358_vm2, %v2738_v37 }
 0xd9a   : > { %v5336_v38 = vpop.eup %5335  ;;  %5051 = vmatpush3.xpose.msk.msra.mxu1 %vm1203_vm1, %v2906_v32  ;;  %5052 = vmatprep.mubr.msk.f32.mxu1 %vm5882_vm0, %v5881_v61 }
 0xd9b   : > { %v2739_v40 = vmul.f32 %v5336_v38, %v5332_v25  ;;  %5060 = vmatprep.subr.mxu1 %v5881_v61 }
 0xd9d   : > { %5048 = vmatmul.mubr.msk.f32.vlgmr.msra.gmra.mxu0 %vm1358_vm2, %v2739_v40  ;;  %5053 = vmatmul.mubr.msk.f32.vlgmr.msra.gmra.mxu1 %vm1203_vm1, %v2904_v41 }
 0xd9e   : > { %5056 = vmatpush3.xpose.msk.msra.mxu0 %vm1203_vm1, %v2984_v39  ;;  %5057 = vmatprep.mubr.msk.f32.mxu0 %vm5882_vm0, %v5881_v61 }
 0xd9f   : > { %5065 = vmatprep.subr.mxu0 %v5881_v61  ;;  %5062 = vmatprep.mubr.msk.f32.mxu1 %vm5882_vm0, %v5881_v61 }
 0xda1   : > { %5058 = vmatmul.mubr.msk.f32.vlgmr.msra.gmra.mxu0 %vm1203_vm1, %v2982_v42 }
 0xda2   : > { %5067 = vmatprep.mubr.msk.f32.mxu0 %vm5882_vm0, %v5881_v61 }
 0xe59   : > { %v6762_v43 = vpop.f32.mrf.mxu1 }
 0xe5b   : > { %v5044_v44 = vpop.f32.mrf.mxu1 }
 0xe5d   : > { %v6764_v46 = vpop.f32.mrf.mxu0  ;;  %v2977_v48 = vpop.f32.mrf.mxu1 }
 0xe5e   : > { %v3059_v49 = vmul.f32 0.25, %v2977_v48 }
 0xe5f   : > { %v5049_v50 = vpop.f32.mrf.mxu0  ;;  %v5054_v51 = vpop.f32.mrf.mxu1 }
 0xe60   : > { %v3061_v52 = vsel %vm1358_vm2, %v3059_v49, -inf }
 0xe61   : > { %3062 = vmax.xlane.f32.xlu0 %v3061_v52  ;;  %v3055_v53 = vpop.f32.mrf.mxu0 }
 0xe62   : > { %v3060_v54 = vmul.f32 0.25, %v3055_v53 }
 0xe63   : > { %v5059_v55 = vpop.f32.mrf.mxu0 }
 0xe64   : > { %v3064_v56 = vsel %vm1358_vm2, %v3060_v54, -inf }
 0xe65   : > { %3065 = vmax.xlane.f32.xlu1 %v3064_v56 }
 0xe76   : > { %3159 = vrot.lane.b32.xlu1 %v6556_v30, %s5887_s29 }
 0xe77   : > { %3083 = vrot.lane.b32.xlu0 %v6574_v36, %s5887_s29 }
 0xe7a   : > { %3248 = vrot.lane.b32.xlu1 %v6554_v27, %s5888_s23 }
 0xe7e   : > { %3326 = vrot.lane.b32.xlu1 %v6563_v33, %s5888_s23 }
 0xe82   : > { %3324 = vrot.lane.b32.xlu1 %v6571_v35, %s5888_s23 }
 0xeea   : > { %v3063_v57 = vpop.xlane.xlu0 %3062 }
 0xeeb   : > { %v3067_v58 = vsub.f32 %v3059_v49, %v3063_v57 }
 0xeed   : > { %v3069_v59 = vmul.f32 1.442695, %v3067_v58 }
 0xeee   : > { %v3084_v60 = vpop.permute.xlu0 %3083  ;;  %v3066_v63 = vpop.xlane.xlu1 %3065 }
 0xeef   : > { %5337 = vpow2.f32 %v3069_v59  ;;  %v3068_v1 = vsub.f32 %v3060_v54, %v3066_v63  ;;  %5061 = vmatpush3.msra.mxu1 %v3084_v60 }
 0xef0   : > { %5070 = vmatprep.subr.mxu1 %v5881_v61 }
 0xef1   : > { %v3071_v2 = vmul.f32 1.442695, %v3068_v1 }
 0xef2   : > { %v3160_v3 = vpop.permute.xlu1 %3159 }
 0xef3   : > { %5339 = vpow2.f32 %v3071_v2  ;;  %5066 = vmatpush3.msra.mxu0 %v3160_v3 }
 0xef4   : > { %5075 = vmatprep.subr.mxu0 %v5881_v61 }
 0xef6   : > { %v3249_v10 = vpop.permute.xlu1 %3248 }
 0xefa   : > { %v3327_v14 = vpop.permute.xlu1 %3326 }
 0xefc   : > { %v5338_v4 = vpop.eup %5337 }
 0xefd   : > { %v3073_v5 = vsel %vm1358_vm2, %v5338_v4, 0.0 }
 0xefe   : > { %3074 = vadd.xlane.f32.xlu0 %v3073_v5  ;;  %v3325_v22 = vpop.permute.xlu1 %3324 }
 0xf00   : > { %v5340_v6 = vpop.eup %5339 }
 0xf01   : > { %v3076_v7 = vsel %vm1358_vm2, %v5340_v6, 0.0 }
 0xf02   : > { %3077 = vadd.xlane.f32.xlu0 %v3076_v7 }
 0xf18   : > { %3246 = vrot.lane.b32.xlu0 %v6560_v31, %s5888_s23 }
 0xf87   : > { %v3075_v8 = vpop.xlane.xlu0 %3074 }
 0xf88   : > { %5341 = vrcp.f32 %v3075_v8 }
 0xf8b   : > { %v3078_v9 = vpop.xlane.xlu0 %3077 }
 0xf8c   : > { %5343 = vrcp.f32 %v3078_v9 }
 0xf8f   : > { %v3247_v19 = vpop.permute.xlu0 %3246 }
 0xf95   : > { %v5342_v11 = vpop.eup %5341 }
 0xf96   : > { %v3081_v12 = vmul.f32 %v5342_v11, %v5338_v4 }
 0xf98   : > { %5063 = vmatmul.mubr.msk.f32.vlgmr.msra.gmra.mxu1 %vm1358_vm2, %v3081_v12 }
 0xf99   : > { %v5344_v13 = vpop.eup %5343  ;;  %5071 = vmatpush3.xpose.msk.msra.mxu1 %vm1203_vm1, %v3249_v10  ;;  %5072 = vmatprep.mubr.msk.f32.mxu1 %vm5882_vm0, %v5881_v61 }
 0xf9a   : > { %v3082_v15 = vmul.f32 %v5344_v13, %v5340_v6  ;;  %5080 = vmatprep.subr.mxu1 %v5881_v61 }
 0xf9c   : > { %5068 = vmatmul.mubr.msk.f32.vlgmr.msra.gmra.mxu0 %vm1358_vm2, %v3082_v15  ;;  %5073 = vmatmul.mubr.msk.f32.vlgmr.msra.gmra.mxu1 %vm1203_vm1, %v3247_v19 }
 0xf9d   : > { %5076 = vmatpush3.xpose.msk.msra.mxu0 %vm1203_vm1, %v3327_v14  ;;  %5077 = vmatprep.mubr.msk.f32.mxu0 %vm5882_vm0, %v5881_v61 }
 0xf9e   : > { %5085 = vmatprep.subr.mxu0 %v5881_v61  ;;  %5082 = vmatprep.mubr.msk.f32.mxu1 %vm5882_vm0, %v5881_v61 }
 0xfa0   : > { %5078 = vmatmul.mubr.msk.f32.vlgmr.msra.gmra.mxu0 %vm1203_vm1, %v3325_v22 }
 0xfa1   : > { %5087 = vmatprep.mubr.msk.f32.mxu0 %vm5882_vm0, %v5881_v61 }
0x1058   : > { %v6800_v23 = vpop.f32.mrf.mxu1 }
0x105a   : > { %v5064_v24 = vpop.f32.mrf.mxu1 }
0x105c   : > { %v6802_v25 = vpop.f32.mrf.mxu0  ;;  %v3320_v26 = vpop.f32.mrf.mxu1 }
0x105d   : > { %v3402_v28 = vmul.f32 0.25, %v3320_v26 }
0x105e   : > { %v5069_v29 = vpop.f32.mrf.mxu0  ;;  %v5074_v32 = vpop.f32.mrf.mxu1 }
0x105f   : > { %v3404_v34 = vsel %vm1358_vm2, %v3402_v28, -inf }
0x1060   : > { %3405 = vmax.xlane.f32.xlu0 %v3404_v34  ;;  %v3398_v37 = vpop.f32.mrf.mxu0 }
0x1061   : > { %v3403_v38 = vmul.f32 0.25, %v3398_v37 }
0x1062   : > { %v5079_v39 = vpop.f32.mrf.mxu0 }
0x1063   : > { %v3407_v40 = vsel %vm1358_vm2, %v3403_v38, -inf }
0x1064   : > { %3408 = vmax.xlane.f32.xlu1 %v3407_v40 }
0x1075   : > { %3502 = vrot.lane.b32.xlu1 %v6556_v30, %s5888_s23 }
0x1076   : > { %3426 = vrot.lane.b32.xlu0 %v6574_v36, %s5888_s23 }
0x1079   : > { %3591 = vrot.lane.b32.xlu1 %v6554_v27, %s5889_s2 }
0x107d   : > { %3669 = vrot.lane.b32.xlu1 %v6563_v33, %s5889_s2 }
0x1081   : > { %3667 = vrot.lane.b32.xlu1 %v6571_v35, %s5889_s2 }
0x10e9   : > { %v3406_v41 = vpop.xlane.xlu0 %3405 }
0x10ea   : > { %v3410_v42 = vsub.f32 %v3402_v28, %v3406_v41 }
0x10ec   : > { %v3412_v44 = vmul.f32 1.442695, %v3410_v42 }
0x10ed   : > { %v3427_v48 = vpop.permute.xlu0 %3426  ;;  %v3409_v49 = vpop.xlane.xlu1 %3408 }
0x10ee   : > { %5345 = vpow2.f32 %v3412_v44  ;;  %v3411_v50 = vsub.f32 %v3403_v38, %v3409_v49  ;;  %5081 = vmatpush3.msra.mxu1 %v3427_v48  ;;  %v3949_v49 = vld [vmem:[%s6420_s7 + $0x78] sm:$0xff] }
0x10ef   : > { %5090 = vmatprep.subr.mxu1 %v5881_v61 }
0x10f0   : > { %v3414_v51 = vmul.f32 1.442695, %v3411_v50  ;;  %v3948_v50 = vld [vmem:[%s6420_s7 + $0x70] sm:$0xff] }
0x10f1   : > { %v3503_v52 = vpop.permute.xlu1 %3502 }
0x10f2   : > { %5347 = vpow2.f32 %v3414_v51  ;;  %5086 = vmatpush3.msra.mxu0 %v3503_v52  ;;  %v3947_v51 = vld [vmem:[%s6420_s7 + $0x68] sm:$0xff]  ;;  %v3946_v52 = vld [vmem:[%s6420_s7 + $0x60] sm:$0xff] }
0x10f3   : > { %5095 = vmatprep.subr.mxu0 %v5881_v61 }
0x10f5   : > { %v3592_v56 = vpop.permute.xlu1 %3591 }
0x10f9   : > { %v3670_v60 = vpop.permute.xlu1 %3669 }
0x10fb   : > { %v5346_v27 = vpop.eup %5345 }
0x10fc   : > { %v3416_v33 = vsel %vm1358_vm2, %v5346_v27, 0.0 }
0x10fd   : > { %3417 = vadd.xlane.f32.xlu0 %v3416_v33  ;;  %v3668_v1 = vpop.permute.xlu1 %3667  ;;  %v3944_v33 = vld [vmem:[%s6420_s7 + $0x50] sm:$0xff] }
0x10ff   : > { %v5348_v35 = vpop.eup %5347 }
0x1100   : > { %v3419_v53 = vsel %vm1358_vm2, %v5348_v35, 0.0 }
0x1101   : > { %3420 = vadd.xlane.f32.xlu0 %v3419_v53  ;;  %v3942_v53 = vld [vmem:[%s6420_s7 + $0x40] sm:$0xff] }
0x1117   : > { %3589 = vrot.lane.b32.xlu0 %v6560_v31, %s5889_s2 }
0x1186   : > { %v3418_v54 = vpop.xlane.xlu0 %3417 }
0x1187   : > { %5349 = vrcp.f32 %v3418_v54  ;;  %v3941_v54 = vld [vmem:[%s6420_s7 + $0x38] sm:$0xff] }
0x118a   : > { %v3421_v55 = vpop.xlane.xlu0 %3420 }
0x118b   : > { %5351 = vrcp.f32 %v3421_v55  ;;  %v3940_v55 = vld [vmem:[%s6420_s7 + $0x30] sm:$0xff] }
0x118e   : > { %v3590_v31 = vpop.permute.xlu0 %3589 }
0x1194   : > { %v5350_v57 = vpop.eup %5349 }
0x1195   : > { %v3424_v58 = vmul.f32 %v5350_v57, %v5346_v27  ;;  %v3945_v27 = vld [vmem:[%s6420_s7 + $0x58] sm:$0xff]  ;;  %v3938_v57 = vld [vmem:[%s6420_s7 + $0x20] sm:$0xff] }
0x1197   : > { %5083 = vmatmul.mubr.msk.f32.vlgmr.msra.gmra.mxu1 %vm1358_vm2, %v3424_v58  ;;  %v3937_v58 = vld [vmem:[%s6420_s7 + $0x18] sm:$0xff] }
0x1198   : > { %v5352_v59 = vpop.eup %5351  ;;  %5091 = vmatpush3.xpose.msk.msra.mxu1 %vm1203_vm1, %v3592_v56  ;;  %5092 = vmatprep.mubr.msk.f32.mxu1 %vm5882_vm0, %v5881_v61  ;;  %v3939_v56 = vld [vmem:[%s6420_s7 + $0x28] sm:$0xff] }
0x1199   : > { %v3425_v63 = vmul.f32 %v5352_v59, %v5348_v35  ;;  %5100 = vmatprep.subr.mxu1 %v5881_v61  ;;  %v3943_v35 = vld [vmem:[%s6420_s7 + $0x48] sm:$0xff]  ;;  %v3936_v59 = vld [vmem:[%s6420_s7 + $0x10] sm:$0xff] }
0x119b   : > { %5088 = vmatmul.mubr.msk.f32.vlgmr.msra.gmra.mxu0 %vm1358_vm2, %v3425_v63  ;;  %5093 = vmatmul.mubr.msk.f32.vlgmr.msra.gmra.mxu1 %vm1203_vm1, %v3590_v31  ;;  %v3934_v63 = vld [vmem:[%s6420_s7] sm:$0xff] }
0x119c   : > { %5096 = vmatpush3.xpose.msk.msra.mxu0 %vm1203_vm1, %v3670_v60  ;;  %5097 = vmatprep.mubr.msk.f32.mxu0 %vm5882_vm0, %v5881_v61  ;;  %v3935_v60 = vld [vmem:[%s6420_s7 + $0x8] sm:$0xff]  ;;  %s7110_s7 = sld [smem:[#allocation40_spill]] }
0x119d   : > { %5105 = vmatprep.subr.mxu0 %v5881_v61  ;;  %5102 = vmatprep.mubr.msk.f32.mxu1 %vm5882_vm0, %v5881_v61 }
0x119f   : > { %5098 = vmatmul.mubr.msk.f32.vlgmr.msra.gmra.mxu0 %vm1203_vm1, %v3668_v1 }
0x11a0   : > { %5107 = vmatprep.mubr.msk.f32.mxu0 %vm5882_vm0, %v5881_v61 }
0x11a2   : > { %p4766_p4 = scmp.ne.s32.totalorder %s7110_s7, 3 }
0x1257   : > { %v3498_v2 = vpop.f32.mrf.mxu1 }
0x1259   : > { %v5084_v3 = vpop.f32.mrf.mxu1 }
0x125b   : > { %v3574_v4 = vpop.f32.mrf.mxu0  ;;  %v3663_v5 = vpop.f32.mrf.mxu1 }
0x125c   : > { %v3745_v6 = vmul.f32 0.25, %v3663_v5 }
0x125d   : > { %v5089_v7 = vpop.f32.mrf.mxu0  ;;  %v5094_v8 = vpop.f32.mrf.mxu1 }
0x125e   : > { %v3747_v9 = vsel %vm1358_vm2, %v3745_v6, -inf  ;;  %v4762_v8 = vld [vmem:[%s777_s1] ss:$0 sm:$0xff] }
0x125f   : > { %3748 = vmax.xlane.f32.xlu0 %v3747_v9  ;;  %v3741_v10 = vpop.f32.mrf.mxu0 }
0x1260   : > { %v3746_v11 = vmul.f32 0.25, %v3741_v10 }
0x1261   : > { %v5099_v12 = vpop.f32.mrf.mxu0 }
0x1262   : > { %v3750_v13 = vsel %vm1358_vm2, %v3746_v11, -inf  ;;  %v5373_v12 = vld [vmem:[#allocation2 + $0x8] sm:$0xff] }
0x1263   : > { %3751 = vmax.xlane.f32.xlu1 %v3750_v13 }
0x1274   : > { %3845 = vrot.lane.b32.xlu1 %v6556_v30, %s5889_s2 }
0x1278   : > { %1865 = vrot.lane.b32.xlu1 %v6648_v45, %s5889_s2 }
0x127c   : > { %1867 = vrot.lane.b32.xlu1 %v6650_v47, %s5889_s2 }
0x1280   : > { %2210 = vrot.lane.b32.xlu1 %v6688_v20, %s5888_s23 }
0x1284   : > { %2553 = vrot.lane.b32.xlu1 %v6726_v0, %s5887_s29 }
0x1288   : > { %2896 = vrot.lane.b32.xlu1 %v6764_v46, %s5886_s24 }
0x128c   : > { %3239 = vrot.lane.b32.xlu1 %v6802_v25, %s5885_s0 }
0x1290   : > { %3582 = vrot.lane.b32.xlu1 %v3574_v4, %s5884_s5 }
0x12e8   : > { %v3749_v30 = vpop.xlane.xlu0 %3748 }
0x12e9   : > { %v3753_v14 = vsub.f32 %v3745_v6, %v3749_v30 }
0x12eb   : > { %v3755_v45 = vmul.f32 1.442695, %v3753_v14  ;;  %v5374_v14 = vld [vmem:[#allocation2] sm:$0xff] }
0x12ec   : > { %v3752_v15 = vpop.xlane.xlu1 %3751 }
0x12ed   : > { %5353 = vpow2.f32 %v3755_v45  ;;  %v3754_v47 = vsub.f32 %v3746_v11, %v3752_v15  ;;  %v4105_v15 = vld [vmem:[%s6437_s25 + $0xf8] sm:$0xff] }
0x12ef   : > { %v3757_v19 = vmul.f32 1.442695, %v3754_v47  ;;  %v4104_v47 = vld [vmem:[%s6437_s25 + $0xf0] sm:$0xff] }
0x12f0   : > { %v3846_v22 = vpop.permute.xlu1 %3845 }
0x12f1   : > { %5355 = vpow2.f32 %v3757_v19  ;;  %5106 = vmatpush3.msra.mxu0 %v3846_v22  ;;  %v4103_v19 = vld [vmem:[%s6437_s25 + $0xe8] sm:$0xff]  ;;  %v4102_v22 = vld [vmem:[%s6437_s25 + $0xe0] sm:$0xff] }
0x12f2   : > { %4118 = vmatprep.subr.mxu0 %v4105_v15 }
0x12f4   : > { %v1866_v20 = vpop.permute.xlu1 %1865 }
0x12f5   : > { %1872 = vst.msk [vmem:[#allocation3] sm:$0xff] %vm1871_vm3, %v1866_v20  ;;  %v4101_v20 = vld [vmem:[%s6437_s25 + $0xd8] sm:$0xff] }
0x12f8   : > { %v1868_v0 = vpop.permute.xlu1 %1867 }
0x12f9   : > { %1873 = vst.msk [vmem:[#allocation3 + $0x8] sm:$0xff] %vm1871_vm3, %v1868_v0  ;;  %v4100_v0 = vld [vmem:[%s6437_s25 + $0xd0] sm:$0xff] }
0x12fa   : > { %v5354_v46 = vpop.eup %5353 }
0x12fb   : > { %v3759_v24 = vsel %vm1358_vm2, %v5354_v46, 0.0 }
0x12fc   : > { %3760 = vadd.xlane.f32.xlu0 %v3759_v24  ;;  %v2211_v25 = vpop.permute.xlu1 %2210  ;;  %v4098_v24 = vld [vmem:[%s6437_s25 + $0xc0] sm:$0xff] }
0x12fd   : > { %2216 = vst.msk [vmem:[#allocation3 + $0x8] sm:$0xff] %vm2214_vm4, %v2211_v25 }
0x12fe   : > { %v5356_v26 = vpop.eup %5355 }
0x12ff   : > { %v3762_v28 = vsel %vm1358_vm2, %v5356_v26, 0.0 }
0x1300   : > { %3763 = vadd.xlane.f32.xlu0 %v3762_v28  ;;  %v2554_v29 = vpop.permute.xlu1 %2553 }
0x1301   : > { %2559 = vst.msk [vmem:[#allocation3 + $0x8] sm:$0xff] %vm2557_vm5, %v2554_v29 }
0x1304   : > { %v2897_v32 = vpop.permute.xlu1 %2896 }
0x1305   : > { %2902 = vst.msk [vmem:[#allocation3 + $0x8] sm:$0xff] %vm2900_vm6, %v2897_v32 }
0x1308   : > { %v3240_v34 = vpop.permute.xlu1 %3239 }
0x1309   : > { %3245 = vst.msk [vmem:[#allocation3 + $0x8] sm:$0xff] %vm3243_vm7, %v3240_v34 }
0x130c   : > { %v3583_v37 = vpop.permute.xlu1 %3582 }
0x130d   : > { %3588 = vst.msk [vmem:[#allocation3 + $0x8] sm:$0xff] %vm3586_vm8, %v3583_v37 }
0x1316   : > { %3769 = vrot.lane.b32.xlu0 %v6574_v36, %s5889_s2 }
0x131a   : > { %2208 = vrot.lane.b32.xlu0 %v6686_v16, %s5888_s23 }
0x131e   : > { %2551 = vrot.lane.b32.xlu0 %v6724_v62, %s5887_s29 }
0x1322   : > { %2894 = vrot.lane.b32.xlu0 %v6762_v43, %s5886_s24 }
0x1326   : > { %3237 = vrot.lane.b32.xlu0 %v6800_v23, %s5885_s0 }
0x132a   : > { %3580 = vrot.lane.b32.xlu0 %v3498_v2, %s5884_s5 }
0x1385   : > { %v3761_v38 = vpop.xlane.xlu0 %3760 }
0x1386   : > { %5357 = vrcp.f32 %v3761_v38 }
0x1389   : > { %v3764_v39 = vpop.xlane.xlu0 %3763 }
0x138a   : > { %5359 = vrcp.f32 %v3764_v39  ;;  %v4097_v39 = vld [vmem:[%s6437_s25 + $0xb8] sm:$0xff] }
0x138d   : > { %v3770_v40 = vpop.permute.xlu0 %3769 }
0x138e   : > { %5101 = vmatpush3.msra.mxu1 %v3770_v40  ;;  %v4096_v40 = vld [vmem:[%s6437_s25 + $0xb0] sm:$0xff] }
0x138f   : > { %5110 = vmatprep.subr.mxu1 %v3949_v49 }
0x1391   : > { %v2209_v36 = vpop.permute.xlu0 %2208 }
0x1392   : > { %2215 = vst.msk [vmem:[#allocation3] sm:$0xff] %vm2214_vm4, %v2209_v36  ;;  %v4095_v36 = vld [vmem:[%s6437_s25 + $0xa8] sm:$0xff] }
0x1393   : > { %v5358_v16 = vpop.eup %5357 }
0x1394   : > { %v3767_v62 = vmul.f32 %v5358_v16, %v5354_v46  ;;  %v4099_v46 = vld [vmem:[%s6437_s25 + $0xc8] sm:$0xff]  ;;  %v4094_v16 = vld [vmem:[%s6437_s25 + $0xa0] sm:$0xff] }
0x1395   : > { %v2552_v41 = vpop.permute.xlu0 %2551 }
0x1396   : > { %2558 = vst.msk [vmem:[#allocation3] sm:$0xff] %vm2557_vm5, %v2552_v41  ;;  %5103 = vmatmul.mubr.msk.f32.vlgmr.msra.gmra.mxu1 %vm1358_vm2, %v3767_v62  ;;  %v4093_v62 = vld [vmem:[%s6437_s25 + $0x98] sm:$0xff]  ;;  %v4092_v41 = vld [vmem:[%s6437_s25 + $0x90] sm:$0xff] }
0x1397   : > { %v5360_v43 = vpop.eup %5359  ;;  %5111 = vmatpush3.msra.mxu1 %v3949_v49  ;;  %v4086_v49 = vld [vmem:[%s6437_s25 + $0x60] sm:$0xff] }
0x1398   : > { %v3768_v23 = vmul.f32 %v5360_v43, %v5356_v26  ;;  %5112 = vmatprep.subr.mxu1 %v3948_v50  ;;  %v4091_v43 = vld [vmem:[%s6437_s25 + $0x88] sm:$0xff] }
0x1399   : > { %v2895_v42 = vpop.permute.xlu0 %2894  ;;  %5113 = vmatpush3.msra.mxu1 %v3948_v50  ;;  %v4085_v50 = vld [vmem:[%s6437_s25 + $0x58] sm:$0xff] }
0x139a   : > { %2901 = vst.msk [vmem:[#allocation3] sm:$0xff] %vm2900_vm6, %v2895_v42  ;;  %5108 = vmatmul.mubr.msk.f32.vlgmr.msra.gmra.mxu0 %vm1358_vm2, %v3768_v23  ;;  %5114 = vmatprep.subr.mxu1 %v3947_v51  ;;  %v4090_v23 = vld [vmem:[%s6437_s25 + $0x80] sm:$0xff]  ;;  %v4089_v42 = vld [vmem:[%s6437_s25 + $0x78] sm:$0xff] }
0x139b   : > { %4182 = vmatprep.mubr.f32.mxu0 %v5881_v61  ;;  %5115 = vmatpush3.msra.mxu1 %v3947_v51  ;;  %v4084_v51 = vld [vmem:[%s6437_s25 + $0x50] sm:$0xff] }
0x139c   : > { %5116 = vmatprep.subr.mxu1 %v3946_v52  ;;  %4119 = vmatpush1.msra.mxu0 %v4104_v47 }
0x139d   : > { %v3238_v44 = vpop.permute.xlu0 %3237  ;;  %5117 = vmatpush3.msra.mxu1 %v3946_v52  ;;  %4120 = vmatprep.subr.mxu0 %v4103_v19  ;;  %v4083_v52 = vld [vmem:[%s6437_s25 + $0x48] sm:$0xff] }
0x139e   : > { %3244 = vst.msk [vmem:[#allocation3] sm:$0xff] %vm3243_vm7, %v3238_v44  ;;  %5118 = vmatprep.subr.mxu1 %v3945_v27  ;;  %4121 = vmatpush1.msra.mxu0 %v4102_v22  ;;  %v4088_v44 = vld [vmem:[%s6437_s25 + $0x70] sm:$0xff] }
0x139f   : > { %5119 = vmatpush3.msra.mxu1 %v3945_v27  ;;  %4122 = vmatprep.subr.mxu0 %v4101_v20  ;;  %v4082_v27 = vld [vmem:[%s6437_s25 + $0x40] sm:$0xff] }
0x13a0   : > { %5120 = vmatprep.subr.mxu1 %v3944_v33  ;;  %4123 = vmatpush1.msra.mxu0 %v4100_v0  ;;  %v4243_v20 = vld [vmem:[%s6446_s28 + $0xe0] sm:$0xff] }
0x13a1   : > { %v3581_v48 = vpop.permute.xlu0 %3580  ;;  %5121 = vmatpush3.msra.mxu1 %v3944_v33  ;;  %4124 = vmatprep.subr.mxu0 %v4099_v46  ;;  %v4081_v33 = vld [vmem:[%s6437_s25 + $0x38] sm:$0xff]  ;;  %v4227_v0 = vld [vmem:[%s6446_s28 + $0x60] sm:$0xff] }
0x13a2   : > { %3587 = vst.msk [vmem:[#allocation3] sm:$0xff] %vm3586_vm8, %v3581_v48  ;;  %5122 = vmatprep.subr.mxu1 %v3943_v35  ;;  %4125 = vmatpush1.msra.mxu0 %v4098_v24  ;;  %v4087_v48 = vld [vmem:[%s6437_s25 + $0x68] sm:$0xff]  ;;  %v4242_v46 = vld [vmem:[%s6446_s28 + $0xd8] sm:$0xff] }
0x13a3   : > { %5123 = vmatpush3.msra.mxu1 %v3943_v35  ;;  %4126 = vmatprep.subr.mxu0 %v4097_v39  ;;  %v4080_v35 = vld [vmem:[%s6437_s25 + $0x30] sm:$0xff]  ;;  %v4226_v24 = vld [vmem:[%s6446_s28 + $0x58] sm:$0xff] }
0x13a4   : > { %5124 = vmatprep.subr.mxu1 %v3942_v53  ;;  %4127 = vmatpush1.msra.mxu0 %v4096_v40  ;;  %v4221_v39 = vld [vmem:[%s6446_s28 + $0x30] sm:$0xff]  ;;  %v4236_v40 = vld [vmem:[%s6446_s28 + $0xa8] sm:$0xff] }
0x13a5   : > { %5125 = vmatpush3.msra.mxu1 %v3942_v53  ;;  %4128 = vmatprep.subr.mxu0 %v4095_v36  ;;  %v4079_v53 = vld [vmem:[%s6437_s25 + $0x28] sm:$0xff] }
0x13a6   : > { %5126 = vmatprep.subr.mxu1 %v3941_v54  ;;  %4129 = vmatpush1.msra.mxu0 %v4094_v16  ;;  %v4220_v36 = vld [vmem:[%s6446_s28 + $0x28] sm:$0xff]  ;;  %v4235_v16 = vld [vmem:[%s6446_s28 + $0xa0] sm:$0xff] }
0x13a7   : > { %5127 = vmatpush3.msra.mxu1 %v3941_v54  ;;  %4130 = vmatprep.subr.mxu0 %v4093_v62  ;;  %v4078_v54 = vld [vmem:[%s6437_s25 + $0x20] sm:$0xff] }
0x13a8   : > { %5128 = vmatprep.subr.mxu1 %v3940_v55  ;;  %4131 = vmatpush1.msra.mxu0 %v4092_v41  ;;  %v4219_v62 = vld [vmem:[%s6446_s28 + $0x20] sm:$0xff]  ;;  %v4234_v41 = vld [vmem:[%s6446_s28 + $0x98] sm:$0xff] }
0x13a9   : > { %5129 = vmatpush3.msra.mxu1 %v3940_v55  ;;  %4132 = vmatprep.subr.mxu0 %v4091_v43  ;;  %v4077_v55 = vld [vmem:[%s6437_s25 + $0x18] sm:$0xff] }
0x13aa   : > { %5130 = vmatprep.subr.mxu1 %v3939_v56  ;;  %4133 = vmatpush1.msra.mxu0 %v4090_v23  ;;  %v4218_v43 = vld [vmem:[%s6446_s28 + $0x18] sm:$0xff]  ;;  %v4233_v23 = vld [vmem:[%s6446_s28 + $0x90] sm:$0xff] }
0x13ab   : > { %5131 = vmatpush3.msra.mxu1 %v3939_v56  ;;  %4134 = vmatprep.subr.mxu0 %v4089_v42  ;;  %v4076_v56 = vld [vmem:[%s6437_s25 + $0x10] sm:$0xff] }
0x13ac   : > { %5132 = vmatprep.subr.mxu1 %v3938_v57  ;;  %4135 = vmatpush1.msra.mxu0 %v4088_v44  ;;  %v4217_v42 = vld [vmem:[%s6446_s28 + $0x10] sm:$0xff]  ;;  %v4232_v44 = vld [vmem:[%s6446_s28 + $0x88] sm:$0xff] }
0x13ad   : > { %5133 = vmatpush3.msra.mxu1 %v3938_v57  ;;  %4136 = vmatprep.subr.mxu0 %v4087_v48  ;;  %v4075_v57 = vld [vmem:[%s6437_s25 + $0x8] sm:$0xff] }
0x13ae   : > { %5134 = vmatprep.subr.mxu1 %v3937_v58  ;;  %4137 = vmatpush1.msra.mxu0 %v4086_v49  ;;  %v4216_v48 = vld [vmem:[%s6446_s28 + $0x8] sm:$0xff]  ;;  %v4231_v49 = vld [vmem:[%s6446_s28 + $0x80] sm:$0xff] }
0x13af   : > { %5135 = vmatpush3.msra.mxu1 %v3937_v58  ;;  %4138 = vmatprep.subr.mxu0 %v4085_v50  ;;  %v4074_v58 = vld [vmem:[%s6437_s25] sm:$0xff] }
0x13b0   : > { %5136 = vmatprep.subr.mxu1 %v3936_v59  ;;  %4139 = vmatpush1.msra.mxu0 %v4084_v51  ;;  %v4215_v50 = vld [vmem:[%s6446_s28] sm:$0xff]  ;;  %v4106_v51 = vld [vmem:[%s6440_s19] sm:$0x3] }
0x13b1   : > { %5137 = vmatpush3.msra.mxu1 %v3936_v59  ;;  %4140 = vmatprep.subr.mxu0 %v4083_v52  ;;  %v4246_v59 = vld [vmem:[%s6446_s28 + $0xf8] sm:$0xff]  ;;  %v4111_v52 = vrot.slane %v4106_v51, %v1038_v21 }
0x13b2   : > { %5138 = vmatprep.subr.mxu1 %v3935_v60  ;;  %4141 = vmatpush1.msra.mxu0 %v4082_v27  ;;  %v4115_v27 = vrot.slane %v4106_v51, %v1042_v18 }
0x13b3   : > { %5139 = vmatpush3.msra.mxu1 %v3935_v60  ;;  %4142 = vmatprep.subr.mxu0 %v4081_v33  ;;  %v4230_v60 = vld [vmem:[%s6446_s28 + $0x78] sm:$0xff] }
0x13b4   : > { %5140 = vmatprep.subr.mxu1 %v3934_v63  ;;  %4143 = vmatpush1.msra.mxu0 %v4080_v35 }
0x13b5   : > { %5141 = vmatpush3.msra.mxu1 %v3934_v63  ;;  %4144 = vmatprep.subr.mxu0 %v4079_v53  ;;  %v4245_v63 = vld [vmem:[%s6446_s28 + $0xf0] sm:$0xff] }
0x13b6   : > { %4145 = vmatpush1.msra.mxu0 %v4078_v54  ;;  %4877 = vmatprep.subr.mxu1 %v4246_v59 }
0x13b7   : > { %4146 = vmatprep.subr.mxu0 %v4077_v55 }
0x13b8   : > { %4147 = vmatpush1.msra.mxu0 %v4076_v56 }
0x13b9   : > { %4148 = vmatprep.subr.mxu0 %v4075_v57 }
0x13ba   : > { %4149 = vmatpush1.msra.mxu0 %v4074_v58 }
0x1456   : > { %v3841_v31 = vpop.f32.mrf.mxu1 }
0x1457   : > { %3923 = vrot.lane.b32.xlu0 %v3841_v31, %s5883_s16  ;;  %v4229_v31 = vld [vmem:[%s6446_s28 + $0x70] sm:$0xff] }
0x1458   : > { %v5104_v1 = vpop.f32.mrf.mxu1 }
0x1459   : > { %v4244_v1 = vld [vmem:[%s6446_s28 + $0xe8] sm:$0xff] }
0x145a   : > { %v3917_v2 = vpop.f32.mrf.mxu0 }
0x145b   : > { %3925 = vrot.lane.b32.xlu1 %v3917_v2, %s5883_s16  ;;  %v4228_v2 = vld [vmem:[%s6446_s28 + $0x68] sm:$0xff] }
0x145c   : > { %v5109_v3 = vpop.f32.mrf.mxu0 }
0x14c9   : > { %v3924_v4 = vpop.permute.xlu0 %3923 }
0x14ca   : > { %3930 = vst.msk [vmem:[#allocation3] sm:$0xff] %vm3929_vm9, %v3924_v4 }
0x14cd   : > { %v3926_v5 = vpop.permute.xlu1 %3925 }
0x14ce   : > { %3931 = vst.msk [vmem:[#allocation3 + $0x8] sm:$0xff] %vm3929_vm9, %v3926_v5 }
0x14d1   : > { %v3932_v6 = vld [vmem:[#allocation3] sm:$0xff] }
0x14d2   : > { %5142 = vmatprep.mubr.f32.mxu1 %v3932_v6 }
0x14d5   : > { %v3933_v7 = vld [vmem:[#allocation3 + $0x8] sm:$0xff] }
0x14d6   : > { %5143 = vmatmul.mubr.f32.vlgmr.msra.gmra.mxu1 %v3933_v7 }
0x14d7   : > { %4878 = vmatpush3.msra.mxu1 %v4230_v60 }
0x14d8   : > { %4879 = vmatprep.subr.mxu1 %v4245_v63 }
0x14d9   : > { %4880 = vmatpush3.msra.mxu1 %v4229_v31 }
0x14da   : > { %4881 = vmatprep.subr.mxu1 %v4244_v1 }
0x14db   : > { %4882 = vmatpush3.msra.mxu1 %v4228_v2 }
0x14dc   : > { %4883 = vmatprep.subr.mxu1 %v4243_v20 }
0x14dd   : > { %4884 = vmatpush3.msra.mxu1 %v4227_v0 }
0x14de   : > { %4885 = vmatprep.subr.mxu1 %v4242_v46 }
0x14df   : > { %4886 = vmatpush3.msra.mxu1 %v4226_v24 }
0x1596   : > { %v5144_v9 = vpop.f32.mrf.mxu1 }
0x1597   : > { %v4029_v10 = vadd.f32 %v5144_v9, %v4762_v8 }
0x1598   : > { %v4023_v11 = vpop.f32.mrf.mxu1 }
0x1599   : > { %v6901_v13 = vadd.f32 %v5373_v12, %v4029_v10  ;;  %v4024_v30 = vadd.f32 %v4762_v8, %v4023_v11  ;;  %v4763_v10 = vld [vmem:[%s785_s30] ss:$0 sm:$0xff] }
0x159a   : > { %v4764_v12 = vld [vmem:[%s793_s26] ss:$0 sm:$0xff] }
0x159b   : > { %v6903_v45 = vadd.f32 %v5374_v14, %v4024_v30  ;;  %4038 = vadd.xlane.f32.xlu1 %v6901_v13 }
0x159d   : > { %4036 = vadd.xlane.f32.xlu0 %v6903_v45 }
0x1624   : > { %v4039_v25 = vpop.xlane.xlu1 %4038 }
0x1625   : > { %v4041_v28 = vmul.f32 0.0078125, %v4039_v25  ;;  %v4241_v25 = vld [vmem:[%s6446_s28 + $0xd0] sm:$0xff] }
0x1626   : > { %v4037_v26 = vpop.xlane.xlu0 %4036  ;;  %4887 = vmatprep.subr.mxu1 %v4241_v25 }
0x1627   : > { %v4040_v29 = vmul.f32 0.0078125, %v4037_v26  ;;  %v6919_v34 = vsub.f32 %v6901_v13, %v4041_v28  ;;  %v4225_v26 = vld [vmem:[%s6446_s28 + $0x50] sm:$0xff]  ;;  %v4224_v28 = vld [vmem:[%s6446_s28 + $0x48] sm:$0xff] }
0x1628   : > { %4888 = vmatpush3.msra.mxu1 %v4225_v26 }
0x1629   : > { %v6916_v32 = vsub.f32 %v6903_v45, %v4040_v29  ;;  %v4045_v38 = vmul.f32 %v6919_v34, %v6919_v34  ;;  %v4239_v29 = vld [vmem:[%s6446_s28 + $0xc0] sm:$0xff] }
0x162b   : > { %v4044_v37 = vmul.f32 %v6916_v32, %v6916_v32 }
0x162d   : > { %4046 = vadd.xlane.f32.xlu0 %v4044_v37  ;;  %v4222_v37 = vld [vmem:[%s6446_s28 + $0x38] sm:$0xff] }
0x1631   : > { %4048 = vadd.xlane.f32.xlu0 %v4045_v38  ;;  %v4237_v38 = vld [vmem:[%s6446_s28 + $0xb0] sm:$0xff] }
0x16b6   : > { %v4047_v3 = vpop.xlane.xlu0 %4046 }
0x16b7   : > { %v4050_v4 = vmul.f32 0.0078125, %v4047_v3 }
0x16b9   : > { %v4052_v5 = vadd.f32 1e-06, %v4050_v4 }
0x16ba   : > { %v4049_v6 = vpop.xlane.xlu0 %4048 }
0x16bb   : > { %5361 = vrsqrt.f32 %v4052_v5  ;;  %v4051_v7 = vmul.f32 0.0078125, %v4049_v6 }
0x16bd   : > { %v4053_v8 = vadd.f32 1e-06, %v4051_v7 }
0x16bf   : > { %5363 = vrsqrt.f32 %v4053_v8 }
0x16c8   : > { %v5362_v9 = vpop.eup %5361 }
0x16c9   : > { %v4056_v11 = vmul.f32 %v5362_v9, %v6916_v32  ;;  %v4223_v32 = vld [vmem:[%s6446_s28 + $0x40] sm:$0xff] }
0x16cb   : > { %v4064_v30 = vmul.f32 %v4763_v10, %v4056_v11 }
0x16cc   : > { %v5364_v14 = vpop.eup %5363 }
0x16cd   : > { %v4072_v15 = vadd.f32 %v4764_v12, %v4064_v30  ;;  %v4057_v47 = vmul.f32 %v5364_v14, %v6919_v34  ;;  %v4238_v34 = vld [vmem:[%s6446_s28 + $0xb8] sm:$0xff] }
0x16cf   : > { %4183 = vmatmul.mubr.f32.vlgmr.msra.gmra.mxu0 %v4072_v15  ;;  %v4065_v19 = vmul.f32 %v4763_v10, %v4057_v47  ;;  %v4765_v15 = vld [vmem:[%s828_s21] ss:$0 sm:$0xff] }
0x16d0   : > { %4188 = vmatprep.mubr.f32.mxu0 %v5881_v61  ;;  %v4240_v61 = vld [vmem:[%s6446_s28 + $0xc8] sm:$0xff] }
0x16d1   : > { %v4073_v22 = vadd.f32 %v4764_v12, %v4065_v19  ;;  %4889 = vmatprep.subr.mxu1 %v4240_v61 }
0x16d2   : > { %4890 = vmatpush3.msra.mxu1 %v4224_v28 }
0x16d3   : > { %4189 = vmatmul.mubr.f32.gmra.mxu0 %v4073_v22  ;;  %4891 = vmatprep.subr.mxu1 %v4239_v29 }
0x16d4   : > { %4892 = vmatpush3.msra.mxu1 %v4223_v32 }
0x16d5   : > { %4893 = vmatprep.subr.mxu1 %v4238_v34 }
0x16d6   : > { %4894 = vmatpush3.msra.mxu1 %v4222_v37 }
0x16d7   : > { %4895 = vmatprep.subr.mxu1 %v4237_v38 }
0x16d8   : > { %4896 = vmatpush3.msra.mxu1 %v4221_v39 }
0x16d9   : > { %4897 = vmatprep.subr.mxu1 %v4236_v40 }
0x16da   : > { %4898 = vmatpush3.msra.mxu1 %v4220_v36 }
0x16db   : > { %4899 = vmatprep.subr.mxu1 %v4235_v16 }
0x16dc   : > { %4900 = vmatpush3.msra.mxu1 %v4219_v62 }
0x16dd   : > { %4901 = vmatprep.subr.mxu1 %v4234_v41 }
0x16de   : > { %4902 = vmatpush3.msra.mxu1 %v4218_v43 }
0x16df   : > { %4903 = vmatprep.subr.mxu1 %v4233_v23 }
0x16e0   : > { %4904 = vmatpush3.msra.mxu1 %v4217_v42 }
0x16e1   : > { %4905 = vmatprep.subr.mxu1 %v4232_v44 }
0x16e2   : > { %4906 = vmatpush3.msra.mxu1 %v4216_v48 }
0x16e3   : > { %4907 = vmatprep.subr.mxu1 %v4231_v49 }
0x16e4   : > { %4908 = vmatpush3.msra.mxu1 %v4215_v50 }
0x178f   : > { %v4184_v33 = vpop.f32.mrf.mxu0 }
0x1790   : > { %v4185_v35 = vadd.f32 %v4184_v33, %v4111_v52 }
0x1791   : > { %v4186_v53 = vpop.f32.mrf.mxu0 }
0x1792   : > { %v4199_v54 = vmul.f32 0.70710677, %v4185_v35  ;;  %v4187_v55 = vadd.f32 %v4186_v53, %v4115_v27  ;;  %v4195_v4 = vmul.f32 0.5, %v4185_v35 }
0x1793   : > { %v4190_v56 = vpop.f32.mrf.mxu0 }
0x1794   : > { %5365 = verf.f32 %v4199_v54  ;;  %v4200_v57 = vmul.f32 0.70710677, %v4187_v55  ;;  %v4191_v58 = vadd.f32 %v4190_v56, %v4111_v52  ;;  %v4196_v18 = vmul.f32 0.5, %v4187_v55 }
0x1795   : > { %v4192_v59 = vpop.f32.mrf.mxu0 }
0x1796   : > { %5367 = verf.f32 %v4200_v57  ;;  %v4201_v60 = vmul.f32 0.70710677, %v4191_v58  ;;  %v4193_v63 = vadd.f32 %v4192_v59, %v4115_v27  ;;  %v4197_v11 = vmul.f32 0.5, %v4191_v58 }
0x1798   : > { %5369 = verf.f32 %v4201_v60  ;;  %v4202_v31 = vmul.f32 0.70710677, %v4193_v63  ;;  %v4198_v9 = vmul.f32 0.5, %v4193_v63 }
0x179a   : > { %5371 = verf.f32 %v4202_v31 }
0x17a1   : > { %v5366_v21 = vpop.eup %5365 }
0x17a2   : > { %v4207_v17 = vadd.f32 1.0, %v5366_v21 }
0x17a3   : > { %v5368_v1 = vpop.eup %5367 }
0x17a4   : > { %v4208_v2 = vadd.f32 1.0, %v5368_v1  ;;  %v4211_v7 = vmul.f32 %v4207_v17, %v4195_v4 }
0x17a5   : > { %v5370_v3 = vpop.eup %5369 }
0x17a6   : > { %v4212_v5 = vmul.f32 %v4208_v2, %v4196_v18  ;;  %v4209_v8 = vadd.f32 1.0, %v5370_v3 }
0x17a7   : > { %v5372_v6 = vpop.eup %5371 }
0x17a8   : > { %4318 = vmatprep.mubr.f32.mxu1 %v4212_v5  ;;  %v4210_v10 = vadd.f32 1.0, %v5372_v6  ;;  %v4213_v30 = vmul.f32 %v4209_v8, %v4197_v11 }
0x17a9   : > { %4319 = vmatmul.mubr.f32.vlgmr.msra.gmra.mxu1 %v4211_v7 }
0x17aa   : > { %v4214_v12 = vmul.f32 %v4210_v10, %v4198_v9 }
0x17ac   : > { %4323 = vmatprep.mubr.f32.mxu1 %v4214_v12 }
0x17ad   : > { %4324 = vmatmul.mubr.f32.gmra.mxu1 %v4213_v30 }
0x1869   : > { %v4909_v14 = vpop.f32.mrf.mxu1 }
0x186b   : > { %v4910_v47 = vpop.f32.mrf.mxu1 }
0x186c   : > { %v4911_v19 = vadd.f32 %v4910_v47, %v4909_v14 }
0x186d   : > { %v4912_v22 = vpop.f32.mrf.mxu1 }
0x186e   : > { %v4321_v20 = vadd.f32 %v4911_v19, %v4765_v15 }
0x186f   : > { %v4913_v0 = vpop.f32.mrf.mxu1 }
0x1870   : > { %v4329_v46 = vadd.f32 %v4321_v20, %v6903_v45  ;;  %v4914_v24 = vadd.f32 %v4913_v0, %v4912_v22 }
0x1872   : > { %4331 = vst [vmem:[#allocation2] sm:$0xff] %v4329_v46  ;;  %v4326_v25 = vadd.f32 %v4914_v24, %v4765_v15  ;;  %4336 = sbr.rel (%p4766_p4) target bundleno = 6574 (0x19ae), region = 148 }
0x1874   : > { %v4330_v26 = vadd.f32 %v4326_v25, %v6901_v13 }
0x1876   : > { %4332 = vst [vmem:[#allocation2 + $0x8] sm:$0xff] %v4330_v26 }
0x1877   : > { %4339 = vadd.xlane.f32.xlu0 %v4329_v46  ;;  %v4767_v43 = vld [vmem:[#allocation24] ss:$0 sm:$0xff]  ;;  %v4768_v42 = vld [vmem:[#allocation25] ss:$0 sm:$0xff] }
0x187b   : > { %4341 = vadd.xlane.f32.xlu0 %v4330_v26 }
0x1900   : > { %v4340_v61 = vpop.xlane.xlu0 %4339 }
0x1901   : > { %v4343_v28 = vmul.f32 0.0078125, %v4340_v61 }
0x1903   : > { %v4345_v29 = vsub.f32 %v4329_v46, %v4343_v28 }
0x1904   : > { %v4342_v32 = vpop.xlane.xlu0 %4341 }
0x1905   : > { %v4344_v34 = vmul.f32 0.0078125, %v4342_v32  ;;  %v4347_v37 = vmul.f32 %v4345_v29, %v4345_v29 }
0x1907   : > { %v4346_v38 = vsub.f32 %v4330_v26, %v4344_v34  ;;  %4349 = vadd.xlane.f32.xlu1 %v4347_v37 }
0x1909   : > { %v4348_v45 = vmul.f32 %v4346_v38, %v4346_v38 }
0x190b   : > { %4351 = vadd.xlane.f32.xlu1 %v4348_v45 }
0x1990   : > { %v4350_v39 = vpop.xlane.xlu1 %4349 }
0x1991   : > { %v4353_v40 = vmul.f32 0.0078125, %v4350_v39 }
0x1993   : > { %v4355_v36 = vadd.f32 1e-06, %v4353_v40 }
0x1994   : > { %v4352_v13 = vpop.xlane.xlu1 %4351 }
0x1995   : > { %5375 = vrsqrt.f32 %v4355_v36  ;;  %v4354_v16 = vmul.f32 0.0078125, %v4352_v13 }
0x1997   : > { %v4356_v62 = vadd.f32 1e-06, %v4354_v16 }
0x1999   : > { %5377 = vrsqrt.f32 %v4356_v62 }
0x19a2   : > { %v5376_v41 = vpop.eup %5375 }
0x19a3   : > { %v4359_v23 = vmul.f32 %v5376_v41, %v4345_v29 }
0x19a5   : > { %v4367_v44 = vmul.f32 %v4767_v43, %v4359_v23 }
0x19a6   : > { %v5378_v48 = vpop.eup %5377 }
0x19a7   : > { %v4375_v49 = vadd.f32 %v4768_v42, %v4367_v44  ;;  %v4360_v50 = vmul.f32 %v5378_v48, %v4346_v38 }
0x19a9   : > { %4377 = vst [vmem:[#allocation27] sm:$0xff] %v4375_v49  ;;  %v4368_v51 = vmul.f32 %v4767_v43, %v4360_v50 }
0x19ab   : > { %v4376_v52 = vadd.f32 %v4768_v42, %v4368_v51 }
0x19ad   : > { %4378 = vst [vmem:[#allocation27 + $0x8] sm:$0xff] %v4376_v52 }
0x19ae PF: > { %s7111_s18 = sld [smem:[#allocation40_spill]]  ;;  %s5890_s1 = smov [#allocation27]  }
0x19af   : > { %s4385_s30 = sshll.u32 %s5890_s1, 4  ;;  %s4386_s30 = int_to_ptr.vmem [resolvable:$true] %s4385_s30 }
0x19b0   : > { %s5765_s26 = scalar_lea.vmem %s4386_s30, 256  ;;  %p5772_p1 = scmp.lt.s32.totalorder %s4386_s30, %s4386_s30 }
0x19b1   : > { %p5766_p8 = scmp.ne.s32.totalorder %s4386_s30, %s5765_s26  ;;  %p5773_p5 = scmp.lt.s32.totalorder %s5765_s26, %s5765_s26 }
0x19b3   : > { %p5774_p0 = por %p5773_p5, %p5772_p1 }
0x19b4   : > { %p5238_p9 = scmp.eq.s32.totalorder %s7111_s18, 3 }
0x19b6   : > { %p5767_p10 = pnand %p5766_p8, %p5238_p9 }
0x19b8   : > { %p5768_p13 = pneg %p5767_p10 }
0x19ba   : > { %p5775_p12 = pnand %p5774_p0, %p5768_p13 }
0x19bc   : > { %5778 = shalt.err (!%p5775_p12)
}
0x19bd   : > { %s5891_s25 = smov 128   ;;  %s5892_s19 = smov 8  }
0x19be   : > { %s7112_s22 = sld [smem:[#allocation52_spill]] }
0x19c4   : > { %5184 = dma.vmem_to_hbm [thread:$0]  (%p5238_p9), %s4386_s30, 256, %s7112_s22, [#allocation6], %s5891_s25, %s5891_s25, %s5892_s19  }
0x19c5   : > { %5842 = dma.done.wait (%p5238_p9), [#allocation6], 256  }
0x19c6   : > { %5844 = vsyncadd (%p5238_p9), [#allocation6], 4294967040 }
0x19c7 PF: > { %s7113_s24 = sld [smem:[#allocation41_spill]] }
0x19c8   : > { %s7114_s21 = sld [smem:[#allocation38_spill]] }
0x19c9   : > { %s7115_s22 = sld [smem:[#allocation39_spill]] }
0x19ca   : > { %s7116_s23 = sld [smem:[#allocation42_spill]] }
0x19cd   : > { %p44_p2 = scmp.ge.s32.totalorder %s7113_s24, 6  }
0x19cf   :  { %46 = sbr.rel (!%p44_p2) target bundleno = 25 (0x19), region = 265 }
0x19d4   :  { %4401 = vsyncpa [#allocation5], 1 }
0x19d5   :  { %4403 = vsyncpa [#allocation5 + $0x1], 1 }
0x19d6   :  { %4404 = vsyncpa [#allocation8], 1 }
0x19d7   :  { %4406 = vsyncpa [#allocation8 + $0x1], 1 }
0x19d8   :  { %4407 = vsyncpa [#allocation11], 1 }
0x19d9   :  { %4409 = vsyncpa [#allocation11 + $0x1], 1 }
0x19da   :  { %4410 = vsyncpa [#allocation14], 1 }
0x19db   :  { %4412 = vsyncpa [#allocation14 + $0x1], 1 }
0x19dc   :  { %4413 = vsyncpa [#allocation17], 1 }
0x19dd   :  { %4415 = vsyncpa [#allocation17 + $0x1], 1 }
0x19de   :  { %4416 = vsyncpa [#allocation20], 1 }
0x19df   :  { %4418 = vsyncpa [#allocation20 + $0x1], 1 }
0x19e0   :  { %4419 = vsyncpa [#allocation23], 1 }
0x19e1   :  { %4421 = vsyncpa [#allocation23 + $0x1], 1 }
0x19e2   :  { %4422 = vsyncpa [#allocation26], 1 }
0x19e3   :  { %4423 = vsyncpa [#allocation6], 1 }
0x19e4   :  { %4425 = vsyncpa [#allocation6 + $0x1], 1 }

</bundles_post_ra>
